<compile_context>
chip_gen: v6e
topology: v6e:2x2x1
jax: 0.10.0
libtpu: 0.0.40
codegen_flags: <defaults>
</compile_context>

<pallas_src>
import math
import functools

import jax
import jax.numpy as jnp
from jax import lax
from jax.experimental import pallas as pl
from jax.experimental.pallas import tpu as pltpu

F32 = jnp.float32
MXU_DTYPE = jnp.bfloat16          # MXU operand dtype AND HBM storage dtype for weights
ACT_DTYPE = jnp.bfloat16          # inter-kernel activation dtype (halves HBM passes)
LN_EPS = 1e-6                     # timm-ViT LayerNorm eps


def _default_vmem_limit():
    """Generous pipelining budget on v5e/v6e (128 MiB physical); conservative elsewhere
    (v7x has only 64 MiB physical per TensorCore)."""
    try:
        kind = jax.devices()[0].device_kind.lower()
    except Exception:
        kind = ""
    if ("v5e" in kind) or ("v5 lite" in kind) or ("v6" in kind):
        return 64 * 1024 * 1024
    return 32 * 1024 * 1024


VMEM_LIMIT = _default_vmem_limit()


def _pick_tile(dim, candidates=(512, 256, 128)):
    """Largest MXU/vreg-aligned tile that divides `dim`, else the full dim.
    Only used for weight dims (N, K) that we control and that stay modest."""
    for c in candidates:
        if dim % c == 0:
            return c
    return dim


def _tile_and_pad_m(M, candidates=(256, 128)):
    """Tile size + padded extent for the token (M) axis.  Never falls back to one giant
    un-pipelined block: non-divisible M is padded up to a tile multiple (pad rows are
    sliced off by the wrapper)."""
    for c in candidates:
        if M % c == 0:
            return c, M
    base = candidates[-1]
    if M < base:
        tm = max(8, ((M + 7) // 8) * 8)       # tiny M: a single sublane-aligned block
        return tm, tm
    Mp = ((M + base - 1) // base) * base
    return base, Mp


def _pad_rows(x2, Mp):
    M = x2.shape[0]
    if Mp == M:
        return x2
    return jnp.pad(x2, ((0, Mp - M), (0, 0)))


def _gelu(y):
    # TODO(synk): PyTorch nn.GELU defaults to the exact erf form; tanh approx kept here
    #   (maps to the EUP tanh unit; erf lowering support is not guaranteed).
    c = jnp.float32(0.7978845608028654)  # sqrt(2/pi)
    return 0.5 * y * (1.0 + jnp.tanh(c * (y + 0.044715 * y * y * y)))


# ----------------------------------------------------------------------------
# Pallas kernels
# ----------------------------------------------------------------------------

def _ln_matmul_kernel(x_ref, g_ref, bln_ref, w_ref, b_ref, o_ref, xn_ref, *, eps, activation):
    """Fused LayerNorm(x) @ W + b (+ GELU).  The LN result is computed once per M tile
    (grid axis j == 0), cached in bf16 VMEM scratch, and reused for every N tile so the
    XLU/EUP LayerNorm work is not repeated per output tile."""
    @pl.when(pl.program_id(1) == 0)
    def _():
        x = x_ref[...].astype(F32)
        mu = jnp.mean(x, axis=-1, keepdims=True)
        var = jnp.mean((x - mu) ** 2, axis=-1, keepdims=True)
        xn = (x - mu) * lax.rsqrt(var + eps) * g_ref[...] + bln_ref[...]
        xn_ref[...] = xn.astype(MXU_DTYPE)

    y = jnp.dot(xn_ref[...], w_ref[...], preferred_element_type=F32) + b_ref[...]
    if activation == "gelu":
        y = _gelu(y)
    o_ref[...] = y.astype(o_ref.dtype)


def ln_linear(x, g, b_ln, w, b, activation="none", out_dtype=ACT_DTYPE):
    """y = act(LayerNorm(x) @ w + b); LN fused + cached across N tiles.
    Grid tiles (M, N); K (the LN feature dim) stays whole inside the block."""
    *lead, K = x.shape
    N = w.shape[1]
    M = int(math.prod(lead)) if lead else 1
    tm, Mp = _tile_and_pad_m(M)
    tn = _pick_tile(N)
    x2 = _pad_rows(x.reshape(M, K), Mp)
    out = pl.pallas_call(
        functools.partial(_ln_matmul_kernel, eps=LN_EPS, activation=activation),
        grid=(Mp // tm, N // tn),
        in_specs=[
            pl.BlockSpec((tm, K), lambda i, j: (i, 0)),   # activations: invariant to j
            pl.BlockSpec((1, K), lambda i, j: (0, 0)),
            pl.BlockSpec((1, K), lambda i, j: (0, 0)),
            pl.BlockSpec((K, tn), lambda i, j: (0, j)),   # bf16 weights: invariant to i
            pl.BlockSpec((1, tn), lambda i, j: (0, j)),
        ],
        out_specs=pl.BlockSpec((tm, tn), lambda i, j: (i, j)),
        out_shape=jax.ShapeDtypeStruct((Mp, N), out_dtype),
        scratch_shapes=[pltpu.VMEM((tm, K), MXU_DTYPE)],
        compiler_params=pltpu.CompilerParams(
            # j must stay on one core / iterate in order for the LN cache to be valid.
            dimension_semantics=("parallel", "arbitrary"),
            vmem_limit_bytes=VMEM_LIMIT),
    )(x2, g.reshape(1, K), b_ln.reshape(1, K), w, b.reshape(1, N))
    if Mp != M:
        out = out[:M]
    return out.reshape(tuple(lead) + (N,))


def _matmul_kernel(*refs, activation, residual):
    """K-tiled matmul with f32 VMEM accumulator; bias / GELU / residual fused into
    the final store (only on the last K step)."""
    if residual:
        x_ref, w_ref, b_ref, r_ref, o_ref, acc_ref = refs
    else:
        x_ref, w_ref, b_ref, o_ref, acc_ref = refs
        r_ref = None

    @pl.when(pl.program_id(2) == 0)
    def _():
        acc_ref[...] = jnp.zeros_like(acc_ref)

    acc_ref[...] += jnp.dot(x_ref[...].astype(MXU_DTYPE), w_ref[...],
                            preferred_element_type=F32)

    @pl.when(pl.program_id(2) == pl.num_programs(2) - 1)
    def _():
        y = acc_ref[...] + b_ref[...]
        if activation == "gelu":
            y = _gelu(y)
        if residual:
            y = y + r_ref[...].astype(F32)
        o_ref[...] = y.astype(o_ref.dtype)


def linear(x, w, b, residual=None, activation="none", out_dtype=ACT_DTYPE):
    """y = act(x @ w + b) [+ residual], tiled (M, N, K) with an f32 accumulator.
    When a residual is given, its HBM buffer is aliased to the output (no extra alloc)."""
    *lead, K = x.shape
    N = w.shape[1]
    M = int(math.prod(lead)) if lead else 1
    tm, Mp = _tile_and_pad_m(M)
    tn = _pick_tile(N)
    tk = _pick_tile(K)
    x2 = _pad_rows(x.reshape(M, K), Mp)
    has_res = residual is not None
    in_specs = [
        pl.BlockSpec((tm, tk), lambda i, j, k: (i, k)),
        pl.BlockSpec((tk, tn), lambda i, j, k: (k, j)),   # bf16 weight tile, invariant to i
        pl.BlockSpec((1, tn), lambda i, j, k: (0, j)),
    ]
    args = [x2, w, b.reshape(1, N)]
    io_aliases = {}
    if has_res:
        in_specs.append(pl.BlockSpec((tm, tn), lambda i, j, k: (i, j)))
        args.append(_pad_rows(residual.reshape(M, N).astype(out_dtype), Mp))
        io_aliases = {3: 0}   # residual buffer is reused as the output buffer
    out = pl.pallas_call(
        functools.partial(_matmul_kernel, activation=activation, residual=has_res),
        grid=(Mp // tm, N // tn, K // tk),
        in_specs=in_specs,
        out_specs=pl.BlockSpec((tm, tn), lambda i, j, k: (i, j)),
        out_shape=jax.ShapeDtypeStruct((Mp, N), out_dtype),
        scratch_shapes=[pltpu.VMEM((tm, tn), F32)],
        input_output_aliases=io_aliases,
        compiler_params=pltpu.CompilerParams(
            dimension_semantics=("parallel", "parallel", "arbitrary"),
            vmem_limit_bytes=VMEM_LIMIT),
    )(*args)
    if Mp != M:
        out = out[:M]
    return out.reshape(tuple(lead) + (N,))


def _attn_kernel(qkv_ref, o_ref, *, hpg, dh, scale):
    """One (batch, 128-lane head-group) tile.  q/k/v are static lane slices of the
    (T, 3*hpg*dh) group slab taken straight from the Ref; softmax stays f32; each head
    stores directly into its output lane slice (no concat, bounded live ranges)."""
    gw = hpg * dh
    for h in range(hpg):                      # hpg is small (<= 128 // dh)
        q = qkv_ref[0, :, h * dh:(h + 1) * dh]
        k = qkv_ref[0, :, gw + h * dh:gw + (h + 1) * dh]
        v = qkv_ref[0, :, 2 * gw + h * dh:2 * gw + (h + 1) * dh]
        s = lax.dot_general(q, k, (((1,), (1,)), ((), ())),
                            preferred_element_type=F32) * scale          # (T, T)
        s = s - jnp.max(s, axis=-1, keepdims=True)
        p = jnp.exp(s)
        p = p / jnp.sum(p, axis=-1, keepdims=True)   # exact softmax (matches torch)
        o = jnp.dot(p.astype(MXU_DTYPE), v, preferred_element_type=F32)  # (T, dh)
        o_ref[0, :, h * dh:(h + 1) * dh] = o.astype(o_ref.dtype)


def attention(qkv, heads):
    """qkv: (N, T, 3D) laid out per head-group as [q_grp | k_grp | v_grp]; returns
    (N, T, D) in the standard head-concatenated column order.  Grid over (batch,
    head-groups) keeps per-step VMEM to one 128-lane group slab and gives a real
    parallel axis beyond the batch."""
    N, T, threeD = qkv.shape
    D = threeD // 3
    dh = D // heads
    scale = 1.0 / math.sqrt(dh)
    if dh % 128 == 0:
        hpg = 1
    elif 128 % dh == 0 and heads % (128 // dh) == 0:
        hpg = 128 // dh                       # pack heads into 128-lane groups
    else:
        hpg = heads                           # fallback: one full-width group (full-dim block)
    n_groups = heads // hpg
    gw = hpg * dh
    # TODO(synk): for production sequence lengths (>~1K) switch to a KV-tiled
    #   online-softmax (flash) variant; whole-T score tiles are fine at these sizes.
    return pl.pallas_call(
        functools.partial(_attn_kernel, hpg=hpg, dh=dh, scale=scale),
        grid=(N, n_groups),
        in_specs=[pl.BlockSpec((1, T, 3 * gw), lambda n, g: (n, 0, g))],
        out_specs=pl.BlockSpec((1, T, gw), lambda n, g: (n, 0, g)),
        out_shape=jax.ShapeDtypeStruct((N, T, D), ACT_DTYPE),
        compiler_params=pltpu.CompilerParams(
            dimension_semantics=("parallel", "parallel"),
            vmem_limit_bytes=VMEM_LIMIT),
    )(qkv)


def _mask_kernel(p_ref, c_ref, g_ref, b_ref, o_ref, *, eps):
    """L2-normalized patch/class dot, emitted transposed as (n_cls, L) so L (=h*w) is the
    lane axis (dense stores, no wrapper transpose), with mask LayerNorm fused."""
    p = p_ref[0].astype(F32)                                  # (L, D)
    c = c_ref[0].astype(F32)                                  # (C, D)
    p = p * lax.rsqrt(jnp.sum(p * p, axis=-1, keepdims=True) + 1e-12)
    c = c * lax.rsqrt(jnp.sum(c * c, axis=-1, keepdims=True) + 1e-12)
    m = lax.dot_general(c.astype(MXU_DTYPE), p.astype(MXU_DTYPE),
                        (((1,), (1,)), ((), ())),
                        preferred_element_type=F32)           # (C, L)
    mu = jnp.mean(m, axis=0, keepdims=True)
    var = jnp.mean((m - mu) ** 2, axis=0, keepdims=True)
    mn = (m - mu) * lax.rsqrt(var + eps)
    o_ref[0] = (mn * g_ref[...] + b_ref[...]).astype(o_ref.dtype)


def mask_logits(patches, cls_seg, g, b):
    """(N, L, D) x (N, C, D) -> mask logits + mask LayerNorm, returned as (N, C, L)."""
    # TODO(synk): at production L (>=1024) the (C, L) store is lane-dense; small-L test
    #   configs fall back to masked stores (full-dim block), which is acceptable here.
    N, L, D = patches.shape
    C = cls_seg.shape[1]
    return pl.pallas_call(
        functools.partial(_mask_kernel, eps=LN_EPS),
        grid=(N,),
        in_specs=[
            pl.BlockSpec((1, L, D), lambda i: (i, 0, 0)),
            pl.BlockSpec((1, C, D), lambda i: (i, 0, 0)),
            pl.BlockSpec((C, 1), lambda i: (0, 0)),
            pl.BlockSpec((C, 1), lambda i: (0, 0)),
        ],
        out_specs=pl.BlockSpec((1, C, L), lambda i: (i, 0, 0)),
        out_shape=jax.ShapeDtypeStruct((N, C, L), F32),
        compiler_params=pltpu.CompilerParams(
            dimension_semantics=("parallel",),
            vmem_limit_bytes=VMEM_LIMIT),
    )(patches, cls_seg, g.reshape(C, 1), b.reshape(C, 1))


# ----------------------------------------------------------------------------
# Parameter init (deterministic, synthetic; weights stored bf16 in HBM)
# ----------------------------------------------------------------------------

class KeyGen:
    def __init__(self, key):
        self.key = key

    def __call__(self):
        self.key, sub = jax.random.split(self.key)
        return sub


def _normal(kg, shape, std=0.02, dtype=MXU_DTYPE):
    return (std * jax.random.normal(kg(), shape)).astype(dtype)


def init_block(kg, D, mlp_ratio):
    H = D * mlp_ratio
    # qkv_w columns are laid out per 128-lane head-group as [q_grp | k_grp | v_grp];
    # since the weights are synthetic random, this layout is self-consistent with
    # the attention kernel and the proj_w row order.
    return dict(
        n1_g=jnp.ones((D,), F32), n1_b=jnp.zeros((D,), F32),
        qkv_w=_normal(kg, (D, 3 * D)), qkv_b=jnp.zeros((3 * D,), F32),
        proj_w=_normal(kg, (D, D)), proj_b=jnp.zeros((D,), F32),
        n2_g=jnp.ones((D,), F32), n2_b=jnp.zeros((D,), F32),
        fc1_w=_normal(kg, (D, H)), fc1_b=jnp.zeros((H,), F32),
        fc2_w=_normal(kg, (H, D)), fc2_b=jnp.zeros((D,), F32),
    )


def init_segmenter_params(key, *, D, heads, enc_depth, dec_depth, mlp_ratio,
                          patch, in_ch, n_tokens, n_cls):
    kg = KeyGen(key)
    encoder = dict(
        patch_w=_normal(kg, (in_ch * patch * patch, D)),
        patch_b=jnp.zeros((D,), F32),
        cls_token=_normal(kg, (1, 1, D), dtype=ACT_DTYPE),
        pos_embed=_normal(kg, (1, n_tokens, D), dtype=ACT_DTYPE),
        blocks=[init_block(kg, D, mlp_ratio) for _ in range(enc_depth)],
        norm_g=jnp.ones((D,), F32), norm_b=jnp.zeros((D,), F32),
    )
    decoder = dict(
        proj_dec_w=_normal(kg, (D, D)), proj_dec_b=jnp.zeros((D,), F32),
        cls_emb=_normal(kg, (1, n_cls, D), dtype=ACT_DTYPE),
        blocks=[init_block(kg, D, mlp_ratio) for _ in range(dec_depth)],
        dec_norm_g=jnp.ones((D,), F32), dec_norm_b=jnp.zeros((D,), F32),
        proj_patch=_normal(kg, (D, D)),
        proj_classes=_normal(kg, (D, D)),
        mask_norm_g=jnp.ones((n_cls,), F32), mask_norm_b=jnp.zeros((n_cls,), F32),
        zero_bias=jnp.zeros((D,), F32),
    )
    return dict(encoder=encoder, decoder=decoder)


# ----------------------------------------------------------------------------
# Model forward (thin JAX glue around the Pallas kernels)
# ----------------------------------------------------------------------------

def transformer_block(x, p, heads):
    # LN1 fused into the qkv matmul; residual adds fused into proj / fc2 stores.
    qkv = ln_linear(x, p["n1_g"], p["n1_b"], p["qkv_w"], p["qkv_b"])        # (N, T, 3D) bf16
    o = attention(qkv, heads)                                               # (N, T, D) bf16
    x = linear(o, p["proj_w"], p["proj_b"], residual=x)
    h = ln_linear(x, p["n2_g"], p["n2_b"], p["fc1_w"], p["fc1_b"], activation="gelu")
    x = linear(h, p["fc2_w"], p["fc2_b"], residual=x)
    return x


def encoder_forward(x, ep, *, patch, heads):
    """ViT `forward_feat_attn` token features, WITHOUT the final LayerNorm
    (that LN is fused into the decoder's proj_dec matmul)."""
    N, C, H, W = x.shape
    h, w = H // patch, W // patch
    # TODO(synk): fold this im2col into the patch-embed kernel's index_map for production
    #   resolutions; at these sizes the XLA reshape/transpose is negligible.
    xp = (x.reshape(N, C, h, patch, w, patch)
            .transpose(0, 2, 4, 1, 3, 5)
            .reshape(N, h * w, C * patch * patch))
    tok = linear(xp, ep["patch_w"], ep["patch_b"])                          # (N, hw, D) bf16
    D = tok.shape[-1]
    cls = jnp.broadcast_to(ep["cls_token"], (N, 1, D))
    y = (jnp.concatenate([cls, tok], axis=1) + ep["pos_embed"]).astype(ACT_DTYPE)
    for bp in ep["blocks"]:
        y = transformer_block(y, bp, heads)
    return y


def decoder_forward(patches_in, enc_ng, enc_nb, dp, *, heads, n_cls):
    """MaskTransformer decoder: (N, hw, D) -> masks (N, n_cls, hw) [already transposed]."""
    N, L, D = patches_in.shape
    # Encoder final LN is per-token, so LN-then-slice == slice-then-LN: fuse it here.
    x = ln_linear(patches_in, enc_ng, enc_nb, dp["proj_dec_w"], dp["proj_dec_b"])
    cls = jnp.broadcast_to(dp["cls_emb"], (N, n_cls, D))
    x = jnp.concatenate([x, cls], axis=1)
    for bp in dp["blocks"]:
        x = transformer_block(x, bp, heads)
    # Decoder final LN fused into both projection matmuls.
    patches = ln_linear(x[:, :L], dp["dec_norm_g"], dp["dec_norm_b"],
                        dp["proj_patch"], dp["zero_bias"])
    cls_seg = ln_linear(x[:, L:], dp["dec_norm_g"], dp["dec_norm_b"],
                        dp["proj_classes"], dp["zero_bias"])
    masks_t = mask_logits(patches, cls_seg, dp["mask_norm_g"], dp["mask_norm_b"])
    return masks_t, cls_seg                                                 # (N, n_cls, L)


def segmenter_forward(params, x, *, patch, heads, n_cls):
    """
    x: N x 3 x H x W  (NCHW, like the PyTorch module)
    returns masks_cls: N x n_cls x h x w
    """
    N, _, H, W = x.shape
    h, w = H // patch, W // patch
    y = encoder_forward(x, params["encoder"], patch=patch, heads=heads)
    masks_t, _cls_embs = decoder_forward(
        y[:, 1:], params["encoder"]["norm_g"], params["encoder"]["norm_b"],
        params["decoder"], heads=heads, n_cls=n_cls)
    # masks already emitted as (N, n_cls, L): only a reshape, no transpose.
    return masks_t.reshape(N, n_cls, h, w)


# ----------------------------------------------------------------------------
# Main
# ----------------------------------------------------------------------------

if __name__ == "__main__":
    # Small synthetic config with lane-aligned hidden dims: ViT with patch 8 on 32x32
    # images, D=128, 2 heads, 2 encoder blocks, 1 decoder block, n_things=3 -> n_cls=4.
    N, C, H, W = 2, 3, 32, 32
    PATCH, D, HEADS = 8, 128, 2
    ENC_DEPTH, DEC_DEPTH, MLP_RATIO = 2, 1, 4
    N_THINGS = 3
    N_CLS = N_THINGS + 1
    h, w = H // PATCH, W // PATCH
    n_tokens = 1 + h * w

    key = jax.random.PRNGKey(0)
    k_param, k_data = jax.random.split(key)

    params = init_segmenter_params(
        k_param, D=D, heads=HEADS, enc_depth=ENC_DEPTH, dec_depth=DEC_DEPTH,
        mlp_ratio=MLP_RATIO, patch=PATCH, in_ch=C, n_tokens=n_tokens, n_cls=N_CLS)

    x = jax.random.uniform(k_data, (N, C, H, W), dtype=F32) * 255.0

    fwd = jax.jit(functools.partial(segmenter_forward, patch=PATCH, heads=HEADS, n_cls=N_CLS))
    out = fwd(params, x)
    out = jax.block_until_ready(out)

    assert out.shape == (N, N_CLS, h, w), out.shape
    assert jnp.all(jnp.isfinite(out))
    print("KERNEL_OK")
</pallas_src>

<mosaic_0001>
module attributes {stable_mosaic.version = 11 : i64} {
  func.func @_matmul_kernel(%arg0: i32, %arg1: i32, %arg2: i32, %arg3: memref<32x192xf32, #tpu.memory_space<vmem>>, %arg4: memref<192x128xbf16, #tpu.memory_space<vmem>>, %arg5: memref<1x128xf32, #tpu.memory_space<vmem>>, %arg6: memref<32x128xbf16, #tpu.memory_space<vmem>>, %arg7: memref<32x128xf32, #tpu.memory_space<vmem>>) attributes {dimension_semantics = [#tpu.dimension_semantics<parallel>, #tpu.dimension_semantics<parallel>, #tpu.dimension_semantics<arbitrary>], iteration_bounds = array<i64: 1, 1, 1>, scalar_prefetch = 0 : i64, scratch_operands = 1 : i64, tpu.core_type = #tpu.core_type<tc>, window_params = [{transform_indices = @transform_0, window_bounds = array<i64: 32, 192>}, {transform_indices = @transform_1, window_bounds = array<i64: 192, 128>}, {transform_indices = @transform_2, window_bounds = array<i64: 1, 128>}, {transform_indices = @transform_3, window_bounds = array<i64: 32, 128>}]} {
    %c0_i32 = arith.constant 0 : i32
    %0 = arith.cmpi eq, %arg2, %c0_i32 : i32
    %1 = arith.extui %0 : i1 to i32
    %c0_i32_0 = arith.constant 0 : i32
    %2 = arith.cmpi ne, %1, %c0_i32_0 : i32
    scf.if %2 {
      %cst_10 = arith.constant 0.000000e+00 : f32
      %13 = vector.broadcast %cst_10 : f32 to vector<32x128xf32>
      %c0_11 = arith.constant 0 : index
      %c0_12 = arith.constant 0 : index
      %14 = vector.load %arg7[%c0_11, %c0_12] : memref<32x128xf32, #tpu.memory_space<vmem>>, vector<32x128xf32>
      tpu.vector_store %arg7[%c0_11, %c0_12], %13 {strides = array<i32>} : memref<32x128xf32, #tpu.memory_space<vmem>>, vector<32x128xf32>,
    } else {
    }
    %c0 = arith.constant 0 : index
    %c0_1 = arith.constant 0 : index
    %3 = vector.load %arg7[%c0, %c0_1] : memref<32x128xf32, #tpu.memory_space<vmem>>, vector<32x128xf32>
    %c0_2 = arith.constant 0 : index
    %c0_3 = arith.constant 0 : index
    %4 = vector.load %arg3[%c0_2, %c0_3] : memref<32x192xf32, #tpu.memory_space<vmem>>, vector<32x192xf32>
    %5 = arith.truncf %4 : vector<32x192xf32> to vector<32x192xbf16>
    %c0_4 = arith.constant 0 : index
    %c0_5 = arith.constant 0 : index
    %6 = vector.load %arg4[%c0_4, %c0_5] : memref<192x128xbf16, #tpu.memory_space<vmem>>, vector<192x128xbf16>
    %cst = arith.constant dense<0.000000e+00> : vector<32x128xf32>
    %7 = tpu.matmul %5, %6, %cst {dimension_numbers = #tpu.dot_dimension_numbers<[1], [0], [0], [1], [0, 0, 1, 1], [], []>} : vector<32x192xbf16>, vector<192x128xbf16>, vector<32x128xf32> -> vector<32x128xf32>
    %8 = arith.addf %3, %7 : vector<32x128xf32>
    %c0_6 = arith.constant 0 : index
    %c0_7 = arith.constant 0 : index
    %9 = vector.load %arg7[%c0_6, %c0_7] : memref<32x128xf32, #tpu.memory_space<vmem>>, vector<32x128xf32>
    tpu.vector_store %arg7[%c0_6, %c0_7], %8 {strides = array<i32>} : memref<32x128xf32, #tpu.memory_space<vmem>>, vector<32x128xf32>,
    %c0_i32_8 = arith.constant 0 : i32
    %10 = arith.cmpi eq, %arg2, %c0_i32_8 : i32
    %11 = arith.extui %10 : i1 to i32
    %c0_i32_9 = arith.constant 0 : i32
    %12 = arith.cmpi ne, %11, %c0_i32_9 : i32
    scf.if %12 {
      %c0_10 = arith.constant 0 : index
      %c0_11 = arith.constant 0 : index
      %13 = vector.load %arg7[%c0_10, %c0_11] : memref<32x128xf32, #tpu.memory_space<vmem>>, vector<32x128xf32>
      %c0_12 = arith.constant 0 : index
      %c0_13 = arith.constant 0 : index
      %14 = vector.load %arg5[%c0_12, %c0_13] : memref<1x128xf32, #tpu.memory_space<vmem>>, vector<1x128xf32>
      %15 = vector.broadcast %14 : vector<1x128xf32> to vector<32x128xf32>
      %16 = arith.addf %13, %15 : vector<32x128xf32>
      %17 = arith.truncf %16 : vector<32x128xf32> to vector<32x128xbf16>
      %c0_14 = arith.constant 0 : index
      %c0_15 = arith.constant 0 : index
      %18 = vector.load %arg6[%c0_14, %c0_15] : memref<32x128xbf16, #tpu.memory_space<vmem>>, vector<32x128xbf16>
      tpu.vector_store %arg6[%c0_14, %c0_15], %17 {strides = array<i32>} : memref<32x128xbf16, #tpu.memory_space<vmem>>, vector<32x128xbf16>,
    } else {
    }
    return
  }
  func.func @transform_0(%arg0: i32, %arg1: i32, %arg2: i32) -> (i32, i32) {
    %c0_i32 = arith.constant 0 : i32
    return %arg0, %arg2 : i32, i32
  }
  func.func @transform_1(%arg0: i32, %arg1: i32, %arg2: i32) -> (i32, i32) {
    %c0_i32 = arith.constant 0 : i32
    return %arg2, %arg1 : i32, i32
  }
  func.func @transform_2(%arg0: i32, %arg1: i32, %arg2: i32) -> (i32, i32) {
    %c0_i32 = arith.constant 0 : i32
    %c0_i32_0 = arith.constant 0 : i32
    return %c0_i32, %arg1 : i32, i32
  }
  func.func @transform_3(%arg0: i32, %arg1: i32, %arg2: i32) -> (i32, i32) {
    %c0_i32 = arith.constant 0 : i32
    return %arg0, %arg1 : i32, i32
  }
}

module attributes {stable_mosaic.version = 11 : i64} {
  func.func @_ln_matmul_kernel(%arg0: i32, %arg1: i32, %arg2: memref<40x128xbf16, #tpu.memory_space<vmem>>, %arg3: memref<1x128xf32, #tpu.memory_space<vmem>>, %arg4: memref<1x128xf32, #tpu.memory_space<vmem>>, %arg5: memref<128x128xbf16, #tpu.memory_space<vmem>>, %arg6: memref<1x128xf32, #tpu.memory_space<vmem>>, %arg7: memref<40x128xbf16, #tpu.memory_space<vmem>>, %arg8: memref<40x128xbf16, #tpu.memory_space<vmem>>) attributes {dimension_semantics = [#tpu.dimension_semantics<parallel>, #tpu.dimension_semantics<arbitrary>], iteration_bounds = array<i64: 1, 3>, scalar_prefetch = 0 : i64, scratch_operands = 1 : i64, tpu.core_type = #tpu.core_type<tc>, window_params = [{transform_indices = @transform_0, window_bounds = array<i64: 40, 128>}, {pipeline_mode = #tpu.pipeline_mode<synchronous>, transform_indices = @transform_1, window_bounds = array<i64: 1, 128>}, {pipeline_mode = #tpu.pipeline_mode<synchronous>, transform_indices = @transform_2, window_bounds = array<i64: 1, 128>}, {transform_indices = @transform_3, window_bounds = array<i64: 128, 128>}, {transform_indices = @transform_4, window_bounds = array<i64: 1, 128>}, {transform_indices = @transform_5, window_bounds = array<i64: 40, 128>}]} {
    %c0_i32 = arith.constant 0 : i32
    %0 = arith.cmpi eq, %arg1, %c0_i32 : i32
    %1 = arith.extui %0 : i1 to i32
    %c0_i32_0 = arith.constant 0 : i32
    %2 = arith.cmpi ne, %1, %c0_i32_0 : i32
    scf.if %2 {
      %c0_8 = arith.constant 0 : index
      %c0_9 = arith.constant 0 : index
      %11 = vector.load %arg2[%c0_8, %c0_9] : memref<40x128xbf16, #tpu.memory_space<vmem>>, vector<40x128xbf16>
      %12 = arith.extf %11 : vector<40x128xbf16> to vector<40x128xf32>
      %cst_10 = arith.constant dense<0.000000e+00> : vector<40xf32>
      %13 = vector.multi_reduction <add>, %12, %cst_10 [1] : vector<40x128xf32> to vector<40xf32>
      %14 = vector.shape_cast %13 : vector<40xf32> to vector<40x1xf32>
      %cst_11 = arith.constant 1.280000e+02 : f32
      %15 = vector.broadcast %cst_11 : f32 to vector<40x1xf32>
      %16 = arith.divf %14, %15 : vector<40x1xf32>
      %17 = vector.broadcast %16 : vector<40x1xf32> to vector<40x128xf32>
      %18 = arith.subf %12, %17 : vector<40x128xf32>
      %19 = arith.mulf %18, %18 : vector<40x128xf32>
      %cst_12 = arith.constant dense<0.000000e+00> : vector<40xf32>
      %20 = vector.multi_reduction <add>, %19, %cst_12 [1] : vector<40x128xf32> to vector<40xf32>
      %21 = vector.shape_cast %20 : vector<40xf32> to vector<40x1xf32>
      %cst_13 = arith.constant 1.280000e+02 : f32
      %22 = vector.broadcast %cst_13 : f32 to vector<40x1xf32>
      %23 = arith.divf %21, %22 : vector<40x1xf32>
      %24 = vector.broadcast %16 : vector<40x1xf32> to vector<40x128xf32>
      %25 = arith.subf %12, %24 : vector<40x128xf32>
      %cst_14 = arith.constant 9.99999997E-7 : f32
      %26 = vector.broadcast %cst_14 : f32 to vector<40x1xf32>
      %27 = arith.addf %23, %26 : vector<40x1xf32>
      %28 = math.rsqrt %27 : vector<40x1xf32>
      %29 = vector.broadcast %28 : vector<40x1xf32> to vector<40x128xf32>
      %30 = arith.mulf %25, %29 : vector<40x128xf32>
      %c0_15 = arith.constant 0 : index
      %c0_16 = arith.constant 0 : index
      %31 = vector.load %arg3[%c0_15, %c0_16] : memref<1x128xf32, #tpu.memory_space<vmem>>, vector<1x128xf32>
      %32 = vector.broadcast %31 : vector<1x128xf32> to vector<40x128xf32>
      %33 = arith.mulf %30, %32 : vector<40x128xf32>
      %c0_17 = arith.constant 0 : index
      %c0_18 = arith.constant 0 : index
      %34 = vector.load %arg4[%c0_17, %c0_18] : memref<1x128xf32, #tpu.memory_space<vmem>>, vector<1x128xf32>
      %35 = vector.broadcast %34 : vector<1x128xf32> to vector<40x128xf32>
      %36 = arith.addf %33, %35 : vector<40x128xf32>
      %37 = arith.truncf %36 : vector<40x128xf32> to vector<40x128xbf16>
      %c0_19 = arith.constant 0 : index
      %c0_20 = arith.constant 0 : index
      %38 = vector.load %arg8[%c0_19, %c0_20] : memref<40x128xbf16, #tpu.memory_space<vmem>>, vector<40x128xbf16>
      tpu.vector_store %arg8[%c0_19, %c0_20], %37 {strides = array<i32>} : memref<40x128xbf16, #tpu.memory_space<vmem>>, vector<40x128xbf16>,
    } else {
    }
    %c0 = arith.constant 0 : index
    %c0_1 = arith.constant 0 : index
    %3 = vector.load %arg8[%c0, %c0_1] : memref<40x128xbf16, #tpu.memory_space<vmem>>, vector<40x128xbf16>
    %c0_2 = arith.constant 0 : index
    %c0_3 = arith.constant 0 : index
    %4 = vector.load %arg5[%c0_2, %c0_3] : memref<128x128xbf16, #tpu.memory_space<vmem>>, vector<128x128xbf16>
    %cst = arith.constant dense<0.000000e+00> : vector<40x128xf32>
    %5 = tpu.matmul %3, %4, %cst {dimension_numbers = #tpu.dot_dimension_numbers<[1], [0], [0], [1], [0, 0, 1, 1], [], []>} : vector<40x128xbf16>, vector<128x128xbf16>, vector<40x128xf32> -> vector<40x128xf32>
    %c0_4 = arith.constant 0 : index
    %c0_5 = arith.constant 0 : index
    %6 = vector.load %arg6[%c0_4, %c0_5] : memref<1x128xf32, #tpu.memory_space<vmem>>, vector<1x128xf32>
    %7 = vector.broadcast %6 : vector<1x128xf32> to vector<40x128xf32>
    %8 = arith.addf %5, %7 : vector<40x128xf32>
    %9 = arith.truncf %8 : vector<40x128xf32> to vector<40x128xbf16>
    %c0_6 = arith.constant 0 : index
    %c0_7 = arith.constant 0 : index
    %10 = vector.load %arg7[%c0_6, %c0_7] : memref<40x128xbf16, #tpu.memory_space<vmem>>, vector<40x128xbf16>
    tpu.vector_store %arg7[%c0_6, %c0_7], %9 {strides = array<i32>} : memref<40x128xbf16, #tpu.memory_space<vmem>>, vector<40x128xbf16>,
    return
  }
  func.func @transform_0(%arg0: i32, %arg1: i32) -> (i32, i32) {
    %c0_i32 = arith.constant 0 : i32
    %c0_i32_0 = arith.constant 0 : i32
    return %arg0, %c0_i32 : i32, i32
  }
  func.func @transform_1(%arg0: i32, %arg1: i32) -> (i32, i32) {
    %c0_i32 = arith.constant 0 : i32
    %c0_i32_0 = arith.constant 0 : i32
    %c0_i32_1 = arith.constant 0 : i32
    return %c0_i32, %c0_i32_0 : i32, i32
  }
  func.func @transform_2(%arg0: i32, %arg1: i32) -> (i32, i32) {
    %c0_i32 = arith.constant 0 : i32
    %c0_i32_0 = arith.constant 0 : i32
    %c0_i32_1 = arith.constant 0 : i32
    return %c0_i32, %c0_i32_0 : i32, i32
  }
  func.func @transform_3(%arg0: i32, %arg1: i32) -> (i32, i32) {
    %c0_i32 = arith.constant 0 : i32
    %c0_i32_0 = arith.constant 0 : i32
    return %c0_i32, %arg1 : i32, i32
  }
  func.func @transform_4(%arg0: i32, %arg1: i32) -> (i32, i32) {
    %c0_i32 = arith.constant 0 : i32
    %c0_i32_0 = arith.constant 0 : i32
    return %c0_i32, %arg1 : i32, i32
  }
  func.func @transform_5(%arg0: i32, %arg1: i32) -> (i32, i32) {
    %c0_i32 = arith.constant 0 : i32
    return %arg0, %arg1 : i32, i32
  }
}

module attributes {stable_mosaic.version = 11 : i64} {
  func.func @_matmul_kernel(%arg0: i32, %arg1: i32, %arg2: i32, %arg3: memref<40x128xbf16, #tpu.memory_space<vmem>>, %arg4: memref<128x128xbf16, #tpu.memory_space<vmem>>, %arg5: memref<1x128xf32, #tpu.memory_space<vmem>>, %arg6: memref<40x128xbf16, #tpu.memory_space<vmem>>, %arg7: memref<40x128xbf16, #tpu.memory_space<vmem>>, %arg8: memref<40x128xf32, #tpu.memory_space<vmem>>) attributes {dimension_semantics = [#tpu.dimension_semantics<parallel>, #tpu.dimension_semantics<parallel>, #tpu.dimension_semantics<arbitrary>], iteration_bounds = array<i64: 1, 1, 1>, scalar_prefetch = 0 : i64, scratch_operands = 1 : i64, tpu.core_type = #tpu.core_type<tc>, window_params = [{transform_indices = @transform_0, window_bounds = array<i64: 40, 128>}, {transform_indices = @transform_1, window_bounds = array<i64: 128, 128>}, {transform_indices = @transform_2, window_bounds = array<i64: 1, 128>}, {transform_indices = @transform_3, window_bounds = array<i64: 40, 128>}, {transform_indices = @transform_4, window_bounds = array<i64: 40, 128>}]} {
    %c0_i32 = arith.constant 0 : i32
    %0 = arith.cmpi eq, %arg2, %c0_i32 : i32
    %1 = arith.extui %0 : i1 to i32
    %c0_i32_0 = arith.constant 0 : i32
    %2 = arith.cmpi ne, %1, %c0_i32_0 : i32
    scf.if %2 {
      %cst_10 = arith.constant 0.000000e+00 : f32
      %12 = vector.broadcast %cst_10 : f32 to vector<40x128xf32>
      %c0_11 = arith.constant 0 : index
      %c0_12 = arith.constant 0 : index
      %13 = vector.load %arg8[%c0_11, %c0_12] : memref<40x128xf32, #tpu.memory_space<vmem>>, vector<40x128xf32>
      tpu.vector_store %arg8[%c0_11, %c0_12], %12 {strides = array<i32>} : memref<40x128xf32, #tpu.memory_space<vmem>>, vector<40x128xf32>,
    } else {
    }
    %c0 = arith.constant 0 : index
    %c0_1 = arith.constant 0 : index
    %3 = vector.load %arg8[%c0, %c0_1] : memref<40x128xf32, #tpu.memory_space<vmem>>, vector<40x128xf32>
    %c0_2 = arith.constant 0 : index
    %c0_3 = arith.constant 0 : index
    %4 = vector.load %arg3[%c0_2, %c0_3] : memref<40x128xbf16, #tpu.memory_space<vmem>>, vector<40x128xbf16>
    %c0_4 = arith.constant 0 : index
    %c0_5 = arith.constant 0 : index
    %5 = vector.load %arg4[%c0_4, %c0_5] : memref<128x128xbf16, #tpu.memory_space<vmem>>, vector<128x128xbf16>
    %cst = arith.constant dense<0.000000e+00> : vector<40x128xf32>
    %6 = tpu.matmul %4, %5, %cst {dimension_numbers = #tpu.dot_dimension_numbers<[1], [0], [0], [1], [0, 0, 1, 1], [], []>} : vector<40x128xbf16>, vector<128x128xbf16>, vector<40x128xf32> -> vector<40x128xf32>
    %7 = arith.addf %3, %6 : vector<40x128xf32>
    %c0_6 = arith.constant 0 : index
    %c0_7 = arith.constant 0 : index
    %8 = vector.load %arg8[%c0_6, %c0_7] : memref<40x128xf32, #tpu.memory_space<vmem>>, vector<40x128xf32>
    tpu.vector_store %arg8[%c0_6, %c0_7], %7 {strides = array<i32>} : memref<40x128xf32, #tpu.memory_space<vmem>>, vector<40x128xf32>,
    %c0_i32_8 = arith.constant 0 : i32
    %9 = arith.cmpi eq, %arg2, %c0_i32_8 : i32
    %10 = arith.extui %9 : i1 to i32
    %c0_i32_9 = arith.constant 0 : i32
    %11 = arith.cmpi ne, %10, %c0_i32_9 : i32
    scf.if %11 {
      %c0_10 = arith.constant 0 : index
      %c0_11 = arith.constant 0 : index
      %12 = vector.load %arg8[%c0_10, %c0_11] : memref<40x128xf32, #tpu.memory_space<vmem>>, vector<40x128xf32>
      %c0_12 = arith.constant 0 : index
      %c0_13 = arith.constant 0 : index
      %13 = vector.load %arg5[%c0_12, %c0_13] : memref<1x128xf32, #tpu.memory_space<vmem>>, vector<1x128xf32>
      %14 = vector.broadcast %13 : vector<1x128xf32> to vector<40x128xf32>
      %15 = arith.addf %12, %14 : vector<40x128xf32>
      %c0_14 = arith.constant 0 : index
      %c0_15 = arith.constant 0 : index
      %16 = vector.load %arg6[%c0_14, %c0_15] : memref<40x128xbf16, #tpu.memory_space<vmem>>, vector<40x128xbf16>
      %17 = arith.extf %16 : vector<40x128xbf16> to vector<40x128xf32>
      %18 = arith.addf %15, %17 : vector<40x128xf32>
      %19 = arith.truncf %18 : vector<40x128xf32> to vector<40x128xbf16>
      %c0_16 = arith.constant 0 : index
      %c0_17 = arith.constant 0 : index
      %20 = vector.load %arg7[%c0_16, %c0_17] : memref<40x128xbf16, #tpu.memory_space<vmem>>, vector<40x128xbf16>
      tpu.vector_store %arg7[%c0_16, %c0_17], %19 {strides = array<i32>} : memref<40x128xbf16, #tpu.memory_space<vmem>>, vector<40x128xbf16>,
    } else {
    }
    return
  }
  func.func @transform_0(%arg0: i32, %arg1: i32, %arg2: i32) -> (i32, i32) {
    %c0_i32 = arith.constant 0 : i32
    return %arg0, %arg2 : i32, i32
  }
  func.func @transform_1(%arg0: i32, %arg1: i32, %arg2: i32) -> (i32, i32) {
    %c0_i32 = arith.constant 0 : i32
    return %arg2, %arg1 : i32, i32
  }
  func.func @transform_2(%arg0: i32, %arg1: i32, %arg2: i32) -> (i32, i32) {
    %c0_i32 = arith.constant 0 : i32
    %c0_i32_0 = arith.constant 0 : i32
    return %c0_i32, %arg1 : i32, i32
  }
  func.func @transform_3(%arg0: i32, %arg1: i32, %arg2: i32) -> (i32, i32) {
    %c0_i32 = arith.constant 0 : i32
    return %arg0, %arg1 : i32, i32
  }
  func.func @transform_4(%arg0: i32, %arg1: i32, %arg2: i32) -> (i32, i32) {
    %c0_i32 = arith.constant 0 : i32
    return %arg0, %arg1 : i32, i32
  }
}

module attributes {stable_mosaic.version = 11 : i64} {
  func.func @_attn_kernel(%arg0: i32, %arg1: i32, %arg2: memref<1x17x384xbf16, #tpu.memory_space<vmem>>, %arg3: memref<1x17x128xbf16, #tpu.memory_space<vmem>>) attributes {dimension_semantics = [#tpu.dimension_semantics<parallel>, #tpu.dimension_semantics<parallel>], iteration_bounds = array<i64: 2, 1>, scalar_prefetch = 0 : i64, scratch_operands = 0 : i64, tpu.core_type = #tpu.core_type<tc>, window_params = [{transform_indices = @transform_0, window_bounds = array<i64: 1, 17, 384>}, {transform_indices = @transform_1, window_bounds = array<i64: 1, 17, 128>}]} {
    %c0 = arith.constant 0 : index
    %c0_0 = arith.constant 0 : index
    %c0_1 = arith.constant 0 : index
    %0 = vector.load %arg2[%c0, %c0_0, %c0_1] : memref<1x17x384xbf16, #tpu.memory_space<vmem>>, vector<1x17x64xbf16>
    %1 = vector.shape_cast %0 : vector<1x17x64xbf16> to vector<17x64xbf16>
    %c0_2 = arith.constant 0 : index
    %c0_3 = arith.constant 0 : index
    %c128 = arith.constant 128 : index
    %2 = vector.load %arg2[%c0_2, %c0_3, %c128] : memref<1x17x384xbf16, #tpu.memory_space<vmem>>, vector<1x17x64xbf16>
    %3 = vector.shape_cast %2 : vector<1x17x64xbf16> to vector<17x64xbf16>
    %c0_4 = arith.constant 0 : index
    %c0_5 = arith.constant 0 : index
    %c256 = arith.constant 256 : index
    %4 = vector.load %arg2[%c0_4, %c0_5, %c256] : memref<1x17x384xbf16, #tpu.memory_space<vmem>>, vector<1x17x64xbf16>
    %5 = vector.shape_cast %4 : vector<1x17x64xbf16> to vector<17x64xbf16>
    %cst = arith.constant dense<0.000000e+00> : vector<17x17xf32>
    %6 = tpu.matmul %1, %3, %cst {dimension_numbers = #tpu.dot_dimension_numbers<[1], [1], [0], [0], [0, 0, 1, 0], [], []>} : vector<17x64xbf16>, vector<17x64xbf16>, vector<17x17xf32> -> vector<17x17xf32>
    %cst_6 = arith.constant 1.250000e-01 : f32
    %7 = vector.broadcast %cst_6 : f32 to vector<17x17xf32>
    %8 = arith.mulf %6, %7 : vector<17x17xf32>
    %cst_7 = arith.constant dense<0xFF800000> : vector<17xf32>
    %9 = vector.multi_reduction <maximumf>, %8, %cst_7 [1] : vector<17x17xf32> to vector<17xf32>
    %10 = vector.shape_cast %9 : vector<17xf32> to vector<17x1xf32>
    %11 = vector.broadcast %10 : vector<17x1xf32> to vector<17x17xf32>
    %12 = arith.subf %8, %11 : vector<17x17xf32>
    %13 = math.exp %12 : vector<17x17xf32>
    %cst_8 = arith.constant dense<0.000000e+00> : vector<17xf32>
    %14 = vector.multi_reduction <add>, %13, %cst_8 [1] : vector<17x17xf32> to vector<17xf32>
    %15 = vector.shape_cast %14 : vector<17xf32> to vector<17x1xf32>
    %16 = vector.broadcast %15 : vector<17x1xf32> to vector<17x17xf32>
    %17 = arith.divf %13, %16 : vector<17x17xf32>
    %18 = arith.truncf %17 : vector<17x17xf32> to vector<17x17xbf16>
    %cst_9 = arith.constant dense<0.000000e+00> : vector<17x64xf32>
    %19 = tpu.matmul %18, %5, %cst_9 {dimension_numbers = #tpu.dot_dimension_numbers<[1], [0], [0], [1], [0, 0, 1, 1], [], []>} : vector<17x17xbf16>, vector<17x64xbf16>, vector<17x64xf32> -> vector<17x64xf32>
    %20 = arith.truncf %19 : vector<17x64xf32> to vector<17x64xbf16>
    %c0_10 = arith.constant 0 : index
    %c0_11 = arith.constant 0 : index
    %c0_12 = arith.constant 0 : index
    %21 = vector.load %arg3[%c0_10, %c0_11, %c0_12] : memref<1x17x128xbf16, #tpu.memory_space<vmem>>, vector<1x17x64xbf16>
    %22 = vector.shape_cast %21 : vector<1x17x64xbf16> to vector<17x64xbf16>
    %23 = vector.shape_cast %20 : vector<17x64xbf16> to vector<1x17x64xbf16>
    tpu.vector_store %arg3[%c0_10, %c0_11, %c0_12], %23 {strides = array<i32>} : memref<1x17x128xbf16, #tpu.memory_space<vmem>>, vector<1x17x64xbf16>,
    %c0_13 = arith.constant 0 : index
    %c0_14 = arith.constant 0 : index
    %c64 = arith.constant 64 : index
    %24 = vector.load %arg2[%c0_13, %c0_14, %c64] : memref<1x17x384xbf16, #tpu.memory_space<vmem>>, vector<1x17x64xbf16>
    %25 = vector.shape_cast %24 : vector<1x17x64xbf16> to vector<17x64xbf16>
    %c0_15 = arith.constant 0 : index
    %c0_16 = arith.constant 0 : index
    %c192 = arith.constant 192 : index
    %26 = vector.load %arg2[%c0_15, %c0_16, %c192] : memref<1x17x384xbf16, #tpu.memory_space<vmem>>, vector<1x17x64xbf16>
    %27 = vector.shape_cast %26 : vector<1x17x64xbf16> to vector<17x64xbf16>
    %c0_17 = arith.constant 0 : index
    %c0_18 = arith.constant 0 : index
    %c320 = arith.constant 320 : index
    %28 = vector.load %arg2[%c0_17, %c0_18, %c320] : memref<1x17x384xbf16, #tpu.memory_space<vmem>>, vector<1x17x64xbf16>
    %29 = vector.shape_cast %28 : vector<1x17x64xbf16> to vector<17x64xbf16>
    %cst_19 = arith.constant dense<0.000000e+00> : vector<17x17xf32>
    %30 = tpu.matmul %25, %27, %cst_19 {dimension_numbers = #tpu.dot_dimension_numbers<[1], [1], [0], [0], [0, 0, 1, 0], [], []>} : vector<17x64xbf16>, vector<17x64xbf16>, vector<17x17xf32> -> vector<17x17xf32>
    %cst_20 = arith.constant 1.250000e-01 : f32
    %31 = vector.broadcast %cst_20 : f32 to vector<17x17xf32>
    %32 = arith.mulf %30, %31 : vector<17x17xf32>
    %cst_21 = arith.constant dense<0xFF800000> : vector<17xf32>
    %33 = vector.multi_reduction <maximumf>, %32, %cst_21 [1] : vector<17x17xf32> to vector<17xf32>
    %34 = vector.shape_cast %33 : vector<17xf32> to vector<17x1xf32>
    %35 = vector.broadcast %34 : vector<17x1xf32> to vector<17x17xf32>
    %36 = arith.subf %32, %35 : vector<17x17xf32>
    %37 = math.exp %36 : vector<17x17xf32>
    %cst_22 = arith.constant dense<0.000000e+00> : vector<17xf32>
    %38 = vector.multi_reduction <add>, %37, %cst_22 [1] : vector<17x17xf32> to vector<17xf32>
    %39 = vector.shape_cast %38 : vector<17xf32> to vector<17x1xf32>
    %40 = vector.broadcast %39 : vector<17x1xf32> to vector<17x17xf32>
    %41 = arith.divf %37, %40 : vector<17x17xf32>
    %42 = arith.truncf %41 : vector<17x17xf32> to vector<17x17xbf16>
    %cst_23 = arith.constant dense<0.000000e+00> : vector<17x64xf32>
    %43 = tpu.matmul %42, %29, %cst_23 {dimension_numbers = #tpu.dot_dimension_numbers<[1], [0], [0], [1], [0, 0, 1, 1], [], []>} : vector<17x17xbf16>, vector<17x64xbf16>, vector<17x64xf32> -> vector<17x64xf32>
    %44 = arith.truncf %43 : vector<17x64xf32> to vector<17x64xbf16>
    %c0_24 = arith.constant 0 : index
    %c0_25 = arith.constant 0 : index
    %c64_26 = arith.constant 64 : index
    %45 = vector.load %arg3[%c0_24, %c0_25, %c64_26] : memref<1x17x128xbf16, #tpu.memory_space<vmem>>, vector<1x17x64xbf16>
    %46 = vector.shape_cast %45 : vector<1x17x64xbf16> to vector<17x64xbf16>
    %47 = vector.shape_cast %44 : vector<17x64xbf16> to vector<1x17x64xbf16>
    tpu.vector_store %arg3[%c0_24, %c0_25, %c64_26], %47 {strides = array<i32>} : memref<1x17x128xbf16, #tpu.memory_space<vmem>>, vector<1x17x64xbf16>,
    return
  }
  func.func @transform_0(%arg0: i32, %arg1: i32) -> (i32, i32, i32) {
    %c0_i32 = arith.constant 0 : i32
    %c0_i32_0 = arith.constant 0 : i32
    return %arg0, %c0_i32, %arg1 : i32, i32, i32
  }
  func.func @transform_1(%arg0: i32, %arg1: i32) -> (i32, i32, i32) {
    %c0_i32 = arith.constant 0 : i32
    %c0_i32_0 = arith.constant 0 : i32
    return %arg0, %c0_i32, %arg1 : i32, i32, i32
  }
}

module attributes {stable_mosaic.version = 11 : i64} {
  func.func @_ln_matmul_kernel(%arg0: i32, %arg1: i32, %arg2: memref<40x128xbf16, #tpu.memory_space<vmem>>, %arg3: memref<1x128xf32, #tpu.memory_space<vmem>>, %arg4: memref<1x128xf32, #tpu.memory_space<vmem>>, %arg5: memref<128x512xbf16, #tpu.memory_space<vmem>>, %arg6: memref<1x512xf32, #tpu.memory_space<vmem>>, %arg7: memref<40x512xbf16, #tpu.memory_space<vmem>>, %arg8: memref<40x128xbf16, #tpu.memory_space<vmem>>) attributes {dimension_semantics = [#tpu.dimension_semantics<parallel>, #tpu.dimension_semantics<arbitrary>], iteration_bounds = array<i64: 1, 1>, scalar_prefetch = 0 : i64, scratch_operands = 1 : i64, tpu.core_type = #tpu.core_type<tc>, window_params = [{transform_indices = @transform_0, window_bounds = array<i64: 40, 128>}, {pipeline_mode = #tpu.pipeline_mode<synchronous>, transform_indices = @transform_1, window_bounds = array<i64: 1, 128>}, {pipeline_mode = #tpu.pipeline_mode<synchronous>, transform_indices = @transform_2, window_bounds = array<i64: 1, 128>}, {transform_indices = @transform_3, window_bounds = array<i64: 128, 512>}, {transform_indices = @transform_4, window_bounds = array<i64: 1, 512>}, {transform_indices = @transform_5, window_bounds = array<i64: 40, 512>}]} {
    %c0_i32 = arith.constant 0 : i32
    %0 = arith.cmpi eq, %arg1, %c0_i32 : i32
    %1 = arith.extui %0 : i1 to i32
    %c0_i32_0 = arith.constant 0 : i32
    %2 = arith.cmpi ne, %1, %c0_i32_0 : i32
    scf.if %2 {
      %c0_12 = arith.constant 0 : index
      %c0_13 = arith.constant 0 : index
      %24 = vector.load %arg2[%c0_12, %c0_13] : memref<40x128xbf16, #tpu.memory_space<vmem>>, vector<40x128xbf16>
      %25 = arith.extf %24 : vector<40x128xbf16> to vector<40x128xf32>
      %cst_14 = arith.constant dense<0.000000e+00> : vector<40xf32>
      %26 = vector.multi_reduction <add>, %25, %cst_14 [1] : vector<40x128xf32> to vector<40xf32>
      %27 = vector.shape_cast %26 : vector<40xf32> to vector<40x1xf32>
      %cst_15 = arith.constant 1.280000e+02 : f32
      %28 = vector.broadcast %cst_15 : f32 to vector<40x1xf32>
      %29 = arith.divf %27, %28 : vector<40x1xf32>
      %30 = vector.broadcast %29 : vector<40x1xf32> to vector<40x128xf32>
      %31 = arith.subf %25, %30 : vector<40x128xf32>
      %32 = arith.mulf %31, %31 : vector<40x128xf32>
      %cst_16 = arith.constant dense<0.000000e+00> : vector<40xf32>
      %33 = vector.multi_reduction <add>, %32, %cst_16 [1] : vector<40x128xf32> to vector<40xf32>
      %34 = vector.shape_cast %33 : vector<40xf32> to vector<40x1xf32>
      %cst_17 = arith.constant 1.280000e+02 : f32
      %35 = vector.broadcast %cst_17 : f32 to vector<40x1xf32>
      %36 = arith.divf %34, %35 : vector<40x1xf32>
      %37 = vector.broadcast %29 : vector<40x1xf32> to vector<40x128xf32>
      %38 = arith.subf %25, %37 : vector<40x128xf32>
      %cst_18 = arith.constant 9.99999997E-7 : f32
      %39 = vector.broadcast %cst_18 : f32 to vector<40x1xf32>
      %40 = arith.addf %36, %39 : vector<40x1xf32>
      %41 = math.rsqrt %40 : vector<40x1xf32>
      %42 = vector.broadcast %41 : vector<40x1xf32> to vector<40x128xf32>
      %43 = arith.mulf %38, %42 : vector<40x128xf32>
      %c0_19 = arith.constant 0 : index
      %c0_20 = arith.constant 0 : index
      %44 = vector.load %arg3[%c0_19, %c0_20] : memref<1x128xf32, #tpu.memory_space<vmem>>, vector<1x128xf32>
      %45 = vector.broadcast %44 : vector<1x128xf32> to vector<40x128xf32>
      %46 = arith.mulf %43, %45 : vector<40x128xf32>
      %c0_21 = arith.constant 0 : index
      %c0_22 = arith.constant 0 : index
      %47 = vector.load %arg4[%c0_21, %c0_22] : memref<1x128xf32, #tpu.memory_space<vmem>>, vector<1x128xf32>
      %48 = vector.broadcast %47 : vector<1x128xf32> to vector<40x128xf32>
      %49 = arith.addf %46, %48 : vector<40x128xf32>
      %50 = arith.truncf %49 : vector<40x128xf32> to vector<40x128xbf16>
      %c0_23 = arith.constant 0 : index
      %c0_24 = arith.constant 0 : index
      %51 = vector.load %arg8[%c0_23, %c0_24] : memref<40x128xbf16, #tpu.memory_space<vmem>>, vector<40x128xbf16>
      tpu.vector_store %arg8[%c0_23, %c0_24], %50 {strides = array<i32>} : memref<40x128xbf16, #tpu.memory_space<vmem>>, vector<40x128xbf16>,
    } else {
    }
    %c0 = arith.constant 0 : index
    %c0_1 = arith.constant 0 : index
    %3 = vector.load %arg8[%c0, %c0_1] : memref<40x128xbf16, #tpu.memory_space<vmem>>, vector<40x128xbf16>
    %c0_2 = arith.constant 0 : index
    %c0_3 = arith.constant 0 : index
    %4 = vector.load %arg5[%c0_2, %c0_3] : memref<128x512xbf16, #tpu.memory_space<vmem>>, vector<128x512xbf16>
    %cst = arith.constant dense<0.000000e+00> : vector<40x512xf32>
    %5 = tpu.matmul %3, %4, %cst {dimension_numbers = #tpu.dot_dimension_numbers<[1], [0], [0], [1], [0, 0, 1, 1], [], []>} : vector<40x128xbf16>, vector<128x512xbf16>, vector<40x512xf32> -> vector<40x512xf32>
    %c0_4 = arith.constant 0 : index
    %c0_5 = arith.constant 0 : index
    %6 = vector.load %arg6[%c0_4, %c0_5] : memref<1x512xf32, #tpu.memory_space<vmem>>, vector<1x512xf32>
    %7 = vector.broadcast %6 : vector<1x512xf32> to vector<40x512xf32>
    %8 = arith.addf %5, %7 : vector<40x512xf32>
    %cst_6 = arith.constant 5.000000e-01 : f32
    %9 = vector.broadcast %cst_6 : f32 to vector<40x512xf32>
    %10 = arith.mulf %9, %8 : vector<40x512xf32>
    %cst_7 = arith.constant 4.471500e-02 : f32
    %11 = vector.broadcast %cst_7 : f32 to vector<40x512xf32>
    %12 = arith.mulf %11, %8 : vector<40x512xf32>
    %13 = arith.mulf %12, %8 : vector<40x512xf32>
    %14 = arith.mulf %13, %8 : vector<40x512xf32>
    %15 = arith.addf %8, %14 : vector<40x512xf32>
    %cst_8 = arith.constant 0.797884583 : f32
    %16 = vector.broadcast %cst_8 : f32 to vector<40x512xf32>
    %17 = arith.mulf %16, %15 : vector<40x512xf32>
    %18 = math.tanh %17 : vector<40x512xf32>
    %cst_9 = arith.constant 1.000000e+00 : f32
    %19 = vector.broadcast %cst_9 : f32 to vector<40x512xf32>
    %20 = arith.addf %19, %18 : vector<40x512xf32>
    %21 = arith.mulf %10, %20 : vector<40x512xf32>
    %22 = arith.truncf %21 : vector<40x512xf32> to vector<40x512xbf16>
    %c0_10 = arith.constant 0 : index
    %c0_11 = arith.constant 0 : index
    %23 = vector.load %arg7[%c0_10, %c0_11] : memref<40x512xbf16, #tpu.memory_space<vmem>>, vector<40x512xbf16>
    tpu.vector_store %arg7[%c0_10, %c0_11], %22 {strides = array<i32>} : memref<40x512xbf16, #tpu.memory_space<vmem>>, vector<40x512xbf16>,
    return
  }
  func.func @transform_0(%arg0: i32, %arg1: i32) -> (i32, i32) {
    %c0_i32 = arith.constant 0 : i32
    %c0_i32_0 = arith.constant 0 : i32
    return %arg0, %c0_i32 : i32, i32
  }
  func.func @transform_1(%arg0: i32, %arg1: i32) -> (i32, i32) {
    %c0_i32 = arith.constant 0 : i32
    %c0_i32_0 = arith.constant 0 : i32
    %c0_i32_1 = arith.constant 0 : i32
    return %c0_i32, %c0_i32_0 : i32, i32
  }
  func.func @transform_2(%arg0: i32, %arg1: i32) -> (i32, i32) {
    %c0_i32 = arith.constant 0 : i32
    %c0_i32_0 = arith.constant 0 : i32
    %c0_i32_1 = arith.constant 0 : i32
    return %c0_i32, %c0_i32_0 : i32, i32
  }
  func.func @transform_3(%arg0: i32, %arg1: i32) -> (i32, i32) {
    %c0_i32 = arith.constant 0 : i32
    %c0_i32_0 = arith.constant 0 : i32
    return %c0_i32, %arg1 : i32, i32
  }
  func.func @transform_4(%arg0: i32, %arg1: i32) -> (i32, i32) {
    %c0_i32 = arith.constant 0 : i32
    %c0_i32_0 = arith.constant 0 : i32
    return %c0_i32, %arg1 : i32, i32
  }
  func.func @transform_5(%arg0: i32, %arg1: i32) -> (i32, i32) {
    %c0_i32 = arith.constant 0 : i32
    return %arg0, %arg1 : i32, i32
  }
}

module attributes {stable_mosaic.version = 11 : i64} {
  func.func @_ln_matmul_kernel(%arg0: i32, %arg1: i32, %arg2: memref<32x128xbf16, #tpu.memory_space<vmem>>, %arg3: memref<1x128xf32, #tpu.memory_space<vmem>>, %arg4: memref<1x128xf32, #tpu.memory_space<vmem>>, %arg5: memref<128x128xbf16, #tpu.memory_space<vmem>>, %arg6: memref<1x128xf32, #tpu.memory_space<vmem>>, %arg7: memref<32x128xbf16, #tpu.memory_space<vmem>>, %arg8: memref<32x128xbf16, #tpu.memory_space<vmem>>) attributes {dimension_semantics = [#tpu.dimension_semantics<parallel>, #tpu.dimension_semantics<arbitrary>], iteration_bounds = array<i64: 1, 1>, scalar_prefetch = 0 : i64, scratch_operands = 1 : i64, tpu.core_type = #tpu.core_type<tc>, window_params = [{transform_indices = @transform_0, window_bounds = array<i64: 32, 128>}, {pipeline_mode = #tpu.pipeline_mode<synchronous>, transform_indices = @transform_1, window_bounds = array<i64: 1, 128>}, {pipeline_mode = #tpu.pipeline_mode<synchronous>, transform_indices = @transform_2, window_bounds = array<i64: 1, 128>}, {transform_indices = @transform_3, window_bounds = array<i64: 128, 128>}, {transform_indices = @transform_4, window_bounds = array<i64: 1, 128>}, {transform_indices = @transform_5, window_bounds = array<i64: 32, 128>}]} {
    %c0_i32 = arith.constant 0 : i32
    %0 = arith.cmpi eq, %arg1, %c0_i32 : i32
    %1 = arith.extui %0 : i1 to i32
    %c0_i32_0 = arith.constant 0 : i32
    %2 = arith.cmpi ne, %1, %c0_i32_0 : i32
    scf.if %2 {
      %c0_8 = arith.constant 0 : index
      %c0_9 = arith.constant 0 : index
      %11 = vector.load %arg2[%c0_8, %c0_9] : memref<32x128xbf16, #tpu.memory_space<vmem>>, vector<32x128xbf16>
      %12 = arith.extf %11 : vector<32x128xbf16> to vector<32x128xf32>
      %cst_10 = arith.constant dense<0.000000e+00> : vector<32xf32>
      %13 = vector.multi_reduction <add>, %12, %cst_10 [1] : vector<32x128xf32> to vector<32xf32>
      %14 = vector.shape_cast %13 : vector<32xf32> to vector<32x1xf32>
      %cst_11 = arith.constant 1.280000e+02 : f32
      %15 = vector.broadcast %cst_11 : f32 to vector<32x1xf32>
      %16 = arith.divf %14, %15 : vector<32x1xf32>
      %17 = vector.broadcast %16 : vector<32x1xf32> to vector<32x128xf32>
      %18 = arith.subf %12, %17 : vector<32x128xf32>
      %19 = arith.mulf %18, %18 : vector<32x128xf32>
      %cst_12 = arith.constant dense<0.000000e+00> : vector<32xf32>
      %20 = vector.multi_reduction <add>, %19, %cst_12 [1] : vector<32x128xf32> to vector<32xf32>
      %21 = vector.shape_cast %20 : vector<32xf32> to vector<32x1xf32>
      %cst_13 = arith.constant 1.280000e+02 : f32
      %22 = vector.broadcast %cst_13 : f32 to vector<32x1xf32>
      %23 = arith.divf %21, %22 : vector<32x1xf32>
      %24 = vector.broadcast %16 : vector<32x1xf32> to vector<32x128xf32>
      %25 = arith.subf %12, %24 : vector<32x128xf32>
      %cst_14 = arith.constant 9.99999997E-7 : f32
      %26 = vector.broadcast %cst_14 : f32 to vector<32x1xf32>
      %27 = arith.addf %23, %26 : vector<32x1xf32>
      %28 = math.rsqrt %27 : vector<32x1xf32>
      %29 = vector.broadcast %28 : vector<32x1xf32> to vector<32x128xf32>
      %30 = arith.mulf %25, %29 : vector<32x128xf32>
      %c0_15 = arith.constant 0 : index
      %c0_16 = arith.constant 0 : index
      %31 = vector.load %arg3[%c0_15, %c0_16] : memref<1x128xf32, #tpu.memory_space<vmem>>, vector<1x128xf32>
      %32 = vector.broadcast %31 : vector<1x128xf32> to vector<32x128xf32>
      %33 = arith.mulf %30, %32 : vector<32x128xf32>
      %c0_17 = arith.constant 0 : index
      %c0_18 = arith.constant 0 : index
      %34 = vector.load %arg4[%c0_17, %c0_18] : memref<1x128xf32, #tpu.memory_space<vmem>>, vector<1x128xf32>
      %35 = vector.broadcast %34 : vector<1x128xf32> to vector<32x128xf32>
      %36 = arith.addf %33, %35 : vector<32x128xf32>
      %37 = arith.truncf %36 : vector<32x128xf32> to vector<32x128xbf16>
      %c0_19 = arith.constant 0 : index
      %c0_20 = arith.constant 0 : index
      %38 = vector.load %arg8[%c0_19, %c0_20] : memref<32x128xbf16, #tpu.memory_space<vmem>>, vector<32x128xbf16>
      tpu.vector_store %arg8[%c0_19, %c0_20], %37 {strides = array<i32>} : memref<32x128xbf16, #tpu.memory_space<vmem>>, vector<32x128xbf16>,
    } else {
    }
    %c0 = arith.constant 0 : index
    %c0_1 = arith.constant 0 : index
    %3 = vector.load %arg8[%c0, %c0_1] : memref<32x128xbf16, #tpu.memory_space<vmem>>, vector<32x128xbf16>
    %c0_2 = arith.constant 0 : index
    %c0_3 = arith.constant 0 : index
    %4 = vector.load %arg5[%c0_2, %c0_3] : memref<128x128xbf16, #tpu.memory_space<vmem>>, vector<128x128xbf16>
    %cst = arith.constant dense<0.000000e+00> : vector<32x128xf32>
    %5 = tpu.matmul %3, %4, %cst {dimension_numbers = #tpu.dot_dimension_numbers<[1], [0], [0], [1], [0, 0, 1, 1], [], []>} : vector<32x128xbf16>, vector<128x128xbf16>, vector<32x128xf32> -> vector<32x128xf32>
    %c0_4 = arith.constant 0 : index
    %c0_5 = arith.constant 0 : index
    %6 = vector.load %arg6[%c0_4, %c0_5] : memref<1x128xf32, #tpu.memory_space<vmem>>, vector<1x128xf32>
    %7 = vector.broadcast %6 : vector<1x128xf32> to vector<32x128xf32>
    %8 = arith.addf %5, %7 : vector<32x128xf32>
    %9 = arith.truncf %8 : vector<32x128xf32> to vector<32x128xbf16>
    %c0_6 = arith.constant 0 : index
    %c0_7 = arith.constant 0 : index
    %10 = vector.load %arg7[%c0_6, %c0_7] : memref<32x128xbf16, #tpu.memory_space<vmem>>, vector<32x128xbf16>
    tpu.vector_store %arg7[%c0_6, %c0_7], %9 {strides = array<i32>} : memref<32x128xbf16, #tpu.memory_space<vmem>>, vector<32x128xbf16>,
    return
  }
  func.func @transform_0(%arg0: i32, %arg1: i32) -> (i32, i32) {
    %c0_i32 = arith.constant 0 : i32
    %c0_i32_0 = arith.constant 0 : i32
    return %arg0, %c0_i32 : i32, i32
  }
  func.func @transform_1(%arg0: i32, %arg1: i32) -> (i32, i32) {
    %c0_i32 = arith.constant 0 : i32
    %c0_i32_0 = arith.constant 0 : i32
    %c0_i32_1 = arith.constant 0 : i32
    return %c0_i32, %c0_i32_0 : i32, i32
  }
  func.func @transform_2(%arg0: i32, %arg1: i32) -> (i32, i32) {
    %c0_i32 = arith.constant 0 : i32
    %c0_i32_0 = arith.constant 0 : i32
    %c0_i32_1 = arith.constant 0 : i32
    return %c0_i32, %c0_i32_0 : i32, i32
  }
  func.func @transform_3(%arg0: i32, %arg1: i32) -> (i32, i32) {
    %c0_i32 = arith.constant 0 : i32
    %c0_i32_0 = arith.constant 0 : i32
    return %c0_i32, %arg1 : i32, i32
  }
  func.func @transform_4(%arg0: i32, %arg1: i32) -> (i32, i32) {
    %c0_i32 = arith.constant 0 : i32
    %c0_i32_0 = arith.constant 0 : i32
    return %c0_i32, %arg1 : i32, i32
  }
  func.func @transform_5(%arg0: i32, %arg1: i32) -> (i32, i32) {
    %c0_i32 = arith.constant 0 : i32
    return %arg0, %arg1 : i32, i32
  }
}

module attributes {stable_mosaic.version = 11 : i64} {
  func.func @_attn_kernel(%arg0: i32, %arg1: i32, %arg2: memref<1x20x384xbf16, #tpu.memory_space<vmem>>, %arg3: memref<1x20x128xbf16, #tpu.memory_space<vmem>>) attributes {dimension_semantics = [#tpu.dimension_semantics<parallel>, #tpu.dimension_semantics<parallel>], iteration_bounds = array<i64: 2, 1>, scalar_prefetch = 0 : i64, scratch_operands = 0 : i64, tpu.core_type = #tpu.core_type<tc>, window_params = [{transform_indices = @transform_0, window_bounds = array<i64: 1, 20, 384>}, {transform_indices = @transform_1, window_bounds = array<i64: 1, 20, 128>}]} {
    %c0 = arith.constant 0 : index
    %c0_0 = arith.constant 0 : index
    %c0_1 = arith.constant 0 : index
    %0 = vector.load %arg2[%c0, %c0_0, %c0_1] : memref<1x20x384xbf16, #tpu.memory_space<vmem>>, vector<1x20x64xbf16>
    %1 = vector.shape_cast %0 : vector<1x20x64xbf16> to vector<20x64xbf16>
    %c0_2 = arith.constant 0 : index
    %c0_3 = arith.constant 0 : index
    %c128 = arith.constant 128 : index
    %2 = vector.load %arg2[%c0_2, %c0_3, %c128] : memref<1x20x384xbf16, #tpu.memory_space<vmem>>, vector<1x20x64xbf16>
    %3 = vector.shape_cast %2 : vector<1x20x64xbf16> to vector<20x64xbf16>
    %c0_4 = arith.constant 0 : index
    %c0_5 = arith.constant 0 : index
    %c256 = arith.constant 256 : index
    %4 = vector.load %arg2[%c0_4, %c0_5, %c256] : memref<1x20x384xbf16, #tpu.memory_space<vmem>>, vector<1x20x64xbf16>
    %5 = vector.shape_cast %4 : vector<1x20x64xbf16> to vector<20x64xbf16>
    %cst = arith.constant dense<0.000000e+00> : vector<20x20xf32>
    %6 = tpu.matmul %1, %3, %cst {dimension_numbers = #tpu.dot_dimension_numbers<[1], [1], [0], [0], [0, 0, 1, 0], [], []>} : vector<20x64xbf16>, vector<20x64xbf16>, vector<20x20xf32> -> vector<20x20xf32>
    %cst_6 = arith.constant 1.250000e-01 : f32
    %7 = vector.broadcast %cst_6 : f32 to vector<20x20xf32>
    %8 = arith.mulf %6, %7 : vector<20x20xf32>
    %cst_7 = arith.constant dense<0xFF800000> : vector<20xf32>
    %9 = vector.multi_reduction <maximumf>, %8, %cst_7 [1] : vector<20x20xf32> to vector<20xf32>
    %10 = vector.shape_cast %9 : vector<20xf32> to vector<20x1xf32>
    %11 = vector.broadcast %10 : vector<20x1xf32> to vector<20x20xf32>
    %12 = arith.subf %8, %11 : vector<20x20xf32>
    %13 = math.exp %12 : vector<20x20xf32>
    %cst_8 = arith.constant dense<0.000000e+00> : vector<20xf32>
    %14 = vector.multi_reduction <add>, %13, %cst_8 [1] : vector<20x20xf32> to vector<20xf32>
    %15 = vector.shape_cast %14 : vector<20xf32> to vector<20x1xf32>
    %16 = vector.broadcast %15 : vector<20x1xf32> to vector<20x20xf32>
    %17 = arith.divf %13, %16 : vector<20x20xf32>
    %18 = arith.truncf %17 : vector<20x20xf32> to vector<20x20xbf16>
    %cst_9 = arith.constant dense<0.000000e+00> : vector<20x64xf32>
    %19 = tpu.matmul %18, %5, %cst_9 {dimension_numbers = #tpu.dot_dimension_numbers<[1], [0], [0], [1], [0, 0, 1, 1], [], []>} : vector<20x20xbf16>, vector<20x64xbf16>, vector<20x64xf32> -> vector<20x64xf32>
    %20 = arith.truncf %19 : vector<20x64xf32> to vector<20x64xbf16>
    %c0_10 = arith.constant 0 : index
    %c0_11 = arith.constant 0 : index
    %c0_12 = arith.constant 0 : index
    %21 = vector.load %arg3[%c0_10, %c0_11, %c0_12] : memref<1x20x128xbf16, #tpu.memory_space<vmem>>, vector<1x20x64xbf16>
    %22 = vector.shape_cast %21 : vector<1x20x64xbf16> to vector<20x64xbf16>
    %23 = vector.shape_cast %20 : vector<20x64xbf16> to vector<1x20x64xbf16>
    tpu.vector_store %arg3[%c0_10, %c0_11, %c0_12], %23 {strides = array<i32>} : memref<1x20x128xbf16, #tpu.memory_space<vmem>>, vector<1x20x64xbf16>,
    %c0_13 = arith.constant 0 : index
    %c0_14 = arith.constant 0 : index
    %c64 = arith.constant 64 : index
    %24 = vector.load %arg2[%c0_13, %c0_14, %c64] : memref<1x20x384xbf16, #tpu.memory_space<vmem>>, vector<1x20x64xbf16>
    %25 = vector.shape_cast %24 : vector<1x20x64xbf16> to vector<20x64xbf16>
    %c0_15 = arith.constant 0 : index
    %c0_16 = arith.constant 0 : index
    %c192 = arith.constant 192 : index
    %26 = vector.load %arg2[%c0_15, %c0_16, %c192] : memref<1x20x384xbf16, #tpu.memory_space<vmem>>, vector<1x20x64xbf16>
    %27 = vector.shape_cast %26 : vector<1x20x64xbf16> to vector<20x64xbf16>
    %c0_17 = arith.constant 0 : index
    %c0_18 = arith.constant 0 : index
    %c320 = arith.constant 320 : index
    %28 = vector.load %arg2[%c0_17, %c0_18, %c320] : memref<1x20x384xbf16, #tpu.memory_space<vmem>>, vector<1x20x64xbf16>
    %29 = vector.shape_cast %28 : vector<1x20x64xbf16> to vector<20x64xbf16>
    %cst_19 = arith.constant dense<0.000000e+00> : vector<20x20xf32>
    %30 = tpu.matmul %25, %27, %cst_19 {dimension_numbers = #tpu.dot_dimension_numbers<[1], [1], [0], [0], [0, 0, 1, 0], [], []>} : vector<20x64xbf16>, vector<20x64xbf16>, vector<20x20xf32> -> vector<20x20xf32>
    %cst_20 = arith.constant 1.250000e-01 : f32
    %31 = vector.broadcast %cst_20 : f32 to vector<20x20xf32>
    %32 = arith.mulf %30, %31 : vector<20x20xf32>
    %cst_21 = arith.constant dense<0xFF800000> : vector<20xf32>
    %33 = vector.multi_reduction <maximumf>, %32, %cst_21 [1] : vector<20x20xf32> to vector<20xf32>
    %34 = vector.shape_cast %33 : vector<20xf32> to vector<20x1xf32>
    %35 = vector.broadcast %34 : vector<20x1xf32> to vector<20x20xf32>
    %36 = arith.subf %32, %35 : vector<20x20xf32>
    %37 = math.exp %36 : vector<20x20xf32>
    %cst_22 = arith.constant dense<0.000000e+00> : vector<20xf32>
    %38 = vector.multi_reduction <add>, %37, %cst_22 [1] : vector<20x20xf32> to vector<20xf32>
    %39 = vector.shape_cast %38 : vector<20xf32> to vector<20x1xf32>
    %40 = vector.broadcast %39 : vector<20x1xf32> to vector<20x20xf32>
    %41 = arith.divf %37, %40 : vector<20x20xf32>
    %42 = arith.truncf %41 : vector<20x20xf32> to vector<20x20xbf16>
    %cst_23 = arith.constant dense<0.000000e+00> : vector<20x64xf32>
    %43 = tpu.matmul %42, %29, %cst_23 {dimension_numbers = #tpu.dot_dimension_numbers<[1], [0], [0], [1], [0, 0, 1, 1], [], []>} : vector<20x20xbf16>, vector<20x64xbf16>, vector<20x64xf32> -> vector<20x64xf32>
    %44 = arith.truncf %43 : vector<20x64xf32> to vector<20x64xbf16>
    %c0_24 = arith.constant 0 : index
    %c0_25 = arith.constant 0 : index
    %c64_26 = arith.constant 64 : index
    %45 = vector.load %arg3[%c0_24, %c0_25, %c64_26] : memref<1x20x128xbf16, #tpu.memory_space<vmem>>, vector<1x20x64xbf16>
    %46 = vector.shape_cast %45 : vector<1x20x64xbf16> to vector<20x64xbf16>
    %47 = vector.shape_cast %44 : vector<20x64xbf16> to vector<1x20x64xbf16>
    tpu.vector_store %arg3[%c0_24, %c0_25, %c64_26], %47 {strides = array<i32>} : memref<1x20x128xbf16, #tpu.memory_space<vmem>>, vector<1x20x64xbf16>,
    return
  }
  func.func @transform_0(%arg0: i32, %arg1: i32) -> (i32, i32, i32) {
    %c0_i32 = arith.constant 0 : i32
    %c0_i32_0 = arith.constant 0 : i32
    return %arg0, %c0_i32, %arg1 : i32, i32, i32
  }
  func.func @transform_1(%arg0: i32, %arg1: i32) -> (i32, i32, i32) {
    %c0_i32 = arith.constant 0 : i32
    %c0_i32_0 = arith.constant 0 : i32
    return %arg0, %c0_i32, %arg1 : i32, i32, i32
  }
}

module attributes {stable_mosaic.version = 11 : i64} {
  func.func @_matmul_kernel(%arg0: i32, %arg1: i32, %arg2: i32, %arg3: memref<40x512xbf16, #tpu.memory_space<vmem>>, %arg4: memref<512x128xbf16, #tpu.memory_space<vmem>>, %arg5: memref<1x128xf32, #tpu.memory_space<vmem>>, %arg6: memref<40x128xbf16, #tpu.memory_space<vmem>>, %arg7: memref<40x128xbf16, #tpu.memory_space<vmem>>, %arg8: memref<40x128xf32, #tpu.memory_space<vmem>>) attributes {dimension_semantics = [#tpu.dimension_semantics<parallel>, #tpu.dimension_semantics<parallel>, #tpu.dimension_semantics<arbitrary>], iteration_bounds = array<i64: 1, 1, 1>, scalar_prefetch = 0 : i64, scratch_operands = 1 : i64, tpu.core_type = #tpu.core_type<tc>, window_params = [{transform_indices = @transform_0, window_bounds = array<i64: 40, 512>}, {transform_indices = @transform_1, window_bounds = array<i64: 512, 128>}, {transform_indices = @transform_2, window_bounds = array<i64: 1, 128>}, {transform_indices = @transform_3, window_bounds = array<i64: 40, 128>}, {transform_indices = @transform_4, window_bounds = array<i64: 40, 128>}]} {
    %c0_i32 = arith.constant 0 : i32
    %0 = arith.cmpi eq, %arg2, %c0_i32 : i32
    %1 = arith.extui %0 : i1 to i32
    %c0_i32_0 = arith.constant 0 : i32
    %2 = arith.cmpi ne, %1, %c0_i32_0 : i32
    scf.if %2 {
      %cst_10 = arith.constant 0.000000e+00 : f32
      %12 = vector.broadcast %cst_10 : f32 to vector<40x128xf32>
      %c0_11 = arith.constant 0 : index
      %c0_12 = arith.constant 0 : index
      %13 = vector.load %arg8[%c0_11, %c0_12] : memref<40x128xf32, #tpu.memory_space<vmem>>, vector<40x128xf32>
      tpu.vector_store %arg8[%c0_11, %c0_12], %12 {strides = array<i32>} : memref<40x128xf32, #tpu.memory_space<vmem>>, vector<40x128xf32>,
    } else {
    }
    %c0 = arith.constant 0 : index
    %c0_1 = arith.constant 0 : index
    %3 = vector.load %arg8[%c0, %c0_1] : memref<40x128xf32, #tpu.memory_space<vmem>>, vector<40x128xf32>
    %c0_2 = arith.constant 0 : index
    %c0_3 = arith.constant 0 : index
    %4 = vector.load %arg3[%c0_2, %c0_3] : memref<40x512xbf16, #tpu.memory_space<vmem>>, vector<40x512xbf16>
    %c0_4 = arith.constant 0 : index
    %c0_5 = arith.constant 0 : index
    %5 = vector.load %arg4[%c0_4, %c0_5] : memref<512x128xbf16, #tpu.memory_space<vmem>>, vector<512x128xbf16>
    %cst = arith.constant dense<0.000000e+00> : vector<40x128xf32>
    %6 = tpu.matmul %4, %5, %cst {dimension_numbers = #tpu.dot_dimension_numbers<[1], [0], [0], [1], [0, 0, 1, 1], [], []>} : vector<40x512xbf16>, vector<512x128xbf16>, vector<40x128xf32> -> vector<40x128xf32>
    %7 = arith.addf %3, %6 : vector<40x128xf32>
    %c0_6 = arith.constant 0 : index
    %c0_7 = arith.constant 0 : index
    %8 = vector.load %arg8[%c0_6, %c0_7] : memref<40x128xf32, #tpu.memory_space<vmem>>, vector<40x128xf32>
    tpu.vector_store %arg8[%c0_6, %c0_7], %7 {strides = array<i32>} : memref<40x128xf32, #tpu.memory_space<vmem>>, vector<40x128xf32>,
    %c0_i32_8 = arith.constant 0 : i32
    %9 = arith.cmpi eq, %arg2, %c0_i32_8 : i32
    %10 = arith.extui %9 : i1 to i32
    %c0_i32_9 = arith.constant 0 : i32
    %11 = arith.cmpi ne, %10, %c0_i32_9 : i32
    scf.if %11 {
      %c0_10 = arith.constant 0 : index
      %c0_11 = arith.constant 0 : index
      %12 = vector.load %arg8[%c0_10, %c0_11] : memref<40x128xf32, #tpu.memory_space<vmem>>, vector<40x128xf32>
      %c0_12 = arith.constant 0 : index
      %c0_13 = arith.constant 0 : index
      %13 = vector.load %arg5[%c0_12, %c0_13] : memref<1x128xf32, #tpu.memory_space<vmem>>, vector<1x128xf32>
      %14 = vector.broadcast %13 : vector<1x128xf32> to vector<40x128xf32>
      %15 = arith.addf %12, %14 : vector<40x128xf32>
      %c0_14 = arith.constant 0 : index
      %c0_15 = arith.constant 0 : index
      %16 = vector.load %arg6[%c0_14, %c0_15] : memref<40x128xbf16, #tpu.memory_space<vmem>>, vector<40x128xbf16>
      %17 = arith.extf %16 : vector<40x128xbf16> to vector<40x128xf32>
      %18 = arith.addf %15, %17 : vector<40x128xf32>
      %19 = arith.truncf %18 : vector<40x128xf32> to vector<40x128xbf16>
      %c0_16 = arith.constant 0 : index
      %c0_17 = arith.constant 0 : index
      %20 = vector.load %arg7[%c0_16, %c0_17] : memref<40x128xbf16, #tpu.memory_space<vmem>>, vector<40x128xbf16>
      tpu.vector_store %arg7[%c0_16, %c0_17], %19 {strides = array<i32>} : memref<40x128xbf16, #tpu.memory_space<vmem>>, vector<40x128xbf16>,
    } else {
    }
    return
  }
  func.func @transform_0(%arg0: i32, %arg1: i32, %arg2: i32) -> (i32, i32) {
    %c0_i32 = arith.constant 0 : i32
    return %arg0, %arg2 : i32, i32
  }
  func.func @transform_1(%arg0: i32, %arg1: i32, %arg2: i32) -> (i32, i32) {
    %c0_i32 = arith.constant 0 : i32
    return %arg2, %arg1 : i32, i32
  }
  func.func @transform_2(%arg0: i32, %arg1: i32, %arg2: i32) -> (i32, i32) {
    %c0_i32 = arith.constant 0 : i32
    %c0_i32_0 = arith.constant 0 : i32
    return %c0_i32, %arg1 : i32, i32
  }
  func.func @transform_3(%arg0: i32, %arg1: i32, %arg2: i32) -> (i32, i32) {
    %c0_i32 = arith.constant 0 : i32
    return %arg0, %arg1 : i32, i32
  }
  func.func @transform_4(%arg0: i32, %arg1: i32, %arg2: i32) -> (i32, i32) {
    %c0_i32 = arith.constant 0 : i32
    return %arg0, %arg1 : i32, i32
  }
}

module attributes {stable_mosaic.version = 11 : i64} {
  func.func @_ln_matmul_kernel(%arg0: i32, %arg1: i32, %arg2: memref<8x128xbf16, #tpu.memory_space<vmem>>, %arg3: memref<1x128xf32, #tpu.memory_space<vmem>>, %arg4: memref<1x128xf32, #tpu.memory_space<vmem>>, %arg5: memref<128x128xbf16, #tpu.memory_space<vmem>>, %arg6: memref<1x128xf32, #tpu.memory_space<vmem>>, %arg7: memref<8x128xbf16, #tpu.memory_space<vmem>>, %arg8: memref<8x128xbf16, #tpu.memory_space<vmem>>) attributes {dimension_semantics = [#tpu.dimension_semantics<parallel>, #tpu.dimension_semantics<arbitrary>], iteration_bounds = array<i64: 1, 1>, scalar_prefetch = 0 : i64, scratch_operands = 1 : i64, tpu.core_type = #tpu.core_type<tc>, window_params = [{transform_indices = @transform_0, window_bounds = array<i64: 8, 128>}, {pipeline_mode = #tpu.pipeline_mode<synchronous>, transform_indices = @transform_1, window_bounds = array<i64: 1, 128>}, {pipeline_mode = #tpu.pipeline_mode<synchronous>, transform_indices = @transform_2, window_bounds = array<i64: 1, 128>}, {transform_indices = @transform_3, window_bounds = array<i64: 128, 128>}, {transform_indices = @transform_4, window_bounds = array<i64: 1, 128>}, {transform_indices = @transform_5, window_bounds = array<i64: 8, 128>}]} {
    %c0_i32 = arith.constant 0 : i32
    %0 = arith.cmpi eq, %arg1, %c0_i32 : i32
    %1 = arith.extui %0 : i1 to i32
    %c0_i32_0 = arith.constant 0 : i32
    %2 = arith.cmpi ne, %1, %c0_i32_0 : i32
    scf.if %2 {
      %c0_8 = arith.constant 0 : index
      %c0_9 = arith.constant 0 : index
      %11 = vector.load %arg2[%c0_8, %c0_9] : memref<8x128xbf16, #tpu.memory_space<vmem>>, vector<8x128xbf16>
      %12 = arith.extf %11 : vector<8x128xbf16> to vector<8x128xf32>
      %cst_10 = arith.constant dense<0.000000e+00> : vector<8xf32>
      %13 = vector.multi_reduction <add>, %12, %cst_10 [1] : vector<8x128xf32> to vector<8xf32>
      %14 = vector.shape_cast %13 : vector<8xf32> to vector<8x1xf32>
      %cst_11 = arith.constant 1.280000e+02 : f32
      %15 = vector.broadcast %cst_11 : f32 to vector<8x1xf32>
      %16 = arith.divf %14, %15 : vector<8x1xf32>
      %17 = vector.broadcast %16 : vector<8x1xf32> to vector<8x128xf32>
      %18 = arith.subf %12, %17 : vector<8x128xf32>
      %19 = arith.mulf %18, %18 : vector<8x128xf32>
      %cst_12 = arith.constant dense<0.000000e+00> : vector<8xf32>
      %20 = vector.multi_reduction <add>, %19, %cst_12 [1] : vector<8x128xf32> to vector<8xf32>
      %21 = vector.shape_cast %20 : vector<8xf32> to vector<8x1xf32>
      %cst_13 = arith.constant 1.280000e+02 : f32
      %22 = vector.broadcast %cst_13 : f32 to vector<8x1xf32>
      %23 = arith.divf %21, %22 : vector<8x1xf32>
      %24 = vector.broadcast %16 : vector<8x1xf32> to vector<8x128xf32>
      %25 = arith.subf %12, %24 : vector<8x128xf32>
      %cst_14 = arith.constant 9.99999997E-7 : f32
      %26 = vector.broadcast %cst_14 : f32 to vector<8x1xf32>
      %27 = arith.addf %23, %26 : vector<8x1xf32>
      %28 = math.rsqrt %27 : vector<8x1xf32>
      %29 = vector.broadcast %28 : vector<8x1xf32> to vector<8x128xf32>
      %30 = arith.mulf %25, %29 : vector<8x128xf32>
      %c0_15 = arith.constant 0 : index
      %c0_16 = arith.constant 0 : index
      %31 = vector.load %arg3[%c0_15, %c0_16] : memref<1x128xf32, #tpu.memory_space<vmem>>, vector<1x128xf32>
      %32 = vector.broadcast %31 : vector<1x128xf32> to vector<8x128xf32>
      %33 = arith.mulf %30, %32 : vector<8x128xf32>
      %c0_17 = arith.constant 0 : index
      %c0_18 = arith.constant 0 : index
      %34 = vector.load %arg4[%c0_17, %c0_18] : memref<1x128xf32, #tpu.memory_space<vmem>>, vector<1x128xf32>
      %35 = vector.broadcast %34 : vector<1x128xf32> to vector<8x128xf32>
      %36 = arith.addf %33, %35 : vector<8x128xf32>
      %37 = arith.truncf %36 : vector<8x128xf32> to vector<8x128xbf16>
      %c0_19 = arith.constant 0 : index
      %c0_20 = arith.constant 0 : index
      %38 = vector.load %arg8[%c0_19, %c0_20] : memref<8x128xbf16, #tpu.memory_space<vmem>>, vector<8x128xbf16>
      tpu.vector_store %arg8[%c0_19, %c0_20], %37 {strides = array<i32>} : memref<8x128xbf16, #tpu.memory_space<vmem>>, vector<8x128xbf16>,
    } else {
    }
    %c0 = arith.constant 0 : index
    %c0_1 = arith.constant 0 : index
    %3 = vector.load %arg8[%c0, %c0_1] : memref<8x128xbf16, #tpu.memory_space<vmem>>, vector<8x128xbf16>
    %c0_2 = arith.constant 0 : index
    %c0_3 = arith.constant 0 : index
    %4 = vector.load %arg5[%c0_2, %c0_3] : memref<128x128xbf16, #tpu.memory_space<vmem>>, vector<128x128xbf16>
    %cst = arith.constant dense<0.000000e+00> : vector<8x128xf32>
    %5 = tpu.matmul %3, %4, %cst {dimension_numbers = #tpu.dot_dimension_numbers<[1], [0], [0], [1], [0, 0, 1, 1], [], []>} : vector<8x128xbf16>, vector<128x128xbf16>, vector<8x128xf32> -> vector<8x128xf32>
    %c0_4 = arith.constant 0 : index
    %c0_5 = arith.constant 0 : index
    %6 = vector.load %arg6[%c0_4, %c0_5] : memref<1x128xf32, #tpu.memory_space<vmem>>, vector<1x128xf32>
    %7 = vector.broadcast %6 : vector<1x128xf32> to vector<8x128xf32>
    %8 = arith.addf %5, %7 : vector<8x128xf32>
    %9 = arith.truncf %8 : vector<8x128xf32> to vector<8x128xbf16>
    %c0_6 = arith.constant 0 : index
    %c0_7 = arith.constant 0 : index
    %10 = vector.load %arg7[%c0_6, %c0_7] : memref<8x128xbf16, #tpu.memory_space<vmem>>, vector<8x128xbf16>
    tpu.vector_store %arg7[%c0_6, %c0_7], %9 {strides = array<i32>} : memref<8x128xbf16, #tpu.memory_space<vmem>>, vector<8x128xbf16>,
    return
  }
  func.func @transform_0(%arg0: i32, %arg1: i32) -> (i32, i32) {
    %c0_i32 = arith.constant 0 : i32
    %c0_i32_0 = arith.constant 0 : i32
    return %arg0, %c0_i32 : i32, i32
  }
  func.func @transform_1(%arg0: i32, %arg1: i32) -> (i32, i32) {
    %c0_i32 = arith.constant 0 : i32
    %c0_i32_0 = arith.constant 0 : i32
    %c0_i32_1 = arith.constant 0 : i32
    return %c0_i32, %c0_i32_0 : i32, i32
  }
  func.func @transform_2(%arg0: i32, %arg1: i32) -> (i32, i32) {
    %c0_i32 = arith.constant 0 : i32
    %c0_i32_0 = arith.constant 0 : i32
    %c0_i32_1 = arith.constant 0 : i32
    return %c0_i32, %c0_i32_0 : i32, i32
  }
  func.func @transform_3(%arg0: i32, %arg1: i32) -> (i32, i32) {
    %c0_i32 = arith.constant 0 : i32
    %c0_i32_0 = arith.constant 0 : i32
    return %c0_i32, %arg1 : i32, i32
  }
  func.func @transform_4(%arg0: i32, %arg1: i32) -> (i32, i32) {
    %c0_i32 = arith.constant 0 : i32
    %c0_i32_0 = arith.constant 0 : i32
    return %c0_i32, %arg1 : i32, i32
  }
  func.func @transform_5(%arg0: i32, %arg1: i32) -> (i32, i32) {
    %c0_i32 = arith.constant 0 : i32
    return %arg0, %arg1 : i32, i32
  }
}

module attributes {stable_mosaic.version = 11 : i64} {
  func.func @_mask_kernel(%arg0: i32, %arg1: memref<1x16x128xbf16, #tpu.memory_space<vmem>>, %arg2: memref<1x4x128xbf16, #tpu.memory_space<vmem>>, %arg3: memref<4x1xf32, #tpu.memory_space<vmem>>, %arg4: memref<4x1xf32, #tpu.memory_space<vmem>>, %arg5: memref<1x4x16xf32, #tpu.memory_space<vmem>>) attributes {dimension_semantics = [#tpu.dimension_semantics<parallel>], iteration_bounds = array<i64: 2>, scalar_prefetch = 0 : i64, scratch_operands = 0 : i64, tpu.core_type = #tpu.core_type<tc>, window_params = [{transform_indices = @transform_0, window_bounds = array<i64: 1, 16, 128>}, {transform_indices = @transform_1, window_bounds = array<i64: 1, 4, 128>}, {pipeline_mode = #tpu.pipeline_mode<synchronous>, transform_indices = @transform_2, window_bounds = array<i64: 4, 1>}, {pipeline_mode = #tpu.pipeline_mode<synchronous>, transform_indices = @transform_3, window_bounds = array<i64: 4, 1>}, {transform_indices = @transform_4, window_bounds = array<i64: 1, 4, 16>}]} {
    %c0 = arith.constant 0 : index
    %c0_0 = arith.constant 0 : index
    %c0_1 = arith.constant 0 : index
    %0 = vector.load %arg1[%c0, %c0_0, %c0_1] : memref<1x16x128xbf16, #tpu.memory_space<vmem>>, vector<1x16x128xbf16>
    %1 = vector.shape_cast %0 : vector<1x16x128xbf16> to vector<16x128xbf16>
    %2 = arith.extf %1 : vector<16x128xbf16> to vector<16x128xf32>
    %c0_2 = arith.constant 0 : index
    %c0_3 = arith.constant 0 : index
    %c0_4 = arith.constant 0 : index
    %3 = vector.load %arg2[%c0_2, %c0_3, %c0_4] : memref<1x4x128xbf16, #tpu.memory_space<vmem>>, vector<1x4x128xbf16>
    %4 = vector.shape_cast %3 : vector<1x4x128xbf16> to vector<4x128xbf16>
    %5 = arith.extf %4 : vector<4x128xbf16> to vector<4x128xf32>
    %6 = arith.mulf %2, %2 : vector<16x128xf32>
    %cst = arith.constant dense<0.000000e+00> : vector<16xf32>
    %7 = vector.multi_reduction <add>, %6, %cst [1] : vector<16x128xf32> to vector<16xf32>
    %8 = vector.shape_cast %7 : vector<16xf32> to vector<16x1xf32>
    %cst_5 = arith.constant 9.99999996E-13 : f32
    %9 = vector.broadcast %cst_5 : f32 to vector<16x1xf32>
    %10 = arith.addf %8, %9 : vector<16x1xf32>
    %11 = math.rsqrt %10 : vector<16x1xf32>
    %12 = vector.broadcast %11 : vector<16x1xf32> to vector<16x128xf32>
    %13 = arith.mulf %2, %12 : vector<16x128xf32>
    %14 = arith.mulf %5, %5 : vector<4x128xf32>
    %cst_6 = arith.constant dense<0.000000e+00> : vector<4xf32>
    %15 = vector.multi_reduction <add>, %14, %cst_6 [1] : vector<4x128xf32> to vector<4xf32>
    %16 = vector.shape_cast %15 : vector<4xf32> to vector<4x1xf32>
    %cst_7 = arith.constant 9.99999996E-13 : f32
    %17 = vector.broadcast %cst_7 : f32 to vector<4x1xf32>
    %18 = arith.addf %16, %17 : vector<4x1xf32>
    %19 = math.rsqrt %18 : vector<4x1xf32>
    %20 = vector.broadcast %19 : vector<4x1xf32> to vector<4x128xf32>
    %21 = arith.mulf %5, %20 : vector<4x128xf32>
    %22 = arith.truncf %21 : vector<4x128xf32> to vector<4x128xbf16>
    %23 = arith.truncf %13 : vector<16x128xf32> to vector<16x128xbf16>
    %cst_8 = arith.constant dense<0.000000e+00> : vector<4x16xf32>
    %24 = tpu.matmul %22, %23, %cst_8 {dimension_numbers = #tpu.dot_dimension_numbers<[1], [1], [0], [0], [0, 0, 1, 0], [], []>} : vector<4x128xbf16>, vector<16x128xbf16>, vector<4x16xf32> -> vector<4x16xf32>
    %cst_9 = arith.constant dense<0.000000e+00> : vector<16xf32>
    %25 = vector.multi_reduction <add>, %24, %cst_9 [0] : vector<4x16xf32> to vector<16xf32>
    %26 = vector.shape_cast %25 : vector<16xf32> to vector<1x16xf32>
    %cst_10 = arith.constant 4.000000e+00 : f32
    %27 = vector.broadcast %cst_10 : f32 to vector<1x16xf32>
    %28 = arith.divf %26, %27 : vector<1x16xf32>
    %29 = vector.broadcast %28 : vector<1x16xf32> to vector<4x16xf32>
    %30 = arith.subf %24, %29 : vector<4x16xf32>
    %31 = arith.mulf %30, %30 : vector<4x16xf32>
    %cst_11 = arith.constant dense<0.000000e+00> : vector<16xf32>
    %32 = vector.multi_reduction <add>, %31, %cst_11 [0] : vector<4x16xf32> to vector<16xf32>
    %33 = vector.shape_cast %32 : vector<16xf32> to vector<1x16xf32>
    %cst_12 = arith.constant 4.000000e+00 : f32
    %34 = vector.broadcast %cst_12 : f32 to vector<1x16xf32>
    %35 = arith.divf %33, %34 : vector<1x16xf32>
    %36 = vector.broadcast %28 : vector<1x16xf32> to vector<4x16xf32>
    %37 = arith.subf %24, %36 : vector<4x16xf32>
    %cst_13 = arith.constant 9.99999997E-7 : f32
    %38 = vector.broadcast %cst_13 : f32 to vector<1x16xf32>
    %39 = arith.addf %35, %38 : vector<1x16xf32>
    %40 = math.rsqrt %39 : vector<1x16xf32>
    %41 = vector.broadcast %40 : vector<1x16xf32> to vector<4x16xf32>
    %42 = arith.mulf %37, %41 : vector<4x16xf32>
    %c0_14 = arith.constant 0 : index
    %c0_15 = arith.constant 0 : index
    %43 = vector.load %arg3[%c0_14, %c0_15] : memref<4x1xf32, #tpu.memory_space<vmem>>, vector<4x1xf32>
    %44 = vector.broadcast %43 : vector<4x1xf32> to vector<4x16xf32>
    %45 = arith.mulf %42, %44 : vector<4x16xf32>
    %c0_16 = arith.constant 0 : index
    %c0_17 = arith.constant 0 : index
    %46 = vector.load %arg4[%c0_16, %c0_17] : memref<4x1xf32, #tpu.memory_space<vmem>>, vector<4x1xf32>
    %47 = vector.broadcast %46 : vector<4x1xf32> to vector<4x16xf32>
    %48 = arith.addf %45, %47 : vector<4x16xf32>
    %c0_18 = arith.constant 0 : index
    %c0_19 = arith.constant 0 : index
    %c0_20 = arith.constant 0 : index
    %49 = vector.load %arg5[%c0_18, %c0_19, %c0_20] : memref<1x4x16xf32, #tpu.memory_space<vmem>>, vector<1x4x16xf32>
    %50 = vector.shape_cast %49 : vector<1x4x16xf32> to vector<4x16xf32>
    %51 = vector.shape_cast %48 : vector<4x16xf32> to vector<1x4x16xf32>
    tpu.vector_store %arg5[%c0_18, %c0_19, %c0_20], %51 {strides = array<i32>} : memref<1x4x16xf32, #tpu.memory_space<vmem>>, vector<1x4x16xf32>,
    return
  }
  func.func @transform_0(%arg0: i32) -> (i32, i32, i32) {
    %c0_i32 = arith.constant 0 : i32
    %c0_i32_0 = arith.constant 0 : i32
    %c0_i32_1 = arith.constant 0 : i32
    return %arg0, %c0_i32, %c0_i32_0 : i32, i32, i32
  }
  func.func @transform_1(%arg0: i32) -> (i32, i32, i32) {
    %c0_i32 = arith.constant 0 : i32
    %c0_i32_0 = arith.constant 0 : i32
    %c0_i32_1 = arith.constant 0 : i32
    return %arg0, %c0_i32, %c0_i32_0 : i32, i32, i32
  }
  func.func @transform_2(%arg0: i32) -> (i32, i32) {
    %c0_i32 = arith.constant 0 : i32
    %c0_i32_0 = arith.constant 0 : i32
    %c0_i32_1 = arith.constant 0 : i32
    return %c0_i32, %c0_i32_0 : i32, i32
  }
  func.func @transform_3(%arg0: i32) -> (i32, i32) {
    %c0_i32 = arith.constant 0 : i32
    %c0_i32_0 = arith.constant 0 : i32
    %c0_i32_1 = arith.constant 0 : i32
    return %c0_i32, %c0_i32_0 : i32, i32
  }
  func.func @transform_4(%arg0: i32) -> (i32, i32, i32) {
    %c0_i32 = arith.constant 0 : i32
    %c0_i32_0 = arith.constant 0 : i32
    %c0_i32_1 = arith.constant 0 : i32
    return %arg0, %c0_i32, %c0_i32_0 : i32, i32, i32
  }
}

</mosaic_0001>

<bundles_post_ra>
// kernel: segmenter_forward.20
= control target key start
LH: loop header
LB: loop body
LE: loop exit
PB: predicated region body
PF: predicated region fallthrough
CT: control target
= control target key end

     0   :  { %v312_v0 = vmov 0   ;;  %vm135_vm0 = vcmask 523264   ;;  %s426_s1 = inlined_call_operand.vmem [shape: bf16[192,128], index: 1, kind: input, shape index: {}]   ;;  %s427_s0 = inlined_call_operand.vmem [shape: f32[32,192], index: 0, kind: input, shape index: {}]   ;;  %s428_s2 = inlined_call_operand.vmem [shape: f32[1,128], index: 2, kind: input, shape index: {}]   ;;  %s429_s3 = inlined_call_operand.vmem [shape: bf16[32,128], index: 3, kind: output, shape index: {}]  }
   0x1   :  { %142 = vmatprep.subr.bf16.mxu0 %v312_v0  ;;  %275 = vmatprep.subr.bf16.mxu1 %v312_v0  ;;  %v300_v1 = vld [vmem:[%s426_s1 + $0x38] sm:$0xff]   ;;  %v301_v2 = vld [vmem:[%s426_s1 + $0x30] sm:$0xff]   ;;  %v302_v3 = vld [vmem:[%s426_s1 + $0x28] sm:$0xff]  }
   0x2   :  { %143 = vmatpush1.bf16.msra.mxu0 %v300_v1  ;;  %287 = vmatpush1.bf16.msra.mxu1 %v300_v1  ;;  %v303_v4 = vld [vmem:[%s426_s1 + $0x20] sm:$0xff]   ;;  %v28_v5 = vld [vmem:[%s427_s0 + $0x8] sm:$0xff]  ;;  %v30_v6 = vld [vmem:[%s427_s0 + $0x18] sm:$0xff] }
   0x3   :  { %144 = vmatprep.subr.bf16.mxu0 %v312_v0  ;;  %276 = vmatprep.subr.bf16.mxu1 %v312_v0  ;;  %v32_v7 = vld [vmem:[%s427_s0 + $0x28] sm:$0xff]  ;;  %v36_v8 = vpack.c.bf16 %v30_v6, %v28_v5  ;;  %v34_v9 = vld [vmem:[%s427_s0 + $0x38] sm:$0xff]  ;;  %v305_v12 = vld [vmem:[%s426_s1 + $0x10] sm:$0xff]  }
   0x4   :  { %v304_v10 = vld [vmem:[%s426_s1 + $0x18] sm:$0xff]   ;;  %v38_v11 = vpack.c.bf16 %v34_v9, %v32_v7  ;;  %v306_v13 = vld [vmem:[%s426_s1 + $0x8] sm:$0xff]   ;;  %v307_v14 = vld [vmem:[%s426_s1] sm:$0xff]  }
   0x5   :  { %253 = vmatprep.mubr.msk.bf16.mxu0 %vm135_vm0, %v36_v8  ;;  %v308_v15 = vld [vmem:[%s426_s1 + $0x58] sm:$0xff]   ;;  %v309_v16 = vld [vmem:[%s426_s1 + $0x50] sm:$0xff]   ;;  %v310_v17 = vld [vmem:[%s426_s1 + $0x48] sm:$0xff]  }
   0x6   :  { %145 = vmatpush1.bf16.msra.mxu0 %v301_v2  ;;  %288 = vmatpush1.bf16.msra.mxu1 %v301_v2  ;;  %v311_v18 = vld [vmem:[%s426_s1 + $0x40] sm:$0xff]   ;;  %v29_v20 = vld [vmem:[%s427_s0 + $0x10] sm:$0xff] }
   0x7   :  { %146 = vmatprep.subr.bf16.mxu0 %v312_v0  ;;  %277 = vmatprep.subr.bf16.mxu1 %v312_v0  ;;  %v27_v19 = vld [vmem:[%s427_s0] sm:$0xff]  ;;  %v33_v22 = vld [vmem:[%s427_s0 + $0x30] sm:$0xff] }
   0x8   :  { %254 = vmatprep.mubr.msk.bf16.mxu1 %vm135_vm0, %v38_v11  ;;  %v31_v21 = vld [vmem:[%s427_s0 + $0x20] sm:$0xff]  ;;  %v35_v23 = vpack.c.bf16 %v29_v20, %v27_v19 }
   0x9   :  { %v37_v24 = vpack.c.bf16 %v33_v22, %v31_v21  ;;  %v255_v27 = vld [vmem:[%s428_s2] ss:$0 sm:$0xff] }
   0xa   :  { %147 = vmatpush1.bf16.msra.mxu0 %v302_v3  ;;  %289 = vmatpush1.bf16.msra.mxu1 %v302_v3 }
   0xb   :  { %148 = vmatprep.subr.bf16.mxu0 %v312_v0  ;;  %278 = vmatprep.subr.bf16.mxu1 %v312_v0 }
   0xe   :  { %149 = vmatpush1.bf16.msra.mxu0 %v303_v4  ;;  %290 = vmatpush1.bf16.msra.mxu1 %v303_v4 }
   0xf   :  { %150 = vmatprep.subr.bf16.mxu0 %v312_v0  ;;  %279 = vmatprep.subr.bf16.mxu1 %v312_v0 }
  0x12   :  { %151 = vmatpush1.bf16.msra.mxu0 %v304_v10  ;;  %291 = vmatpush1.bf16.msra.mxu1 %v304_v10 }
  0x13   :  { %152 = vmatprep.subr.bf16.mxu0 %v312_v0  ;;  %280 = vmatprep.subr.bf16.mxu1 %v312_v0 }
  0x16   :  { %153 = vmatpush1.bf16.msra.mxu0 %v305_v12  ;;  %292 = vmatpush1.bf16.msra.mxu1 %v305_v12 }
  0x17   :  { %154 = vmatprep.subr.bf16.mxu0 %v312_v0  ;;  %281 = vmatprep.subr.bf16.mxu1 %v312_v0 }
  0x1a   :  { %155 = vmatpush1.bf16.msra.mxu0 %v306_v13  ;;  %293 = vmatpush1.bf16.msra.mxu1 %v306_v13 }
  0x1b   :  { %156 = vmatprep.subr.bf16.mxu0 %v312_v0  ;;  %282 = vmatprep.subr.bf16.mxu1 %v312_v0 }
  0x1e   :  { %157 = vmatpush1.bf16.msra.mxu0 %v307_v14  ;;  %294 = vmatpush1.bf16.msra.mxu1 %v307_v14 }
  0x1f   :  { %166 = vmatprep.subr.bf16.mxu0 %v312_v0  ;;  %283 = vmatprep.subr.bf16.mxu1 %v312_v0 }
  0x22   :  { %167 = vmatpush2.bf16.msra.mxu0 %v308_v15  ;;  %295 = vmatpush2.bf16.msra.mxu1 %v308_v15 }
  0x23   :  { %168 = vmatprep.subr.bf16.mxu0 %v312_v0  ;;  %284 = vmatprep.subr.bf16.mxu1 %v312_v0 }
  0x26   :  { %169 = vmatpush2.bf16.msra.mxu0 %v309_v16  ;;  %296 = vmatpush2.bf16.msra.mxu1 %v309_v16 }
  0x27   :  { %170 = vmatprep.subr.bf16.mxu0 %v312_v0  ;;  %285 = vmatprep.subr.bf16.mxu1 %v312_v0 }
  0x2a   :  { %171 = vmatpush2.bf16.msra.mxu0 %v310_v17  ;;  %297 = vmatpush2.bf16.msra.mxu1 %v310_v17 }
  0x2b   :  { %172 = vmatprep.subr.bf16.mxu0 %v312_v0  ;;  %286 = vmatprep.subr.bf16.mxu1 %v312_v0 }
  0x2e   :  { %173 = vmatpush2.bf16.msra.mxu0 %v311_v18  ;;  %298 = vmatpush2.bf16.msra.mxu1 %v311_v18 }
  0x31   :  { %175 = vmatmul.mubr.bf16.vlgmr.msra.gmra.mxu0 %v35_v23  ;;  %183 = vmatmul.mubr.bf16.vlgmr.msra.gmra.mxu1 %v37_v24 }
  0xf1   :  { %v176_v25 = vpop.f32.mrf.mxu0  ;;  %v184_v26 = vpop.f32.mrf.mxu1 }
  0xf2   :  { %v213_v32 = vadd.f32 %v255_v27, %v176_v25  ;;  %v215_v33 = vadd.f32 %v255_v27, %v184_v26 }
  0xf3   :  { %v178_v28 = vpop.f32.mrf.mxu0  ;;  %v186_v29 = vpop.f32.mrf.mxu1 }
  0xf5   :  { %v179_v30 = vpop.f32.mrf.mxu0  ;;  %v187_v31 = vpop.f32.mrf.mxu1 }
  0xf6   :  { %v214_v34 = vadd.f32 %v255_v27, %v179_v30  ;;  %v216_v35 = vadd.f32 %v255_v27, %v187_v31 }
  0xf7   :  { %v181_v36 = vpop.f32.mrf.mxu0  ;;  %v189_v37 = vpop.f32.mrf.mxu1 }
  0xf8   :  { %v267_v38 = vpack.c.bf16 %v214_v34, %v213_v32  ;;  %v272_v39 = vpack.c.bf16 %v216_v35, %v215_v33 }
  0xfa   :  { %268 = vst [vmem:[%s429_s3] sm:$0xff] %v267_v38   ;;  %274 = vst [vmem:[%s429_s3 + $0x8] sm:$0xff] %v272_v39  }

// kernel: segmenter_forward.23
= control target key start
LH: loop header
LB: loop body
LE: loop exit
PB: predicated region body
PF: predicated region fallthrough
CT: control target
= control target key end

     0   :  { %v358_v0 = vmov 0.0   ;;  %vm359_vm0 = vmmov 0   ;;  %s442_s1 = inlined_call_operand.vmem [shape: bf16[128,128], index: 1, kind: input, shape index: {}]   ;;  %s443_s0 = inlined_call_operand.vmem [shape: bf16[40,128], index: 0, kind: input, shape index: {}]   ;;  %s444_s2 = inlined_call_operand.vmem [shape: f32[1,128], index: 2, kind: input, shape index: {}]   ;;  %s445_s3 = inlined_call_operand.vmem [shape: bf16[40,128], index: 3, kind: input, shape index: {}, may-alias: {3,4}]   ;;  %s446_s4 = inlined_call_operand.vmem [shape: bf16[40,128], index: 4, kind: output, shape index: {}, may-alias: {3,4}]  }
   0x1   :  { %301 = vmatprep.subr.bf16.mxu0 %v358_v0  ;;  %329 = vmatprep.subr.bf16.mxu1 %v358_v0  ;;  %v347_v1 = vld [vmem:[%s442_s1 + $0x38] sm:$0xff]   ;;  %v348_v2 = vld [vmem:[%s442_s1 + $0x30] sm:$0xff]   ;;  %v349_v3 = vld [vmem:[%s442_s1 + $0x28] sm:$0xff]  }
   0x2   :  { %317 = vmatprep.mubr.msk.bf16.mxu0 %vm359_vm0, %v358_v0  ;;  %321 = vmatprep.mubr.msk.bf16.mxu1 %vm359_vm0, %v358_v0  ;;  %v350_v4 = vld [vmem:[%s442_s1 + $0x20] sm:$0xff]   ;;  %v351_v5 = vld [vmem:[%s442_s1 + $0x18] sm:$0xff]   ;;  %v352_v6 = vld [vmem:[%s442_s1 + $0x10] sm:$0xff]  }
   0x3   :  { %302 = vmatpush3.bf16.msra.mxu0 %v347_v1  ;;  %337 = vmatpush3.bf16.msra.mxu1 %v347_v1  ;;  %v353_v7 = vld [vmem:[%s442_s1 + $0x8] sm:$0xff]   ;;  %v354_v8 = vld [vmem:[%s442_s1] sm:$0xff]   ;;  %v357_v11 = vld [vmem:[%s443_s0 + $0x10] ss:$0 sps:$4 sm:$0xff]  }
   0x4   :  { %303 = vmatprep.subr.bf16.mxu0 %v358_v0  ;;  %330 = vmatprep.subr.bf16.mxu1 %v358_v0  ;;  %v355_v9 = vld [vmem:[%s443_s0] sm:$0xff]   ;;  %v356_v10 = vld [vmem:[%s443_s0 + $0x8] sm:$0xff]   ;;  %v207_v27 = vld [vmem:[%s445_s3 + $0x10] sm:$0xf] }
   0x5   :  { %v271_v12 = vld [vmem:[%s445_s3] sm:$0xff]   ;;  %v288_v16 = vld [vmem:[%s445_s3 + $0x8] sm:$0xff]   ;;  %v212_v36 = vunpack.c.l.bf16 %v207_v27 }
   0x6   :  { %v259_v14 = vld [vmem:[%s444_s2] ss:$0 sm:$0xff]  ;;  %v272_v18 = vunpack.c.l.bf16 %v271_v12  ;;  %v276_v22 = vunpack.c.l.bf16 %v288_v16  ;;  %v273_v23 = vunpack.c.h.bf16 %v271_v12  ;;  %v277_v24 = vunpack.c.h.bf16 %v288_v16 }
   0x7   :  { %304 = vmatpush3.bf16.msra.mxu0 %v348_v2  ;;  %338 = vmatpush3.bf16.msra.mxu1 %v348_v2 }
   0x8   :  { %305 = vmatprep.subr.bf16.mxu0 %v358_v0  ;;  %331 = vmatprep.subr.bf16.mxu1 %v358_v0 }
   0xb   :  { %306 = vmatpush3.bf16.msra.mxu0 %v349_v3  ;;  %339 = vmatpush3.bf16.msra.mxu1 %v349_v3 }
   0xc   :  { %307 = vmatprep.subr.bf16.mxu0 %v358_v0  ;;  %332 = vmatprep.subr.bf16.mxu1 %v358_v0 }
   0xf   :  { %308 = vmatpush3.bf16.msra.mxu0 %v350_v4  ;;  %340 = vmatpush3.bf16.msra.mxu1 %v350_v4 }
  0x10   :  { %309 = vmatprep.subr.bf16.mxu0 %v358_v0  ;;  %333 = vmatprep.subr.bf16.mxu1 %v358_v0 }
  0x13   :  { %310 = vmatpush3.bf16.msra.mxu0 %v351_v5  ;;  %341 = vmatpush3.bf16.msra.mxu1 %v351_v5 }
  0x14   :  { %311 = vmatprep.subr.bf16.mxu0 %v358_v0  ;;  %334 = vmatprep.subr.bf16.mxu1 %v358_v0 }
  0x17   :  { %312 = vmatpush3.bf16.msra.mxu0 %v352_v6  ;;  %342 = vmatpush3.bf16.msra.mxu1 %v352_v6 }
  0x18   :  { %313 = vmatprep.subr.bf16.mxu0 %v358_v0  ;;  %335 = vmatprep.subr.bf16.mxu1 %v358_v0 }
  0x1b   :  { %314 = vmatpush3.bf16.msra.mxu0 %v353_v7  ;;  %343 = vmatpush3.bf16.msra.mxu1 %v353_v7 }
  0x1c   :  { %315 = vmatprep.subr.bf16.mxu0 %v358_v0  ;;  %336 = vmatprep.subr.bf16.mxu1 %v358_v0 }
  0x1f   :  { %316 = vmatpush3.bf16.msra.mxu0 %v354_v8  ;;  %344 = vmatpush3.bf16.msra.mxu1 %v354_v8 }
  0x22   :  { %318 = vmatmul.mubr.bf16.vlgmr.msra.gmra.mxu0 %v355_v9  ;;  %322 = vmatmul.mubr.bf16.vlgmr.msra.gmra.mxu1 %v356_v10 }
  0x23   :  { %325 = vmatprep.mubr.msk.bf16.mxu1 %vm359_vm0, %v358_v0 }
  0x2a   :  { %326 = vmatmul.mubr.bf16.gmra.mxu1 %v357_v11 }
  0xe2   :  { %v151_v13 = vpop.f32.mrf.mxu0  ;;  %v159_v15 = vpop.f32.mrf.mxu1 }
  0xe3   :  { %v198_v17 = vadd.f32 %v259_v14, %v151_v13  ;;  %v200_v21 = vadd.f32 %v259_v14, %v159_v15 }
  0xe4   :  { %v319_v19 = vpop.f32.mrf.mxu0  ;;  %v323_v20 = vpop.f32.mrf.mxu1 }
  0xe5   :  { %v213_v28 = vadd.f32 %v272_v18, %v198_v17  ;;  %v215_v33 = vadd.f32 %v276_v22, %v200_v21 }
  0xe6   :  { %v154_v25 = vpop.f32.mrf.mxu0  ;;  %v162_v26 = vpop.f32.mrf.mxu1 }
  0xe7   :  { %v199_v29 = vadd.f32 %v259_v14, %v154_v25  ;;  %v201_v30 = vadd.f32 %v259_v14, %v162_v26 }
  0xe8   :  { %v320_v31 = vpop.f32.mrf.mxu0  ;;  %v324_v32 = vpop.f32.mrf.mxu1 }
  0xe9   :  { %v214_v34 = vadd.f32 %v273_v23, %v199_v29  ;;  %v216_v35 = vadd.f32 %v277_v24, %v201_v30 }
  0xea   :  { %v167_v37 = vpop.f32.mrf.mxu1 }
  0xeb   :  { %v281_v38 = vpack.c.bf16 %v214_v34, %v213_v28  ;;  %v286_v39 = vpack.c.bf16 %v216_v35, %v215_v33  ;;  %v202_v40 = vadd.f32 %v259_v14, %v167_v37 }
  0xec   :  { %v327_v41 = vpop.f32.mrf.mxu1 }
  0xed   :  { %282 = vst [vmem:[%s446_s4] sm:$0xff] %v281_v38   ;;  %289 = vst [vmem:[%s446_s4 + $0x8] sm:$0xff] %v286_v39   ;;  %v217_v42 = vadd.f32 %v212_v36, %v202_v40 }
  0xee   :  { %v170_v43 = vpop.f32.mrf.mxu1 }
  0xef   :  { %v269_v44 = vpack.c.bf16 %v217_v42, %v217_v42 }
  0xf0   :  { %v328_v45 = vpop.f32.mrf.mxu1 }
  0xf1   :  { %243 = vst [vmem:[%s446_s4 + $0x10] sm:$0xf] %v269_v44 }

// kernel: segmenter_forward.21
= control target key start
LH: loop header
LB: loop body
LE: loop exit
PB: predicated region body
PF: predicated region fallthrough
CT: control target
= control target key end

     0   :  { %s1097_s18 = smov 0   ;;  %s1099_s19 = smov 0   ;;  %s1239_s0 = inlined_call_operand.vmem [shape: bf16[40,128], index: 0, kind: input, shape index: {}]   ;;  %s1240_s1 = inlined_call_operand.vmem [shape: f32[1,128], index: 1, kind: input, shape index: {}]   ;;  %s1241_s2 = inlined_call_operand.vmem [shape: f32[1,128], index: 2, kind: input, shape index: {}]   ;;  %s1242_s3 = inlined_call_operand.vmem [shape: bf16[128,384], index: 3, kind: input, shape index: {}]   ;;  %s1243_s4 = inlined_call_operand.vmem [shape: f32[1,384], index: 4, kind: input, shape index: {}]   ;;  %s1244_s5 = inlined_call_operand.vmem [shape: bf16[40,384], index: 5, kind: output, shape index: {}]  }
   0x1   :  { %s1101_s20 = smov 0   ;;  %s1103_s21 = smov 0  }
   0x2   :  { %s1105_s22 = smov 0  }
   0x3 LB: > { %s24_s23 = sadd.s32 1, %s1059_s21  ;;  %s828_s24 = sadd.s32 4294967295, %s1063_s22   ;;  %s1063_s22 = sphi %s1105_s22, %s15_s22   ;;  %s1059_s21 = sphi %s1103_s21, %s1249_s21   ;;  %s1055_s20 = sphi %s1101_s20, %s1248_s20   ;;  %s1051_s19 = sphi %s1099_s19, %s1247_s19   ;;  %s1047_s18 = sphi %s1097_s18, %s1246_s18  }
   0x4   : > { %p25_p0 = scmp.ge.s32.totalorder %s24_s23, 3  ;;  %p109_p1 = scmp.ne.s32.totalorder %s1051_s19, %s1047_s18 }
   0x5   : > { %p110_p2 = scmp.eq.s32.totalorder %s1063_s22, 0  ;;  %p167_p4 = scmp.eq.s32.totalorder %s828_s24, 2 }
   0x6   : > { %s1251_s23 = smov (%p25_p0, %s24_s23), 0  ;;  %s102_s26 = sadd.s32 1, %s1051_s19 }
   0x7   : > { %p111_p3 = por %p110_p2, %p109_p1  ;;  %s99_s25 = ssub.s32 %s1059_s21, %s1251_s23 }
   0x8   : > { %p100_p5 = scmp.eq.s32.totalorder %s99_s25, 0  ;;  %p1132_p6 = por %p167_p4, %p109_p1 }
   0x9   : > { %p832_p7 = scmp.ge.s32.totalorder %s1063_s22, 3 }
   0xa   : > { %s1137_s28 = scalar_select %p100_p5, %s1051_s19, %s102_s26  }
   0xb   : > { %204 = sbr.rel (%p832_p7) target bundleno = 30 (0x1e), region = 28 }
  0x10   : > { %207 = sbr.rel (!%p111_p3) target bundleno = 30 (0x1e), region = 32  ;;  %s209_s29 = sand.u32 (%p111_p3), 1, %s1051_s19  }
  0x11   : > { %s834_s30 = sshll.u32 (%p111_p3), %s1059_s21, 2  ;;  %s833_s6 = sshll.u32 (%p111_p3), %s209_s29, 6 }
  0x12   : > { %s1145_s9 = scalar_lea.vmem (%p111_p3), %s1242_s3, %s834_s30  ;;  %s211_s10 = scalar_lea.vmem (%p111_p3), [#allocation3], %s833_s6 }
  0x13   : > { %v230_v0 = vld [vmem:[%s1145_s9] sm:$0xf] (%p111_p3)  ;;  %v232_v1 = vld [vmem:[%s1145_s9 + $0xc] sm:$0xf] (%p111_p3)  ;;  %v234_v2 = vld [vmem:[%s1145_s9 + $0x18] sm:$0xf] (%p111_p3) }
  0x14   : > { %231 = vst [vmem:[%s211_s10] sm:$0xf] (%p111_p3), %v230_v0  ;;  %233 = vst [vmem:[%s211_s10 + $0x4] sm:$0xf] (%p111_p3), %v232_v1  ;;  %v236_v3 = vld [vmem:[%s1145_s9 + $0x24] sm:$0xf] (%p111_p3) }
  0x15   : > { %v238_v4 = vld [vmem:[%s1145_s9 + $0x30] sm:$0xf]  ;;  %235 = vst [vmem:[%s211_s10 + $0x8] sm:$0xf] %v234_v2  ;;  %237 = vst [vmem:[%s211_s10 + $0xc] sm:$0xf] %v236_v3 }
  0x16   : > { %239 = vst [vmem:[%s211_s10 + $0x10] sm:$0xf] %v238_v4  ;;  %v240_v5 = vld [vmem:[%s1145_s9 + $0x3c] sm:$0xf]  ;;  %v242_v6 = vld [vmem:[%s1145_s9 + $0x48] sm:$0xf] }
  0x17   : > { %v244_v7 = vld [vmem:[%s1145_s9 + $0x54] sm:$0xf]  ;;  %241 = vst [vmem:[%s211_s10 + $0x14] sm:$0xf] %v240_v5  ;;  %243 = vst [vmem:[%s211_s10 + $0x18] sm:$0xf] %v242_v6 }
  0x18   : > { %245 = vst [vmem:[%s211_s10 + $0x1c] sm:$0xf] %v244_v7  ;;  %v246_v8 = vld [vmem:[%s1145_s9 + $0x60] sm:$0xf]  ;;  %v248_v9 = vld [vmem:[%s1145_s9 + $0x6c] sm:$0xf] }
  0x19   : > { %v250_v10 = vld [vmem:[%s1145_s9 + $0x78] sm:$0xf]  ;;  %247 = vst [vmem:[%s211_s10 + $0x20] sm:$0xf] %v246_v8  ;;  %249 = vst [vmem:[%s211_s10 + $0x24] sm:$0xf] %v248_v9 }
  0x1a   : > { %251 = vst [vmem:[%s211_s10 + $0x28] sm:$0xf] %v250_v10  ;;  %v252_v11 = vld [vmem:[%s1145_s9 + $0x84] sm:$0xf]  ;;  %v254_v12 = vld [vmem:[%s1145_s9 + $0x90] sm:$0xf] }
  0x1b   : > { %v256_v13 = vld [vmem:[%s1145_s9 + $0x9c] sm:$0xf]  ;;  %253 = vst [vmem:[%s211_s10 + $0x2c] sm:$0xf] %v252_v11  ;;  %255 = vst [vmem:[%s211_s10 + $0x30] sm:$0xf] %v254_v12 }
  0x1c   : > { %257 = vst [vmem:[%s211_s10 + $0x34] sm:$0xf] %v256_v13  ;;  %v258_v14 = vld [vmem:[%s1145_s9 + $0xa8] sm:$0xf]  ;;  %v260_v15 = vld [vmem:[%s1145_s9 + $0xb4] sm:$0xf] }
  0x1d   : > { %259 = vst [vmem:[%s211_s10 + $0x38] sm:$0xf] %v258_v14  ;;  %261 = vst [vmem:[%s211_s10 + $0x3c] sm:$0xf] %v260_v15 }
  0x1e PF: > { %p835_p8 = scmp.ge.s32.totalorder %s1063_s22, 1  ;;  %p322_p9 = scmp.lt.s32.totalorder %s1063_s22, 4 }
  0x20   : > { %p323_p10 = pnand %p835_p8, %p322_p9 }
  0x21   : > { %s329_s11 = sand.u32 (!%p323_p10), 1, %s1047_s18   ;;  %p369_p11 = scmp.lt.s32.totalorder (!%p323_p10), %s1055_s20, 2 }
  0x22   : > { %326 = sbr.rel (%p323_p10) target bundleno = 613 (0x265), region = 77  ;;  %s836_s12 = sshll.u32 (!%p323_p10), %s329_s11, 6 }
  0x23   : > { %s961_s13 = smul.u32 (!%p323_p10), 20, %s329_s11  ;;  %s1174_s24 = scalar_lea.vmem (!%p323_p10), [#allocation3], %s836_s12 }
  0x24   : > { %p837_p12 = scmp.ne.s32.totalorder (!%p323_p10), %s1055_s20, 0 }
  0x25   : > { %s1176_s25 = scalar_lea.vmem (!%p323_p10), [#allocation4], %s961_s13 }
  0x27   : > { %s1168_s14 = scalar_select %p369_p11, %s1055_s20, 2 }
  0x28   : > { %377 = sbr.rel (%p837_p12) target bundleno = 366 (0x16e), region = 85 }
  0x29   : > { %s371_s17 = scalar_lea.vmem %s1243_s4, %s1168_s14 }
  0x2d   : > { %v876_v16 = vld [vmem:[%s1239_s0] sm:$0xff]   ;;  %v903_v17 = vld [vmem:[%s1239_s0 + $0x8] sm:$0xff]   ;;  %v382_v22 = vld [vmem:[%s1239_s0 + $0x10] sm:$0xf] }
  0x2e   : > { %v877_v18 = vunpack.c.l.bf16 %v876_v16  ;;  %v881_v19 = vunpack.c.l.bf16 %v903_v17  ;;  %v878_v20 = vunpack.c.h.bf16 %v876_v16  ;;  %v882_v21 = vunpack.c.h.bf16 %v903_v17  ;;  %v838_v61 = vld [vmem:[%s1240_s1] ss:$0 sm:$0xff] }
  0x2f   : > { %v387_v23 = vunpack.c.l.bf16 %v382_v22  ;;  %v839_v3 = vld [vmem:[%s1241_s2] ss:$0 sm:$0xff] }
  0x30   : > { %388 = vadd.xlane.f32.xlu0 %v877_v18  ;;  %392 = vadd.xlane.f32.xlu1 %v881_v19 }
  0x34   : > { %390 = vadd.xlane.f32.xlu0 %v878_v20  ;;  %394 = vadd.xlane.f32.xlu1 %v882_v21 }
  0x38   : > { %396 = vadd.xlane.f32.xlu0 %v387_v23 }
  0xb9   : > { %v389_v24 = vpop.xlane.xlu0 %388  ;;  %v393_v25 = vpop.xlane.xlu1 %392 }
  0xba   : > { %v399_v26 = vmul.f32 0.0078125, %v389_v24  ;;  %v401_v27 = vmul.f32 0.0078125, %v393_v25 }
  0xbc   : > { %v404_v28 = vsub.f32 %v877_v18, %v399_v26  ;;  %v406_v29 = vsub.f32 %v881_v19, %v401_v27 }
  0xbd   : > { %v391_v30 = vpop.xlane.xlu0 %390  ;;  %v395_v31 = vpop.xlane.xlu1 %394 }
  0xbe   : > { %v400_v32 = vmul.f32 0.0078125, %v391_v30  ;;  %v409_v33 = vmul.f32 %v404_v28, %v404_v28  ;;  %v402_v34 = vmul.f32 0.0078125, %v395_v31  ;;  %v411_v37 = vmul.f32 %v406_v29, %v406_v29 }
  0xc0   : > { %v405_v35 = vsub.f32 %v878_v20, %v400_v32  ;;  %414 = vadd.xlane.f32.xlu1 %v409_v33  ;;  %v407_v36 = vsub.f32 %v882_v21, %v402_v34 }
  0xc1   : > { %v397_v38 = vpop.xlane.xlu0 %396 }
  0xc2   : > { %v403_v39 = vmul.f32 0.0078125, %v397_v38  ;;  %v410_v40 = vmul.f32 %v405_v35, %v405_v35  ;;  %v412_v42 = vmul.f32 %v407_v36, %v407_v36 }
  0xc4   : > { %v408_v41 = vsub.f32 %v387_v23, %v403_v39  ;;  %418 = vadd.xlane.f32.xlu1 %v411_v37  ;;  %416 = vadd.xlane.f32.xlu0 %v410_v40 }
  0xc6   : > { %v413_v43 = vmul.f32 %v408_v41, %v408_v41 }
  0xc8   : > { %420 = vadd.xlane.f32.xlu0 %v412_v42  ;;  %422 = vadd.xlane.f32.xlu1 %v413_v43 }
 0x149   : > { %v415_v44 = vpop.xlane.xlu1 %414 }
 0x14a   : > { %v424_v45 = vmul.f32 0.0078125, %v415_v44 }
 0x14c   : > { %v429_v46 = vadd.f32 1e-06, %v424_v45 }
 0x14d   : > { %v419_v47 = vpop.xlane.xlu1 %418  ;;  %v417_v48 = vpop.xlane.xlu0 %416 }
 0x14e   : > { %1004 = vrsqrt.f32 %v429_v46  ;;  %v426_v49 = vmul.f32 0.0078125, %v419_v47  ;;  %v425_v50 = vmul.f32 0.0078125, %v417_v48 }
 0x150   : > { %v431_v51 = vadd.f32 1e-06, %v426_v49  ;;  %v430_v52 = vadd.f32 1e-06, %v425_v50 }
 0x151   : > { %v423_v53 = vpop.xlane.xlu1 %422  ;;  %v421_v54 = vpop.xlane.xlu0 %420 }
 0x152   : > { %1006 = vrsqrt.f32 %v431_v51  ;;  %v428_v55 = vmul.f32 0.0078125, %v423_v53  ;;  %v427_v56 = vmul.f32 0.0078125, %v421_v54 }
 0x153   : > { %1008 = vrsqrt.f32 %v430_v52 }
 0x154   : > { %v433_v57 = vadd.f32 1e-06, %v428_v55  ;;  %v432_v58 = vadd.f32 1e-06, %v427_v56 }
 0x156   : > { %1010 = vrsqrt.f32 %v433_v57 }
 0x157   : > { %1012 = vrsqrt.f32 %v432_v58 }
 0x15b   : > { %v1005_v59 = vpop.eup %1004 }
 0x15c   : > { %v439_v60 = vmul.f32 %v1005_v59, %v404_v28 }
 0x15e   : > { %v451_v0 = vmul.f32 %v838_v61, %v439_v60 }
 0x15f   : > { %v1007_v62 = vpop.eup %1006 }
 0x160   : > { %v1009_v63 = vpop.eup %1008  ;;  %v441_v1 = vmul.f32 %v1007_v62, %v406_v29  ;;  %v463_v8 = vadd.f32 %v839_v3, %v451_v0 }
 0x161   : > { %v440_v2 = vmul.f32 %v1009_v63, %v405_v35 }
 0x162   : > { %v453_v9 = vmul.f32 %v838_v61, %v441_v1 }
 0x163   : > { %v1011_v4 = vpop.eup %1010  ;;  %v452_v5 = vmul.f32 %v838_v61, %v440_v2 }
 0x164   : > { %v1013_v6 = vpop.eup %1012  ;;  %v443_v7 = vmul.f32 %v1011_v4, %v408_v41  ;;  %v465_v16 = vadd.f32 %v839_v3, %v453_v9 }
 0x165   : > { %v464_v10 = vadd.f32 %v839_v3, %v452_v5  ;;  %v442_v11 = vmul.f32 %v1013_v6, %v407_v36 }
 0x166   : > { %v455_v12 = vmul.f32 %v838_v61, %v443_v7 }
 0x167   : > { %v886_v13 = vpack.c.bf16 %v464_v10, %v463_v8  ;;  %v454_v14 = vmul.f32 %v838_v61, %v442_v11 }
 0x168   : > { %v467_v15 = vadd.f32 %v839_v3, %v455_v12 }
 0x169   : > { %887 = vst [vmem:[#allocation2] sm:$0xff] %v886_v13   ;;  %v466_v17 = vadd.f32 %v839_v3, %v454_v14 }
 0x16a   : > { %v869_v18 = vpack.c.bf16 %v467_v15, %v467_v15 }
 0x16b   : > { %v891_v19 = vpack.c.bf16 %v466_v17, %v465_v16 }
 0x16c   : > { %493 = vst [vmem:[#allocation2 + $0x10] sm:$0xf] %v869_v18 }
 0x16d   : > { %904 = vst [vmem:[#allocation2 + $0x8] sm:$0xff] %v891_v19  }
 0x16e PF: > { %v1014_v20 = vld [vmem:[%s1174_s24 + $0x38] sm:$0xff]   ;;  %v1065_v21 = vmov 0.0   ;;  %v1015_v22 = vld [vmem:[%s1174_s24 + $0x30] sm:$0xff]   ;;  %vm1066_vm0 = vmmov 0   ;;  %v1016_v23 = vld [vmem:[%s1174_s24 + $0x28] sm:$0xff]   ;;  %s862_s14 = sshll.u32 (%p1132_p6), %s1055_s20, 2 }
 0x16f   : > { %917 = vmatprep.subr.bf16.mxu0 %v1065_v21  ;;  %945 = vmatprep.subr.bf16.mxu1 %v1065_v21  ;;  %v1017_v24 = vld [vmem:[%s1174_s24 + $0x20] sm:$0xff]   ;;  %v1018_v25 = vld [vmem:[%s1174_s24 + $0x18] sm:$0xff]   ;;  %v1019_v26 = vld [vmem:[%s1174_s24 + $0x10] sm:$0xff]  }
 0x170   : > { %918 = vmatpush3.bf16.msra.mxu0 %v1014_v20  ;;  %953 = vmatpush3.bf16.msra.mxu1 %v1014_v20  ;;  %v1020_v27 = vld [vmem:[%s1174_s24 + $0x8] sm:$0xff]   ;;  %v1021_v28 = vld [vmem:[%s1174_s24] sm:$0xff]  }
 0x171   : > { %919 = vmatprep.subr.bf16.mxu0 %v1065_v21  ;;  %946 = vmatprep.subr.bf16.mxu1 %v1065_v21  ;;  %v1022_v29 = vld [vmem:[#allocation2] sm:$0xff]  }
 0x172   : > { %933 = vmatprep.mubr.msk.bf16.mxu0 %vm1066_vm0, %v1065_v21  ;;  %937 = vmatprep.mubr.msk.bf16.mxu1 %vm1066_vm0, %v1065_v21  ;;  %v845_v34 = vld [vmem:[%s371_s17] ss:$0 sm:$0xff]  ;;  %s679_s17 = scalar_lea.vmem (%p1132_p6), %s1244_s5, %s862_s14 }
 0x173   : > { %v1024_v31 = vld [vmem:[#allocation2 + $0x10] ss:$0 sps:$4 sm:$0xff]  }
 0x174   : > { %920 = vmatpush3.bf16.msra.mxu0 %v1015_v22  ;;  %954 = vmatpush3.bf16.msra.mxu1 %v1015_v22  ;;  %v1023_v30 = vld [vmem:[#allocation2 + $0x8] sm:$0xff]  }
 0x175   : > { %921 = vmatprep.subr.bf16.mxu0 %v1065_v21  ;;  %947 = vmatprep.subr.bf16.mxu1 %v1065_v21 }
 0x178   : > { %922 = vmatpush3.bf16.msra.mxu0 %v1016_v23  ;;  %955 = vmatpush3.bf16.msra.mxu1 %v1016_v23 }
 0x179   : > { %923 = vmatprep.subr.bf16.mxu0 %v1065_v21  ;;  %948 = vmatprep.subr.bf16.mxu1 %v1065_v21 }
 0x17c   : > { %924 = vmatpush3.bf16.msra.mxu0 %v1017_v24  ;;  %956 = vmatpush3.bf16.msra.mxu1 %v1017_v24 }
 0x17d   : > { %925 = vmatprep.subr.bf16.mxu0 %v1065_v21  ;;  %949 = vmatprep.subr.bf16.mxu1 %v1065_v21 }
 0x180   : > { %926 = vmatpush3.bf16.msra.mxu0 %v1018_v25  ;;  %957 = vmatpush3.bf16.msra.mxu1 %v1018_v25 }
 0x181   : > { %927 = vmatprep.subr.bf16.mxu0 %v1065_v21  ;;  %950 = vmatprep.subr.bf16.mxu1 %v1065_v21 }
 0x184   : > { %928 = vmatpush3.bf16.msra.mxu0 %v1019_v26  ;;  %958 = vmatpush3.bf16.msra.mxu1 %v1019_v26 }
 0x185   : > { %929 = vmatprep.subr.bf16.mxu0 %v1065_v21  ;;  %951 = vmatprep.subr.bf16.mxu1 %v1065_v21 }
 0x188   : > { %930 = vmatpush3.bf16.msra.mxu0 %v1020_v27  ;;  %959 = vmatpush3.bf16.msra.mxu1 %v1020_v27 }
 0x189   : > { %931 = vmatprep.subr.bf16.mxu0 %v1065_v21  ;;  %952 = vmatprep.subr.bf16.mxu1 %v1065_v21 }
 0x18c   : > { %932 = vmatpush3.bf16.msra.mxu0 %v1021_v28  ;;  %960 = vmatpush3.bf16.msra.mxu1 %v1021_v28 }
 0x18f   : > { %934 = vmatmul.mubr.bf16.vlgmr.msra.gmra.mxu0 %v1022_v29  ;;  %938 = vmatmul.mubr.bf16.vlgmr.msra.gmra.mxu1 %v1023_v30 }
 0x190   : > { %941 = vmatprep.mubr.msk.bf16.mxu1 %vm1066_vm0, %v1065_v21 }
 0x197   : > { %942 = vmatmul.mubr.bf16.gmra.mxu1 %v1024_v31 }
 0x24f   : > { %v620_v32 = vpop.f32.mrf.mxu0  ;;  %v628_v33 = vpop.f32.mrf.mxu1 }
 0x250   : > { %v621_v37 = vadd.f32 %v845_v34, %v620_v32  ;;  %v629_v40 = vadd.f32 %v845_v34, %v628_v33 }
 0x251   : > { %v935_v35 = vpop.f32.mrf.mxu0  ;;  %v939_v36 = vpop.f32.mrf.mxu1 }
 0x253   : > { %v623_v38 = vpop.f32.mrf.mxu0  ;;  %v631_v39 = vpop.f32.mrf.mxu1 }
 0x254   : > { %v624_v41 = vadd.f32 %v845_v34, %v623_v38  ;;  %v632_v42 = vadd.f32 %v845_v34, %v631_v39 }
 0x255   : > { %v936_v43 = vpop.f32.mrf.mxu0  ;;  %v940_v44 = vpop.f32.mrf.mxu1 }
 0x256   : > { %v896_v45 = vpack.c.bf16 %v624_v41, %v621_v37  ;;  %v901_v46 = vpack.c.bf16 %v632_v42, %v629_v40 }
 0x257   : > { %v636_v47 = vpop.f32.mrf.mxu1 }
 0x258   : > { %897 = vst [vmem:[%s1176_s25] sm:$0xff] %v896_v45   ;;  %905 = vst [vmem:[%s1176_s25 + $0x8] sm:$0xff] %v901_v46   ;;  %v637_v48 = vadd.f32 %v845_v34, %v636_v47 }
 0x259   : > { %v943_v49 = vpop.f32.mrf.mxu1  ;;  %674 = sbr.rel (!%p1132_p6) target bundleno = 613 (0x265), region = 89 }
 0x25a   : > { %v874_v50 = vpack.c.bf16 %v637_v48, %v637_v48 }
 0x25b   : > { %v639_v51 = vpop.f32.mrf.mxu1 }
 0x25c   : > { %667 = vst [vmem:[%s1176_s25 + $0x10] sm:$0xf] %v874_v50 }
 0x25d   : > { %v944_v52 = vpop.f32.mrf.mxu1 }
 0x25f   : > { %v696_v53 = vld [vmem:[%s1176_s25] sm:$0xf]  ;;  %v698_v54 = vld [vmem:[%s1176_s25 + $0x4] sm:$0xf]  ;;  %v700_v55 = vld [vmem:[%s1176_s25 + $0x8] sm:$0xf] }
 0x260   : > { %v702_v56 = vld [vmem:[%s1176_s25 + $0xc] sm:$0xf]  ;;  %697 = vst [vmem:[%s679_s17] sm:$0xf] %v696_v53  ;;  %699 = vst [vmem:[%s679_s17 + $0xc] sm:$0xf] %v698_v54 }
 0x261   : > { %701 = vst [vmem:[%s679_s17 + $0x18] sm:$0xf] %v700_v55  ;;  %703 = vst [vmem:[%s679_s17 + $0x24] sm:$0xf] %v702_v56 }
 0x263   : > { %v704_v57 = vld [vmem:[%s1176_s25 + $0x10] sm:$0xf] }
 0x264   : > { %705 = vst [vmem:[%s679_s17 + $0x30] sm:$0xf] %v704_v57 }
 0x265 PF: > { %s15_s22 = sadd.s32 1, %s1063_s22   ;;  %s1246_s18 = smov %s1051_s19 }
 0x266   : > { %p12_p13 = scmp.ge.s32.totalorder %s15_s22, 5   ;;  %s1247_s19 = smov %s1137_s28 }
 0x267   : > { %s1248_s20 = smov %s1059_s21  ;;  %s1249_s21 = smov %s1251_s23 }
 0x268   :  { %14 = sbr.rel (!%p12_p13) target bundleno = 3 (0x3), region = 167 }

// kernel: segmenter_forward.22
= control target key start
LH: loop header
LB: loop body
LE: loop exit
PB: predicated region body
PF: predicated region fallthrough
CT: control target
= control target key end

     0   :  { %s875_s6 = smov 0   ;;  %s877_s7 = smov 0   ;;  %s979_s0 = inlined_call_operand.vmem [shape: bf16[2,17,384], index: 0, kind: input, shape index: {}]   ;;  %s980_s1 = inlined_call_operand.vmem [shape: bf16[2,17,128], index: 1, kind: output, shape index: {}]  }
   0x1   :  { %s879_s8 = smov 0  }
   0x2 LB: > { %s23_s9 = sadd.s32 1, %s857_s7  ;;  %p686_p0 = scmp.ge.s32.totalorder %s861_s8, 1  ;;  %s861_s8 = sphi %s879_s8, %s11_s8   ;;  %s857_s7 = sphi %s877_s7, %s982_s7   ;;  %s853_s6 = sphi %s875_s6, %s981_s6  }
   0x3   : > { %p25_p1 = scmp.ge.s32.totalorder %s23_s9, 2  ;;  %p108_p2 = scmp.lt.s32.totalorder %s861_s8, 3 }
   0x5   : > { %s984_s9 = smov (%p25_p1, %s23_s9), 0  ;;  %p109_p3 = pnand %p686_p0, %p108_p2 }
   0x6   : > { %p136_p4 = scmp.lt.s32.totalorder (!%p109_p3), %s853_s6, 1  ;;  %s864_s14 = smov (!%p109_p3), 64  }
   0x7   : > { %112 = sbr.rel (%p109_p3) target bundleno = 1400 (0x578), region = 24 }
   0xc   : > { %s986_s6 = smov (!%p136_p4, %s853_s6), 1  ;;  %vm179_vm0 = vcmask 523264   ;;  %vm250_vm1 = vcmask 131072   ;;  %vm243_vm2 = vcmask 138240   ;;  %vm295_vm3 = vcmask 1040384  }
   0xd   : > { %s775_s10 = smul.u32 36, %s986_s6  ;;  %v863_v32 = vmov 0   ;;  %vm365_vm4 = vcmask 516096   ;;  %vm366_vm5 = vsmask.f32 256  ;;  %vm362_vm7 = vcmask 519168  }
   0xe   : > { %v918_v33 = vsel %vm295_vm3, 65535, %v863_v32  ;;  %s776_s15 = smul.u32 12, %s986_s6  ;;  %vm367_vm6 = vmand %vm365_vm4, %vm366_vm5  ;;  %vm594_vm8 = vcmask 1040896   ;;  %vm591_vm10 = vcmask 1043968  }
   0xf   : > { %s899_s13 = scalar_lea.vmem %s979_s0, %s775_s10  ;;  %vm595_vm9 = vmand %vm594_vm8, %vm366_vm5 }
  0x10   : > { %v803_v0 = vld [vmem:[%s899_s13 + $0x1c] ss:$0 sps:$4 sm:$0x11]   ;;  %v804_v1 = vld [vmem:[%s899_s13 + $0x4] ss:$12 sps:$4 sm:$0xff]   ;;  %s942_s18 = scalar_lea.vmem %s980_s1, %s776_s15 }
  0x11   : > { %771 = vmatprep.subr.msk.bf16.mxu0 %vm179_vm0, %v803_v0  ;;  %v190_v2 = vsel %vm179_vm0, %v803_v0, 0  ;;  %v805_v3 = vld [vmem:[%s899_s13] ss:$12 sps:$4 sm:$0xff]   ;;  %v187_v4 = vsel %vm179_vm0, %v804_v1, 0  ;;  %v808_v34 = vld [vmem:[%s899_s13 + $0x4] ss:$12 sps:$4 sm:$0xff]  }
  0x12   : > { %740 = vmatpush3.bf16.xpose.msra.mxu0 %v190_v2  ;;  %743 = vmatprep.mubr.msk.bf16.mxu0 %vm179_vm0, %v805_v3  ;;  %v806_v5 = vld [vmem:[%s899_s13 + $0x18] ss:$0 sps:$4 sm:$0x11]   ;;  %v811_v31 = vld [vmem:[%s899_s13 + $0x20] ss:$0 sps:$4 sm:$0x11]  }
  0x13   : > { %772 = vmatprep.subr.msk.bf16.mxu0 %vm179_vm0, %v804_v1  ;;  %v299_v35 = vand.u32 %v811_v31, %v918_v33  ;;  %v812_v36 = vld [vmem:[%s899_s13 + $0x8] ss:$12 sps:$4 sm:$0xff]   ;;  %v809_v37 = vld [vmem:[%s899_s13] ss:$12 sps:$4 sm:$0xff]  }
  0x14   : > { %v807_v38 = vld [vmem:[%s899_s13 + $0x1c] ss:$0 sps:$4 sm:$0x11]   ;;  %v810_v39 = vld [vmem:[%s899_s13 + $0x18] ss:$0 sps:$4 sm:$0x11]  }
  0x15   : > { %747 = vmatprep.subr.bf16.mxu1 %v299_v35  ;;  %v368_v58 = vld [vmem:[%s942_s18 + $0x8] sm:$0x1] }
  0x16   : > { %748 = vmatpush3.bf16.msra.mxu1 %v299_v35 }
  0x17   : > { %749 = vmatprep.subr.bf16.mxu1 %v812_v36 }
  0x1a   : > { %742 = vmatpush3.bf16.xpose.msra.mxu0 %v187_v4  ;;  %750 = vmatpush3.bf16.msra.mxu1 %v812_v36 }
  0x21   : > { %744 = vmatmul.mubr.msk.bf16.vlgmr.msra.gmra.mxu0 %vm179_vm0, %v806_v5 }
  0xe1   : > { %v745_v6 = vpop.f32.mrf.mxu0 }
  0xe2   : > { %v242_v7 = vmul.f32 0.125, %v745_v6 }
  0xe3   : > { %v226_v8 = vpop.f32.mrf.mxu0 }
  0xe4   : > { %v240_v9 = vmul.f32 0.125, %v226_v8  ;;  %v251_v10 = vsel %vm250_vm1, %v242_v7, -inf }
  0xe5   : > { %252 = vmax.xlane.f32.xlu1 %v251_v10  ;;  %v746_v11 = vpop.f32.mrf.mxu0 }
  0xe6   : > { %v244_v12 = vsel %vm243_vm2, %v240_v9, -inf }
  0xe7   : > { %245 = vmax.xlane.f32.xlu0 %v244_v12  ;;  %v229_v13 = vpop.f32.mrf.mxu0 }
  0xe8   : > { %v241_v14 = vmul.f32 0.125, %v229_v13 }
  0xea   : > { %v247_v15 = vsel %vm243_vm2, %v241_v14, -inf }
  0xeb   : > { %248 = vmax.xlane.f32.xlu0 %v247_v15 }
 0x16e   : > { %v253_v16 = vpop.xlane.xlu1 %252 }
 0x16f   : > { %v256_v17 = vsub.f32 %v242_v7, %v253_v16 }
 0x170   : > { %v246_v18 = vpop.xlane.xlu0 %245 }
 0x171   : > { %v254_v19 = vsub.f32 %v240_v9, %v246_v18  ;;  %v261_v20 = vmul.f32 1.442695, %v256_v17 }
 0x173   : > { %v257_v21 = vmul.f32 1.442695, %v254_v19 }
 0x174   : > { %v249_v22 = vpop.xlane.xlu0 %248 }
 0x175   : > { %815 = vpow2.f32 %v257_v21  ;;  %v255_v23 = vsub.f32 %v241_v14, %v249_v22 }
 0x176   : > { %817 = vpow2.f32 %v261_v20 }
 0x177   : > { %v259_v24 = vmul.f32 1.442695, %v255_v23 }
 0x179   : > { %819 = vpow2.f32 %v259_v24 }
 0x182   : > { %v816_v25 = vpop.eup %815 }
 0x183   : > { %v263_v26 = vsel %vm243_vm2, %v816_v25, 0.0  ;;  %v818_v27 = vpop.eup %817 }
 0x184   : > { %264 = vadd.xlane.f32.xlu1 %v263_v26  ;;  %v269_v29 = vsel %vm250_vm1, %v818_v27, 0.0 }
 0x186   : > { %v820_v28 = vpop.eup %819 }
 0x187   : > { %v266_v30 = vsel %vm243_vm2, %v820_v28, 0.0 }
 0x188   : > { %270 = vadd.xlane.f32.xlu1 %v269_v29  ;;  %267 = vadd.xlane.f32.xlu0 %v266_v30 }
 0x199   : > { %400 = vrot.lane.b32.xlu1 %v808_v34, %s864_s14 }
 0x19d   : > { %388 = vrot.lane.b32.xlu1 %v809_v37, %s864_s14 }
 0x19e   : > { %402 = vrot.lane.b32.xlu0 %v807_v38, %s864_s14 }
 0x1a1   : > { %390 = vrot.lane.b32.xlu1 %v810_v39, %s864_s14 }
 0x20d   : > { %v265_v40 = vpop.xlane.xlu1 %264 }
 0x20e   : > { %821 = vrcp.f32 %v265_v40 }
 0x211   : > { %v271_v41 = vpop.xlane.xlu1 %270  ;;  %v268_v42 = vpop.xlane.xlu0 %267 }
 0x212   : > { %823 = vrcp.f32 %v271_v41 }
 0x213   : > { %825 = vrcp.f32 %v268_v42 }
 0x215   : > { %v403_v43 = vpop.permute.xlu0 %402  ;;  %v401_v45 = vpop.permute.xlu1 %400 }
 0x216   : > { %773 = vmatprep.subr.msk.bf16.mxu1 %vm179_vm0, %v403_v43  ;;  %v414_v53 = vsel %vm179_vm0, %v403_v43, 0  ;;  %v411_v55 = vsel %vm179_vm0, %v401_v45, 0 }
 0x219   : > { %v389_v54 = vpop.permute.xlu1 %388 }
 0x21b   : > { %v822_v44 = vpop.eup %821 }
 0x21c   : > { %v273_v49 = vmul.f32 %v822_v44, %v816_v25 }
 0x21d   : > { %v391_v56 = vpop.permute.xlu1 %390 }
 0x21f   : > { %v824_v46 = vpop.eup %823 }
 0x220   : > { %v826_v47 = vpop.eup %825  ;;  %v277_v48 = vmul.f32 %v824_v46, %v818_v27  ;;  %v814_v27 = vld [vmem:[%s899_s13 + $0x8] ss:$12 sps:$4 sm:$0xff]  }
 0x221   : > { %v275_v50 = vmul.f32 %v826_v47, %v820_v28  ;;  %v813_v28 = vld [vmem:[%s899_s13 + $0x20] ss:$0 sps:$4 sm:$0x11]  }
 0x222   : > { %v279_v51 = vpack.c.bf16 %v277_v48, %v277_v48 }
 0x223   : > { %v278_v52 = vpack.c.bf16 %v275_v50, %v273_v49 }
 0x225   : > { %751 = vmatprep.mubr.msk.bf16.mxu1 %vm243_vm2, %v278_v52 }
 0x226   : > { %752 = vmatmul.mubr.msk.bf16.vlgmr.msra.gmra.mxu1 %vm243_vm2, %v279_v51 }
 0x227   : > { %756 = vmatpush3.bf16.xpose.msra.mxu1 %v414_v53  ;;  %759 = vmatprep.mubr.msk.bf16.mxu1 %vm179_vm0, %v389_v54 }
 0x228   : > { %774 = vmatprep.subr.msk.bf16.mxu1 %vm179_vm0, %v401_v45 }
 0x22f   : > { %758 = vmatpush3.bf16.xpose.msra.mxu1 %v411_v55 }
 0x236   : > { %760 = vmatmul.mubr.msk.bf16.vlgmr.msra.gmra.mxu1 %vm179_vm0, %v391_v56 }
 0x2e6   : > { %v753_v57 = vpop.f32.mrf.mxu1 }
 0x2e7   : > { %v719_v59 = vpack.c.bf16 %v753_v57, %v753_v57 }
 0x2e8   : > { %v335_v60 = vpop.f32.mrf.mxu1 }
 0x2e9   : > { %v369_v61 = vsel %vm367_vm6, %v719_v59, %v368_v58  ;;  %v717_v62 = vpack.c.bf16 %v335_v60, %v335_v60 }
 0x2ea   : > { %370 = vst [vmem:[%s942_s18 + $0x8] sm:$0x1] %v369_v61  ;;  %v754_v63 = vpop.f32.mrf.mxu1 }
 0x2eb   : > { %363 = vst.msk [vmem:[%s942_s18] sm:$0xf] %vm362_vm7, %v717_v62 }
 0x2ec   : > { %v338_v0 = vpop.f32.mrf.mxu1 }
 0x2ed   : > { %v718_v1 = vpack.c.bf16 %v338_v0, %v338_v0 }
 0x2ef   : > { %364 = vst.msk [vmem:[%s942_s18 + $0x4] sm:$0xf] %vm362_vm7, %v718_v1 }
 0x2f1   : > { %v596_v50 = vld [vmem:[%s942_s18 + $0x8] sm:$0x1] }
 0x2f6   : > { %v761_v2 = vpop.f32.mrf.mxu1 }
 0x2f7   : > { %v466_v6 = vmul.f32 0.125, %v761_v2 }
 0x2f8   : > { %v450_v3 = vpop.f32.mrf.mxu1 }
 0x2f9   : > { %v464_v4 = vmul.f32 0.125, %v450_v3  ;;  %v473_v10 = vsel %vm250_vm1, %v466_v6, -inf }
 0x2fa   : > { %v762_v5 = vpop.f32.mrf.mxu1 }
 0x2fb   : > { %v467_v7 = vsel %vm243_vm2, %v464_v4, -inf }
 0x2fc   : > { %468 = vmax.xlane.f32.xlu0 %v467_v7  ;;  %v453_v8 = vpop.f32.mrf.mxu1 }
 0x2fd   : > { %v465_v9 = vmul.f32 0.125, %v453_v8 }
 0x2ff   : > { %v470_v11 = vsel %vm243_vm2, %v465_v9, -inf }
 0x300   : > { %474 = vmax.xlane.f32.xlu0 %v473_v10  ;;  %471 = vmax.xlane.f32.xlu1 %v470_v11 }
 0x385   : > { %v469_v12 = vpop.xlane.xlu0 %468 }
 0x386   : > { %v476_v13 = vsub.f32 %v464_v4, %v469_v12 }
 0x388   : > { %v479_v14 = vmul.f32 1.442695, %v476_v13 }
 0x389   : > { %v475_v15 = vpop.xlane.xlu0 %474  ;;  %v472_v16 = vpop.xlane.xlu1 %471 }
 0x38a   : > { %827 = vpow2.f32 %v479_v14  ;;  %v478_v17 = vsub.f32 %v466_v6, %v475_v15  ;;  %v477_v18 = vsub.f32 %v465_v9, %v472_v16 }
 0x38c   : > { %v483_v19 = vmul.f32 1.442695, %v478_v17  ;;  %v481_v20 = vmul.f32 1.442695, %v477_v18 }
 0x38e   : > { %829 = vpow2.f32 %v483_v19 }
 0x38f   : > { %831 = vpow2.f32 %v481_v20 }
 0x397   : > { %v828_v21 = vpop.eup %827 }
 0x398   : > { %v485_v22 = vsel %vm243_vm2, %v828_v21, 0.0 }
 0x399   : > { %486 = vadd.xlane.f32.xlu0 %v485_v22 }
 0x39b   : > { %v830_v23 = vpop.eup %829 }
 0x39c   : > { %v832_v24 = vpop.eup %831  ;;  %v491_v25 = vsel %vm250_vm1, %v830_v23, 0.0 }
 0x39d   : > { %492 = vadd.xlane.f32.xlu1 %v491_v25  ;;  %v488_v26 = vsel %vm243_vm2, %v832_v24, 0.0 }
 0x39e   : > { %489 = vadd.xlane.f32.xlu0 %v488_v26 }
 0x3ae   : > { %510 = vrot.lane.b32.xlu1 %v814_v27, %s864_s14 }
 0x3b4   : > { %512 = vrot.lane.b32.xlu0 %v813_v28, %s864_s14 }
 0x422   : > { %v487_v29 = vpop.xlane.xlu0 %486 }
 0x423   : > { %833 = vrcp.f32 %v487_v29 }
 0x426   : > { %v493_v30 = vpop.xlane.xlu1 %492 }
 0x427   : > { %v490_v31 = vpop.xlane.xlu0 %489  ;;  %835 = vrcp.f32 %v493_v30 }
 0x428   : > { %837 = vrcp.f32 %v490_v31 }
 0x42a   : > { %v511_v35 = vpop.permute.xlu1 %510 }
 0x42b   : > { %v513_v32 = vpop.permute.xlu0 %512 }
 0x42c   : > { %v522_v34 = vand.u32 %v513_v32, %v918_v33 }
 0x42e   : > { %763 = vmatprep.subr.bf16.mxu0 %v522_v34 }
 0x42f   : > { %764 = vmatpush3.bf16.msra.mxu0 %v522_v34 }
 0x430   : > { %765 = vmatprep.subr.bf16.mxu0 %v511_v35  ;;  %v834_v36 = vpop.eup %833 }
 0x431   : > { %v495_v40 = vmul.f32 %v834_v36, %v828_v21 }
 0x433   : > { %766 = vmatpush3.bf16.msra.mxu0 %v511_v35 }
 0x434   : > { %v836_v37 = vpop.eup %835 }
 0x435   : > { %v838_v38 = vpop.eup %837  ;;  %v499_v39 = vmul.f32 %v836_v37, %v830_v23 }
 0x436   : > { %v497_v41 = vmul.f32 %v838_v38, %v832_v24 }
 0x437   : > { %v501_v42 = vpack.c.bf16 %v499_v39, %v499_v39 }
 0x438   : > { %v500_v43 = vpack.c.bf16 %v497_v41, %v495_v40 }
 0x43a   : > { %767 = vmatprep.mubr.msk.bf16.mxu0 %vm243_vm2, %v500_v43 }
 0x43b   : > { %768 = vmatmul.mubr.msk.bf16.vlgmr.msra.gmra.mxu0 %vm243_vm2, %v501_v42 }
 0x4fb   : > { %v769_v33 = vpop.f32.mrf.mxu0 }
 0x4fc   : > { %v722_v44 = vpack.c.bf16 %v769_v33, %v769_v33 }
 0x4fd   : > { %v558_v45 = vpop.f32.mrf.mxu0 }
 0x4fe   : > { %586 = vrot.lane.b32.xlu1 %v722_v44, %s864_s14  ;;  %v720_v47 = vpack.c.bf16 %v558_v45, %v558_v45 }
 0x4ff   : > { %v770_v46 = vpop.f32.mrf.mxu0 }
 0x501   : > { %v561_v48 = vpop.f32.mrf.mxu0 }
 0x502   : > { %v721_v49 = vpack.c.bf16 %v561_v48, %v561_v48  ;;  %582 = vrot.lane.b32.xlu1 %v720_v47, %s864_s14 }
 0x504   : > { %584 = vrot.lane.b32.xlu0 %v721_v49, %s864_s14 }
 0x570   : > { %v587_v51 = vpop.permute.xlu1 %586 }
 0x571   : > { %v597_v52 = vsel %vm595_vm9, %v587_v51, %v596_v50 }
 0x572   : > { %598 = vst [vmem:[%s942_s18 + $0x8] sm:$0x1] %v597_v52 }
 0x574   : > { %v583_v53 = vpop.permute.xlu1 %582 }
 0x575   : > { %592 = vst.msk [vmem:[%s942_s18] sm:$0xf] %vm591_vm10, %v583_v53 }
 0x576   : > { %v585_v54 = vpop.permute.xlu0 %584 }
 0x577   : > { %593 = vst.msk [vmem:[%s942_s18 + $0x4] sm:$0xf] %vm591_vm10, %v585_v54 }
 0x578 PF: > { %s11_s8 = sadd.s32 1, %s861_s8   ;;  %s981_s6 = smov %s857_s7 }
 0x579   : > { %p8_p5 = scmp.ge.s32.totalorder %s11_s8, 4   ;;  %s982_s7 = smov %s984_s9 }
 0x57b   :  { %10 = sbr.rel (!%p8_p5) target bundleno = 2 (0x2), region = 54 }

// kernel: segmenter_forward.24
= control target key start
LH: loop header
LB: loop body
LE: loop exit
PB: predicated region body
PF: predicated region fallthrough
CT: control target
= control target key end

     0   :  { %v945_v60 = vmov 0   ;;  %s1337_s0 = inlined_call_operand.vmem [shape: bf16[40,128], index: 0, kind: input, shape index: {}]   ;;  %s1338_s3 = inlined_call_operand.vmem [shape: bf16[128,512], index: 3, kind: input, shape index: {}]   ;;  %s1339_s1 = inlined_call_operand.vmem [shape: f32[1,128], index: 1, kind: input, shape index: {}]   ;;  %s1340_s2 = inlined_call_operand.vmem [shape: f32[1,128], index: 2, kind: input, shape index: {}]   ;;  %s1341_s4 = inlined_call_operand.vmem [shape: f32[1,512], index: 4, kind: input, shape index: {}]   ;;  %s1342_s5 = inlined_call_operand.vmem [shape: bf16[40,512], index: 5, kind: output, shape index: {}]  }
   0x1   :  { %v824_v0 = vld [vmem:[%s1337_s0] sm:$0xff]   ;;  %v841_v1 = vld [vmem:[%s1337_s0 + $0x8] sm:$0xff]   ;;  %v29_v6 = vld [vmem:[%s1337_s0 + $0x10] sm:$0xf]  ;;  %408 = vmatprep.mubr.bf16.mxu0 %v945_v60  ;;  %469 = vmatprep.mubr.bf16.mxu1 %v945_v60 }
   0x2   :  { %v825_v2 = vunpack.c.l.bf16 %v824_v0  ;;  %v829_v3 = vunpack.c.l.bf16 %v841_v1  ;;  %v826_v4 = vunpack.c.h.bf16 %v824_v0  ;;  %v830_v5 = vunpack.c.h.bf16 %v841_v1  ;;  %v844_v28 = vld [vmem:[%s1338_s3 + $0xe4] ss:$16 sps:$4 sm:$0xff]   ;;  %v846_v29 = vld [vmem:[%s1338_s3 + $0xec] ss:$16 sps:$4 sm:$0xff]   ;;  %v848_v30 = vld [vmem:[%s1338_s3 + $0xe0] ss:$16 sps:$4 sm:$0xff]  }
   0x3   :  { %v34_v7 = vunpack.c.l.bf16 %v29_v6  ;;  %376 = vmatprep.subr.bf16.mxu0 %v844_v28  ;;  %v849_v31 = vld [vmem:[%s1338_s3 + $0xe8] ss:$16 sps:$4 sm:$0xff]   ;;  %437 = vmatprep.subr.bf16.mxu1 %v846_v29  ;;  %v850_v32 = vld [vmem:[%s1338_s3 + $0xc4] ss:$16 sps:$4 sm:$0xff]   ;;  %v852_v33 = vld [vmem:[%s1338_s3 + $0xcc] ss:$16 sps:$4 sm:$0xff]  }
   0x4   :  { %35 = vadd.xlane.f32.xlu0 %v825_v2  ;;  %39 = vadd.xlane.f32.xlu1 %v829_v3  ;;  %v854_v34 = vld [vmem:[%s1338_s3 + $0xc0] ss:$16 sps:$4 sm:$0xff]   ;;  %v855_v35 = vld [vmem:[%s1338_s3 + $0xc8] ss:$16 sps:$4 sm:$0xff]   ;;  %v856_v36 = vld [vmem:[%s1338_s3 + $0xa4] ss:$16 sps:$4 sm:$0xff]  }
   0x5   :  { %377 = vmatpush1.bf16.msra.mxu0 %v848_v30  ;;  %438 = vmatpush1.bf16.msra.mxu1 %v849_v31  ;;  %v858_v37 = vld [vmem:[%s1338_s3 + $0xac] ss:$16 sps:$4 sm:$0xff]   ;;  %v860_v38 = vld [vmem:[%s1338_s3 + $0xa0] ss:$16 sps:$4 sm:$0xff]   ;;  %v861_v39 = vld [vmem:[%s1338_s3 + $0xa8] ss:$16 sps:$4 sm:$0xff]  }
   0x6   :  { %378 = vmatprep.subr.bf16.mxu0 %v850_v32  ;;  %439 = vmatprep.subr.bf16.mxu1 %v852_v33  ;;  %v862_v40 = vld [vmem:[%s1338_s3 + $0x84] ss:$16 sps:$4 sm:$0xff]   ;;  %v864_v41 = vld [vmem:[%s1338_s3 + $0x8c] ss:$16 sps:$4 sm:$0xff]   ;;  %v866_v42 = vld [vmem:[%s1338_s3 + $0x80] ss:$16 sps:$4 sm:$0xff]  }
   0x7   :  { %v867_v43 = vld [vmem:[%s1338_s3 + $0x88] ss:$16 sps:$4 sm:$0xff]   ;;  %v868_v44 = vld [vmem:[%s1338_s3 + $0x64] ss:$16 sps:$4 sm:$0xff]   ;;  %v870_v45 = vld [vmem:[%s1338_s3 + $0x6c] ss:$16 sps:$4 sm:$0xff]  }
   0x8   :  { %37 = vadd.xlane.f32.xlu0 %v826_v4  ;;  %41 = vadd.xlane.f32.xlu1 %v830_v5  ;;  %v872_v46 = vld [vmem:[%s1338_s3 + $0x60] ss:$16 sps:$4 sm:$0xff]   ;;  %v873_v47 = vld [vmem:[%s1338_s3 + $0x68] ss:$16 sps:$4 sm:$0xff]   ;;  %v874_v48 = vld [vmem:[%s1338_s3 + $0x44] ss:$16 sps:$4 sm:$0xff]  }
   0x9   :  { %379 = vmatpush1.bf16.msra.mxu0 %v854_v34  ;;  %440 = vmatpush1.bf16.msra.mxu1 %v855_v35  ;;  %v876_v49 = vld [vmem:[%s1338_s3 + $0x4c] ss:$16 sps:$4 sm:$0xff]   ;;  %v878_v50 = vld [vmem:[%s1338_s3 + $0x40] ss:$16 sps:$4 sm:$0xff]   ;;  %v879_v51 = vld [vmem:[%s1338_s3 + $0x48] ss:$16 sps:$4 sm:$0xff]  }
   0xa   :  { %380 = vmatprep.subr.bf16.mxu0 %v856_v36  ;;  %441 = vmatprep.subr.bf16.mxu1 %v858_v37  ;;  %v880_v52 = vld [vmem:[%s1338_s3 + $0x24] ss:$16 sps:$4 sm:$0xff]   ;;  %v882_v53 = vld [vmem:[%s1338_s3 + $0x2c] ss:$16 sps:$4 sm:$0xff]   ;;  %v884_v54 = vld [vmem:[%s1338_s3 + $0x20] ss:$16 sps:$4 sm:$0xff]  }
   0xb   :  { %v885_v55 = vld [vmem:[%s1338_s3 + $0x28] ss:$16 sps:$4 sm:$0xff]   ;;  %v886_v56 = vld [vmem:[%s1338_s3 + $0x4] ss:$16 sps:$4 sm:$0xff]   ;;  %v888_v57 = vld [vmem:[%s1338_s3 + $0xc] ss:$16 sps:$4 sm:$0xff]  }
   0xc   :  { %43 = vadd.xlane.f32.xlu0 %v34_v7  ;;  %v890_v58 = vld [vmem:[%s1338_s3] ss:$16 sps:$4 sm:$0xff]   ;;  %v891_v59 = vld [vmem:[%s1338_s3 + $0x8] ss:$16 sps:$4 sm:$0xff]  }
   0xd   :  { %381 = vmatpush1.bf16.msra.mxu0 %v860_v38  ;;  %442 = vmatpush1.bf16.msra.mxu1 %v861_v39 }
   0xe   :  { %382 = vmatprep.subr.bf16.mxu0 %v862_v40  ;;  %443 = vmatprep.subr.bf16.mxu1 %v864_v41  ;;  %v180_v40 = vlaneseq }
  0x10   :  { %v181_v41 = vshrl.u32 %v180_v40, 7 }
  0x11   :  { %383 = vmatpush1.bf16.msra.mxu0 %v866_v42  ;;  %444 = vmatpush1.bf16.msra.mxu1 %v867_v43 }
  0x12   :  { %384 = vmatprep.subr.bf16.mxu0 %v868_v44  ;;  %445 = vmatprep.subr.bf16.mxu1 %v870_v45  ;;  %v182_v42 = vsub.s32 0, %v181_v41  ;;  %v190_v43 = vsub.s32 2, %v181_v41  ;;  %v178_v44 = vld [vmem:[%s1341_s4] sm:$0xf]  ;;  %v186_v45 = vsub.s32 1, %v181_v41 }
  0x15   :  { %385 = vmatpush1.bf16.msra.mxu0 %v872_v46  ;;  %446 = vmatpush1.bf16.msra.mxu1 %v873_v47  ;;  %v194_v46 = vsub.s32 3, %v181_v41  ;;  %v1121_v47 = vrot.slane %v178_v44, %v182_v42 }
  0x16   :  { %386 = vmatprep.subr.bf16.mxu0 %v874_v48  ;;  %447 = vmatprep.subr.bf16.mxu1 %v876_v49  ;;  %v1123_v48 = vrot.slane %v178_v44, %v190_v43 }
  0x19   :  { %387 = vmatpush1.bf16.msra.mxu0 %v878_v50  ;;  %448 = vmatpush1.bf16.msra.mxu1 %v879_v51  ;;  %v1125_v51 = vrot.slane %v178_v44, %v186_v45 }
  0x1a   :  { %388 = vmatprep.subr.bf16.mxu0 %v880_v52  ;;  %449 = vmatprep.subr.bf16.mxu1 %v882_v53  ;;  %v1127_v52 = vrot.slane %v178_v44, %v194_v46 }
  0x1d   :  { %389 = vmatpush1.bf16.msra.mxu0 %v884_v54  ;;  %450 = vmatpush1.bf16.msra.mxu1 %v885_v55 }
  0x1e   :  { %390 = vmatprep.subr.bf16.mxu0 %v886_v56  ;;  %451 = vmatprep.subr.bf16.mxu1 %v888_v57 }
  0x21   :  { %391 = vmatpush1.bf16.msra.mxu0 %v890_v58  ;;  %452 = vmatpush1.bf16.msra.mxu1 %v891_v59 }
  0x8d   :  { %v36_v8 = vpop.xlane.xlu0 %35  ;;  %v40_v9 = vpop.xlane.xlu1 %39 }
  0x8e   :  { %v46_v10 = vmul.f32 0.0078125, %v36_v8  ;;  %v48_v11 = vmul.f32 0.0078125, %v40_v9 }
  0x90   :  { %v985_v12 = vsub.f32 %v825_v2, %v46_v10  ;;  %v987_v13 = vsub.f32 %v829_v3, %v48_v11 }
  0x91   :  { %v38_v14 = vpop.xlane.xlu0 %37  ;;  %v42_v15 = vpop.xlane.xlu1 %41 }
  0x92   :  { %v47_v16 = vmul.f32 0.0078125, %v38_v14  ;;  %v56_v17 = vmul.f32 %v985_v12, %v985_v12  ;;  %v49_v18 = vmul.f32 0.0078125, %v42_v15  ;;  %v58_v21 = vmul.f32 %v987_v13, %v987_v13 }
  0x94   :  { %v991_v19 = vsub.f32 %v826_v4, %v47_v16  ;;  %61 = vadd.xlane.f32.xlu1 %v56_v17  ;;  %v993_v20 = vsub.f32 %v830_v5, %v49_v18  ;;  %v756_v16 = vld [vmem:[%s1339_s1] ss:$0 sm:$0xff] }
  0x95   :  { %v44_v22 = vpop.xlane.xlu0 %43 }
  0x96   :  { %v50_v23 = vmul.f32 0.0078125, %v44_v22  ;;  %v57_v24 = vmul.f32 %v991_v19, %v991_v19  ;;  %v59_v26 = vmul.f32 %v993_v20, %v993_v20 }
  0x98   :  { %v999_v25 = vsub.f32 %v34_v7, %v50_v23  ;;  %65 = vadd.xlane.f32.xlu1 %v58_v21  ;;  %63 = vadd.xlane.f32.xlu0 %v57_v24  ;;  %v757_v24 = vld [vmem:[%s1340_s2] ss:$0 sm:$0xff] }
  0x9a   :  { %v60_v27 = vmul.f32 %v999_v25, %v999_v25 }
  0x9c   :  { %67 = vadd.xlane.f32.xlu0 %v59_v26  ;;  %69 = vadd.xlane.f32.xlu1 %v60_v27 }
 0x11d   :  { %v62_v61 = vpop.xlane.xlu1 %61 }
 0x11e   :  { %v71_v62 = vmul.f32 0.0078125, %v62_v61 }
 0x120   :  { %v76_v63 = vadd.f32 1e-06, %v71_v62 }
 0x121   :  { %v66_v0 = vpop.xlane.xlu1 %65  ;;  %v64_v1 = vpop.xlane.xlu0 %63 }
 0x122   :  { %895 = vrsqrt.f32 %v76_v63  ;;  %v73_v2 = vmul.f32 0.0078125, %v66_v0  ;;  %v72_v3 = vmul.f32 0.0078125, %v64_v1 }
 0x124   :  { %v78_v4 = vadd.f32 1e-06, %v73_v2  ;;  %v77_v5 = vadd.f32 1e-06, %v72_v3 }
 0x125   :  { %v70_v6 = vpop.xlane.xlu1 %69  ;;  %v68_v7 = vpop.xlane.xlu0 %67 }
 0x126   :  { %897 = vrsqrt.f32 %v78_v4  ;;  %v75_v8 = vmul.f32 0.0078125, %v70_v6  ;;  %v74_v9 = vmul.f32 0.0078125, %v68_v7 }
 0x127   :  { %899 = vrsqrt.f32 %v77_v5 }
 0x128   :  { %v80_v10 = vadd.f32 1e-06, %v75_v8  ;;  %v79_v11 = vadd.f32 1e-06, %v74_v9 }
 0x12a   :  { %901 = vrsqrt.f32 %v80_v10 }
 0x12b   :  { %903 = vrsqrt.f32 %v79_v11 }
 0x12f   :  { %v896_v14 = vpop.eup %895 }
 0x130   :  { %v86_v15 = vmul.f32 %v896_v14, %v985_v12 }
 0x132   :  { %v98_v21 = vmul.f32 %v756_v16, %v86_v15 }
 0x133   :  { %v898_v17 = vpop.eup %897 }
 0x134   :  { %v900_v18 = vpop.eup %899  ;;  %v88_v22 = vmul.f32 %v898_v17, %v987_v13  ;;  %v110_v29 = vadd.f32 %v757_v24, %v98_v21 }
 0x135   :  { %v87_v23 = vmul.f32 %v900_v18, %v991_v19 }
 0x136   :  { %v100_v30 = vmul.f32 %v756_v16, %v88_v22 }
 0x137   :  { %v902_v26 = vpop.eup %901  ;;  %v99_v27 = vmul.f32 %v756_v16, %v87_v23 }
 0x138   :  { %v904_v28 = vpop.eup %903  ;;  %v90_v12 = vmul.f32 %v902_v26, %v999_v25  ;;  %v112_v36 = vadd.f32 %v757_v24, %v100_v30 }
 0x139   :  { %v111_v31 = vadd.f32 %v757_v24, %v99_v27  ;;  %v89_v32 = vmul.f32 %v904_v28, %v993_v20 }
 0x13a   :  { %v102_v33 = vmul.f32 %v756_v16, %v90_v12 }
 0x13b   :  { %v834_v34 = vpack.c.bf16 %v111_v31, %v110_v29  ;;  %v101_v35 = vmul.f32 %v756_v16, %v89_v32 }
 0x13c   :  { %v114_v13 = vadd.f32 %v757_v24, %v102_v33 }
 0x13d   :  { %835 = vst [vmem:[#allocation2] sm:$0xff] %v834_v34   ;;  %v113_v19 = vadd.f32 %v757_v24, %v101_v35 }
 0x13e   :  { %v812_v37 = vpack.c.bf16 %v114_v13, %v114_v13 }
 0x13f   :  { %v839_v38 = vpack.c.bf16 %v113_v19, %v112_v36 }
 0x140   :  { %140 = vst [vmem:[#allocation2 + $0x10] sm:$0xf] %v812_v37 }
 0x141   :  { %842 = vst [vmem:[#allocation2 + $0x8] sm:$0xff] %v839_v38  }
 0x144   :  { %v892_v39 = vld [vmem:[#allocation2] sm:$0xff]  }
 0x145   :  { %409 = vmatmul.mubr.bf16.vlgmr.msra.gmra.mxu0 %v892_v39  ;;  %470 = vmatmul.mubr.bf16.vlgmr.msra.gmra.mxu1 %v892_v39 }
 0x146   :  { %418 = vmatprep.mubr.bf16.mxu0 %v945_v60  ;;  %479 = vmatprep.mubr.bf16.mxu1 %v945_v60 }
 0x147   :  { %v894_v20 = vld [vmem:[#allocation2 + $0x10] ss:$0 sps:$4 sm:$0xff]  }
 0x148   :  { %v893_v25 = vld [vmem:[#allocation2 + $0x8] sm:$0xff]  }
 0x14d   :  { %419 = vmatmul.mubr.bf16.gmra.mxu0 %v893_v25  ;;  %480 = vmatmul.mubr.bf16.gmra.mxu1 %v893_v25 }
 0x14e   :  { %428 = vmatprep.mubr.bf16.mxu0 %v945_v60  ;;  %489 = vmatprep.mubr.bf16.mxu1 %v945_v60 }
 0x155   :  { %429 = vmatmul.mubr.bf16.gmra.mxu0 %v894_v20  ;;  %490 = vmatmul.mubr.bf16.gmra.mxu1 %v894_v20 }
 0x205   :  { %v410_v49 = vpop.f32.mrf.mxu0  ;;  %v471_v50 = vpop.f32.mrf.mxu1 }
 0x206   :  { %v1130_v53 = vadd.f32 %v410_v49, %v1121_v47  ;;  %v1133_v54 = vadd.f32 %v471_v50, %v1123_v48 }
 0x207   :  { %v412_v55 = vpop.f32.mrf.mxu0  ;;  %v473_v56 = vpop.f32.mrf.mxu1 }
 0x208   :  { %v518_v57 = vmul.f32 0.044715, %v1130_v53  ;;  %v520_v58 = vmul.f32 0.044715, %v1133_v54  ;;  %v1138_v59 = vadd.f32 %v412_v55, %v1125_v51  ;;  %v1141_v60 = vadd.f32 %v473_v56, %v1127_v52 }
 0x209   :  { %v414_v61 = vpop.f32.mrf.mxu0  ;;  %v475_v62 = vpop.f32.mrf.mxu1 }
 0x20a   :  { %v538_v63 = vmul.f32 %v518_v57, %v1130_v53  ;;  %v540_v0 = vmul.f32 %v520_v58, %v1133_v54  ;;  %v1146_v1 = vadd.f32 %v414_v61, %v1121_v47  ;;  %v1149_v2 = vadd.f32 %v475_v62, %v1123_v48 }
 0x20b   :  { %v519_v3 = vmul.f32 0.044715, %v1138_v59  ;;  %v521_v4 = vmul.f32 0.044715, %v1141_v60  ;;  %v416_v5 = vpop.f32.mrf.mxu0  ;;  %v477_v6 = vpop.f32.mrf.mxu1 }
 0x20c   :  { %v558_v7 = vmul.f32 %v538_v63, %v1130_v53  ;;  %v560_v8 = vmul.f32 %v540_v0, %v1133_v54  ;;  %v522_v9 = vmul.f32 0.044715, %v1146_v1  ;;  %v524_v14 = vmul.f32 0.044715, %v1149_v2 }
 0x20d   :  { %v539_v10 = vmul.f32 %v519_v3, %v1138_v59  ;;  %v541_v11 = vmul.f32 %v521_v4, %v1141_v60  ;;  %v420_v15 = vpop.f32.mrf.mxu0  ;;  %v481_v16 = vpop.f32.mrf.mxu1  ;;  %v1163_v22 = vadd.f32 %v416_v5, %v1125_v51  ;;  %v1169_v27 = vadd.f32 %v477_v6, %v1127_v52 }
 0x20e   :  { %v578_v17 = vadd.f32 %v558_v7, %v1130_v53  ;;  %v580_v18 = vadd.f32 %v560_v8, %v1133_v54  ;;  %v542_v21 = vmul.f32 %v522_v9, %v1146_v1  ;;  %v544_v26 = vmul.f32 %v524_v14, %v1149_v2 }
 0x20f   :  { %v559_v23 = vmul.f32 %v539_v10, %v1138_v59  ;;  %v561_v24 = vmul.f32 %v541_v11, %v1141_v60  ;;  %v422_v28 = vpop.f32.mrf.mxu0  ;;  %v483_v12 = vpop.f32.mrf.mxu1  ;;  %v523_v35 = vmul.f32 0.044715, %v1163_v22  ;;  %v525_v37 = vmul.f32 0.044715, %v1169_v27 }
 0x210   :  { %v598_v29 = vmul.f32 0.7978846, %v578_v17  ;;  %v600_v30 = vmul.f32 0.7978846, %v580_v18  ;;  %v562_v31 = vmul.f32 %v542_v21, %v1146_v1  ;;  %v564_v34 = vmul.f32 %v544_v26, %v1149_v2 }
 0x211   :  { %v579_v32 = vadd.f32 %v559_v23, %v1138_v59  ;;  %v581_v33 = vadd.f32 %v561_v24, %v1141_v60  ;;  %v424_v13 = vpop.f32.mrf.mxu0  ;;  %v485_v36 = vpop.f32.mrf.mxu1  ;;  %v543_v42 = vmul.f32 %v523_v35, %v1163_v22  ;;  %v545_v43 = vmul.f32 %v525_v37, %v1169_v27 }
 0x212   :  { %905 = vtanh.f32 %v598_v29  ;;  %v582_v19 = vadd.f32 %v562_v31, %v1146_v1  ;;  %v584_v25 = vadd.f32 %v564_v34, %v1149_v2  ;;  %v1186_v44 = vadd.f32 %v420_v15, %v1121_v47 }
 0x213   :  { %907 = vtanh.f32 %v600_v30  ;;  %v599_v38 = vmul.f32 0.7978846, %v579_v32  ;;  %v601_v39 = vmul.f32 0.7978846, %v581_v33  ;;  %v1179_v20 = vpop.f32.mrf.mxu0  ;;  %v1181_v40 = vpop.f32.mrf.mxu1  ;;  %v1189_v46 = vadd.f32 %v481_v16, %v1123_v48 }
 0x214   :  { %v602_v41 = vmul.f32 0.7978846, %v582_v19  ;;  %v604_v45 = vmul.f32 0.7978846, %v584_v25  ;;  %v1192_v49 = vadd.f32 %v422_v28, %v1125_v51  ;;  %v563_v56 = vmul.f32 %v543_v42, %v1163_v22 }
 0x215   :  { %909 = vtanh.f32 %v599_v38  ;;  %v1194_v50 = vpop.f32.mrf.mxu0  ;;  %v1196_v55 = vpop.f32.mrf.mxu1  ;;  %v565_v57 = vmul.f32 %v545_v43, %v1169_v27  ;;  %v526_v58 = vmul.f32 0.044715, %v1186_v44  ;;  %v528_v61 = vmul.f32 0.044715, %v1189_v46 }
 0x216   :  { %911 = vtanh.f32 %v601_v39  ;;  %v583_v0 = vadd.f32 %v563_v56, %v1163_v22  ;;  %v527_v6 = vmul.f32 0.044715, %v1192_v49  ;;  %v1212_v7 = vadd.f32 %v483_v12, %v1127_v52 }
 0x217   :  { %913 = vtanh.f32 %v602_v41  ;;  %v1202_v62 = vpop.f32.mrf.mxu0  ;;  %v1204_v63 = vpop.f32.mrf.mxu1  ;;  %v585_v3 = vadd.f32 %v565_v57, %v1169_v27  ;;  %v546_v4 = vmul.f32 %v526_v58, %v1186_v44  ;;  %v548_v5 = vmul.f32 %v528_v61, %v1189_v46 }
 0x218   :  { %915 = vtanh.f32 %v604_v45  ;;  %v603_v10 = vmul.f32 0.7978846, %v583_v0  ;;  %v1215_v14 = vadd.f32 %v424_v13, %v1121_v47  ;;  %v1218_v15 = vadd.f32 %v485_v36, %v1123_v48 }
 0x219   :  { %v434_v8 = vpop.f32.mrf.mxu0  ;;  %v495_v9 = vpop.f32.mrf.mxu1  ;;  %v605_v11 = vmul.f32 0.7978846, %v585_v3  ;;  %v498_v16 = vmul.f32 0.5, %v1130_v53  ;;  %v566_v17 = vmul.f32 %v546_v4, %v1186_v44  ;;  %v568_v18 = vmul.f32 %v548_v5, %v1189_v46 }
 0x21a   :  { %v547_v21 = vmul.f32 %v527_v6, %v1192_v49  ;;  %v500_v26 = vmul.f32 0.5, %v1133_v54  ;;  %917 = vtanh.f32 %v603_v10  ;;  %v529_v28 = vmul.f32 0.044715, %v1212_v7 }
 0x21b   :  { %v435_v23 = vpop.f32.mrf.mxu0  ;;  %v496_v24 = vpop.f32.mrf.mxu1  ;;  %v530_v12 = vmul.f32 0.044715, %v1215_v14  ;;  %919 = vtanh.f32 %v605_v11  ;;  %v586_v29 = vadd.f32 %v566_v17, %v1186_v44  ;;  %v588_v53 = vadd.f32 %v568_v18, %v1189_v46 }
 0x21c   :  { %v567_v30 = vmul.f32 %v547_v21, %v1192_v49  ;;  %v499_v31 = vmul.f32 0.5, %v1138_v59  ;;  %v549_v32 = vmul.f32 %v529_v28, %v1212_v7  ;;  %v532_v54 = vmul.f32 0.044715, %v1218_v15 }
 0x21d   :  { %v550_v33 = vmul.f32 %v530_v12, %v1215_v14  ;;  %v501_v35 = vmul.f32 0.5, %v1141_v60  ;;  %v606_v13 = vmul.f32 0.7978846, %v586_v29  ;;  %v608_v36 = vmul.f32 0.7978846, %v588_v53 }
 0x21e   :  { %v587_v19 = vadd.f32 %v567_v30, %v1192_v49  ;;  %v569_v39 = vmul.f32 %v549_v32, %v1212_v7  ;;  %v552_v59 = vmul.f32 %v532_v54, %v1218_v15  ;;  %v502_v41 = vmul.f32 0.5, %v1146_v1 }
 0x21f   :  { %v906_v34 = vpop.eup %905  ;;  %v570_v25 = vmul.f32 %v550_v33, %v1215_v14  ;;  %921 = vtanh.f32 %v606_v13  ;;  %v1242_v43 = vadd.f32 %v1179_v20, %v1125_v51  ;;  %v504_v0 = vmul.f32 0.5, %v1149_v2 }
 0x220   :  { %v908_v37 = vpop.eup %907  ;;  %v638_v38 = vadd.f32 1.0, %v906_v34  ;;  %v607_v42 = vmul.f32 0.7978846, %v587_v19  ;;  %923 = vtanh.f32 %v608_v36  ;;  %v589_v56 = vadd.f32 %v569_v39, %v1212_v7 }
 0x221   :  { %v640_v45 = vadd.f32 1.0, %v908_v37  ;;  %v590_v57 = vadd.f32 %v570_v25, %v1215_v14  ;;  %v572_v1 = vmul.f32 %v552_v59, %v1218_v15  ;;  %v1250_v20 = vadd.f32 %v1181_v40, %v1127_v52 }
 0x222   :  { %v910_v60 = vpop.eup %909  ;;  %925 = vtanh.f32 %v607_v42  ;;  %v658_v4 = vmul.f32 %v638_v38, %v498_v16  ;;  %v609_v6 = vmul.f32 0.7978846, %v589_v56  ;;  %v531_v17 = vmul.f32 0.044715, %v1242_v43 }
 0x223   :  { %v912_v58 = vpop.eup %911  ;;  %v639_v61 = vadd.f32 1.0, %v910_v60  ;;  %v592_v11 = vadd.f32 %v572_v1, %v1218_v15  ;;  %v660_v18 = vmul.f32 %v640_v45, %v500_v26  ;;  %v610_v21 = vmul.f32 0.7978846, %v590_v57 }
 0x224   :  { %v914_v3 = vpop.eup %913  ;;  %v641_v5 = vadd.f32 1.0, %v912_v58  ;;  %927 = vtanh.f32 %v609_v6  ;;  %v503_v16 = vmul.f32 0.5, %v1163_v22  ;;  %v505_v40 = vmul.f32 0.5, %v1169_v27 }
 0x225   :  { %v916_v8 = vpop.eup %915  ;;  %v659_v9 = vmul.f32 %v639_v61, %v499_v31  ;;  %v642_v10 = vadd.f32 1.0, %v914_v3  ;;  %v612_v28 = vmul.f32 0.7978846, %v592_v11  ;;  %v551_v29 = vmul.f32 %v531_v17, %v1242_v43 }
 0x226   :  { %v661_v2 = vmul.f32 %v641_v5, %v501_v35  ;;  %v644_v24 = vadd.f32 1.0, %v916_v8  ;;  %v533_v53 = vmul.f32 0.044715, %v1250_v20  ;;  %v1263_v31 = vadd.f32 %v1194_v50, %v1121_v47 }
 0x227   :  { %v813_v23 = vpack.c.bf16 %v659_v9, %v658_v4  ;;  %v918_v30 = vpop.eup %917  ;;  %v662_v26 = vmul.f32 %v642_v10, %v502_v41  ;;  %v1267_v22 = vadd.f32 %v1196_v55, %v1123_v48  ;;  %v1271_v27 = vadd.f32 %v1202_v62, %v1125_v51 }
 0x228   :  { %v814_v12 = vpack.c.bf16 %v661_v2, %v660_v18  ;;  %v920_v32 = vpop.eup %919  ;;  %v643_v33 = vadd.f32 1.0, %v918_v30  ;;  %929 = vtanh.f32 %v610_v21  ;;  %v571_v54 = vmul.f32 %v551_v29, %v1242_v43 }
 0x229   :  { %742 = vst [vmem:[%s1342_s5] sm:$0xff] %v813_v23  ;;  %v553_v47 = vmul.f32 %v533_v53, %v1250_v20  ;;  %v664_v50 = vmul.f32 %v644_v24, %v504_v0  ;;  %v645_v34 = vadd.f32 1.0, %v920_v32  ;;  %931 = vtanh.f32 %v612_v28 }
 0x22a   :  { %743 = vst [vmem:[%s1342_s5 + $0x8] sm:$0xff] %v814_v12  ;;  %v534_v48 = vmul.f32 0.044715, %v1263_v31  ;;  %v663_v55 = vmul.f32 %v643_v33, %v503_v16  ;;  %v591_v51 = vadd.f32 %v571_v54, %v1242_v43  ;;  %v536_v35 = vmul.f32 0.044715, %v1267_v22 }
 0x22b   :  { %v573_v62 = vmul.f32 %v553_v47, %v1250_v20  ;;  %v665_v13 = vmul.f32 %v645_v34, %v505_v40  ;;  %v535_v19 = vmul.f32 0.044715, %v1271_v27  ;;  %v1286_v37 = vadd.f32 %v1204_v63, %v1127_v52 }
 0x22c   :  { %v554_v36 = vmul.f32 %v534_v48, %v1263_v31  ;;  %v922_v38 = vpop.eup %921  ;;  %v815_v39 = vpack.c.bf16 %v663_v55, %v662_v26  ;;  %v611_v25 = vmul.f32 0.7978846, %v591_v51  ;;  %v556_v41 = vmul.f32 %v536_v35, %v1267_v22 }
 0x22d   :  { %v593_v59 = vadd.f32 %v573_v62, %v1250_v20  ;;  %v924_v42 = vpop.eup %923  ;;  %v816_v60 = vpack.c.bf16 %v665_v13, %v664_v50  ;;  %v646_v45 = vadd.f32 1.0, %v922_v38  ;;  %v555_v57 = vmul.f32 %v535_v19, %v1271_v27 }
 0x22e   :  { %v574_v56 = vmul.f32 %v554_v36, %v1263_v31  ;;  %744 = vst [vmem:[%s1342_s5 + $0x10] sm:$0xff] %v815_v39  ;;  %v506_v52 = vmul.f32 0.5, %v1186_v44  ;;  %933 = vtanh.f32 %v611_v25  ;;  %v576_v61 = vmul.f32 %v556_v41, %v1267_v22 }
 0x22f   :  { %v926_v58 = vpop.eup %925  ;;  %v613_v63 = vmul.f32 0.7978846, %v593_v59  ;;  %745 = vst [vmem:[%s1342_s5 + $0x18] sm:$0xff] %v816_v60  ;;  %v507_v0 = vmul.f32 0.5, %v1192_v49  ;;  %v575_v4 = vmul.f32 %v555_v57, %v1271_v27  ;;  %v648_v6 = vadd.f32 1.0, %v924_v42 }
 0x230   :  { %v647_v1 = vadd.f32 1.0, %v926_v58  ;;  %v594_v3 = vadd.f32 %v574_v56, %v1263_v31  ;;  %v666_v5 = vmul.f32 %v646_v45, %v506_v52  ;;  %v596_v44 = vadd.f32 %v576_v61, %v1267_v22 }
 0x231   :  { %935 = vtanh.f32 %v613_v63  ;;  %v928_v8 = vpop.eup %927  ;;  %v595_v11 = vadd.f32 %v575_v4, %v1271_v27  ;;  %v537_v17 = vmul.f32 0.044715, %v1286_v37  ;;  %v508_v18 = vmul.f32 0.5, %v1189_v46 }
 0x232   :  { %v667_v9 = vmul.f32 %v647_v1, %v507_v0  ;;  %v614_v10 = vmul.f32 0.7978846, %v594_v3  ;;  %v509_v49 = vmul.f32 0.5, %v1212_v7  ;;  %v649_v2 = vadd.f32 1.0, %v928_v8 }
 0x233   :  { %v615_v23 = vmul.f32 0.7978846, %v595_v11  ;;  %v668_v24 = vmul.f32 %v648_v6, %v508_v18  ;;  %v616_v28 = vmul.f32 0.7978846, %v596_v44  ;;  %v557_v12 = vmul.f32 %v537_v17, %v1286_v37 }
 0x234   :  { %v817_v21 = vpack.c.bf16 %v667_v9, %v666_v5  ;;  %937 = vtanh.f32 %v614_v10  ;;  %v669_v16 = vmul.f32 %v649_v2, %v509_v49  ;;  %v510_v33 = vmul.f32 0.5, %v1215_v14 }
 0x235   :  { %v930_v40 = vpop.eup %929  ;;  %939 = vtanh.f32 %v615_v23  ;;  %v577_v46 = vmul.f32 %v557_v12, %v1286_v37  ;;  %v511_v47 = vmul.f32 0.5, %v1242_v43  ;;  %v512_v48 = vmul.f32 0.5, %v1218_v15 }
 0x236   :  { %746 = vst [vmem:[%s1342_s5 + $0x20] sm:$0xff] %v817_v21  ;;  %v932_v29 = vpop.eup %931  ;;  %v818_v53 = vpack.c.bf16 %v669_v16, %v668_v24  ;;  %941 = vtanh.f32 %v616_v28  ;;  %v650_v30 = vadd.f32 1.0, %v930_v40  ;;  %v513_v62 = vmul.f32 0.5, %v1250_v20 }
 0x237   :  { %v597_v7 = vadd.f32 %v577_v46, %v1286_v37  ;;  %v652_v54 = vadd.f32 1.0, %v932_v29  ;;  %v514_v43 = vmul.f32 0.5, %v1263_v31  ;;  %v515_v15 = vmul.f32 0.5, %v1271_v27 }
 0x238   :  { %747 = vst [vmem:[%s1342_s5 + $0x28] sm:$0xff] %v818_v53  ;;  %v670_v55 = vmul.f32 %v650_v30, %v510_v33  ;;  %v516_v57 = vmul.f32 0.5, %v1267_v22  ;;  %v517_v31 = vmul.f32 0.5, %v1286_v37 }
 0x239   :  { %v617_v26 = vmul.f32 0.7978846, %v597_v7  ;;  %v672_v36 = vmul.f32 %v652_v54, %v512_v48 }
 0x23b   :  { %v934_v32 = vpop.eup %933  ;;  %943 = vtanh.f32 %v617_v26 }
 0x23c   :  { %v651_v50 = vadd.f32 1.0, %v934_v32 }
 0x23e   :  { %v936_v34 = vpop.eup %935  ;;  %v671_v51 = vmul.f32 %v651_v50, %v511_v47 }
 0x23f   :  { %v653_v35 = vadd.f32 1.0, %v936_v34 }
 0x240   :  { %v819_v19 = vpack.c.bf16 %v671_v51, %v670_v55 }
 0x241   :  { %v938_v13 = vpop.eup %937  ;;  %v673_v38 = vmul.f32 %v653_v35, %v513_v62 }
 0x242   :  { %v654_v39 = vadd.f32 1.0, %v938_v13  ;;  %v940_v25 = vpop.eup %939  ;;  %748 = vst [vmem:[%s1342_s5 + $0x30] sm:$0xff] %v819_v19 }
 0x243   :  { %v820_v14 = vpack.c.bf16 %v673_v38, %v672_v36  ;;  %v655_v59 = vadd.f32 1.0, %v940_v25  ;;  %v942_v20 = vpop.eup %941 }
 0x244   :  { %v674_v41 = vmul.f32 %v654_v39, %v514_v43  ;;  %v656_v45 = vadd.f32 1.0, %v942_v20 }
 0x245   :  { %749 = vst [vmem:[%s1342_s5 + $0x38] sm:$0xff] %v820_v14  ;;  %v675_v42 = vmul.f32 %v655_v59, %v515_v15 }
 0x246   :  { %v676_v58 = vmul.f32 %v656_v45, %v516_v57 }
 0x247   :  { %v821_v60 = vpack.c.bf16 %v675_v42, %v674_v41 }
 0x248   :  { %v944_v56 = vpop.eup %943 }
 0x249   :  { %750 = vst [vmem:[%s1342_s5 + $0x40] sm:$0xff] %v821_v60  ;;  %v657_v27 = vadd.f32 1.0, %v944_v56 }
 0x24b   :  { %v677_v52 = vmul.f32 %v657_v27, %v517_v31 }
 0x24d   :  { %v822_v63 = vpack.c.bf16 %v677_v52, %v676_v58 }
 0x24f   :  { %751 = vst [vmem:[%s1342_s5 + $0x48] sm:$0xff] %v822_v63 }

// kernel: segmenter_forward.31
= control target key start
LH: loop header
LB: loop body
LE: loop exit
PB: predicated region body
PF: predicated region fallthrough
CT: control target
= control target key end

     0   :  { %s473_s0 = inlined_call_operand.vmem [shape: bf16[32,128], index: 0, kind: input, shape index: {}]   ;;  %s474_s3 = inlined_call_operand.vmem [shape: bf16[128,128], index: 3, kind: input, shape index: {}]   ;;  %s475_s1 = inlined_call_operand.vmem [shape: f32[1,128], index: 1, kind: input, shape index: {}]   ;;  %s476_s2 = inlined_call_operand.vmem [shape: f32[1,128], index: 2, kind: input, shape index: {}]   ;;  %s477_s4 = inlined_call_operand.vmem [shape: f32[1,128], index: 4, kind: input, shape index: {}]   ;;  %s478_s5 = inlined_call_operand.vmem [shape: bf16[32,128], index: 5, kind: output, shape index: {}]  }
   0x1   :  { %v310_v0 = vld [vmem:[%s473_s0] sm:$0xff]   ;;  %v337_v1 = vld [vmem:[%s473_s0 + $0x8] sm:$0xff]   ;;  %v370_v22 = vld [vmem:[%s474_s3 + $0x38] sm:$0xff]  }
   0x2   :  { %v311_v2 = vunpack.c.l.bf16 %v310_v0  ;;  %v315_v3 = vunpack.c.l.bf16 %v337_v1  ;;  %v312_v4 = vunpack.c.h.bf16 %v310_v0  ;;  %v316_v5 = vunpack.c.h.bf16 %v337_v1  ;;  %350 = vmatprep.subr.bf16.mxu0 %v370_v22  ;;  %v371_v23 = vld [vmem:[%s474_s3 + $0x30] sm:$0xff]   ;;  %v372_v24 = vld [vmem:[%s474_s3 + $0x28] sm:$0xff]   ;;  %v373_v25 = vld [vmem:[%s474_s3 + $0x20] sm:$0xff]  }
   0x3   :  { %351 = vmatpush3.bf16.msra.mxu0 %v370_v22  ;;  %v374_v26 = vld [vmem:[%s474_s3 + $0x18] sm:$0xff]   ;;  %v375_v27 = vld [vmem:[%s474_s3 + $0x10] sm:$0xff]   ;;  %v376_v28 = vld [vmem:[%s474_s3 + $0x8] sm:$0xff]  }
   0x4   :  { %33 = vadd.xlane.f32.xlu0 %v311_v2  ;;  %37 = vadd.xlane.f32.xlu1 %v315_v3  ;;  %v377_v29 = vld [vmem:[%s474_s3] sm:$0xff]  }
   0x5   :  { %352 = vmatprep.subr.bf16.mxu0 %v371_v23  ;;  %v280_v44 = vld [vmem:[%s475_s1] ss:$0 sm:$0xff] }
   0x6   :  { %v281_v49 = vld [vmem:[%s476_s2] ss:$0 sm:$0xff] }
   0x7   :  { %353 = vmatpush3.bf16.msra.mxu0 %v371_v23  ;;  %v286_v1 = vld [vmem:[%s477_s4] ss:$0 sm:$0xff] }
   0x8   :  { %35 = vadd.xlane.f32.xlu0 %v312_v4  ;;  %39 = vadd.xlane.f32.xlu1 %v316_v5 }
   0x9   :  { %354 = vmatprep.subr.bf16.mxu0 %v372_v24 }
   0xb   :  { %355 = vmatpush3.bf16.msra.mxu0 %v372_v24 }
   0xc   :  { %356 = vmatprep.subr.bf16.mxu0 %v373_v25 }
   0xf   :  { %357 = vmatpush3.bf16.msra.mxu0 %v373_v25 }
  0x10   :  { %358 = vmatprep.subr.bf16.mxu0 %v374_v26 }
  0x13   :  { %359 = vmatpush3.bf16.msra.mxu0 %v374_v26 }
  0x14   :  { %360 = vmatprep.subr.bf16.mxu0 %v375_v27 }
  0x17   :  { %361 = vmatpush3.bf16.msra.mxu0 %v375_v27 }
  0x18   :  { %362 = vmatprep.subr.bf16.mxu0 %v376_v28 }
  0x1b   :  { %363 = vmatpush3.bf16.msra.mxu0 %v376_v28 }
  0x1c   :  { %364 = vmatprep.subr.bf16.mxu0 %v377_v29 }
  0x1f   :  { %365 = vmatpush3.bf16.msra.mxu0 %v377_v29 }
  0x8d   :  { %v34_v6 = vpop.xlane.xlu0 %33  ;;  %v38_v7 = vpop.xlane.xlu1 %37 }
  0x8e   :  { %v42_v8 = vmul.f32 0.0078125, %v34_v6  ;;  %v44_v9 = vmul.f32 0.0078125, %v38_v7 }
  0x90   :  { %v46_v10 = vsub.f32 %v311_v2, %v42_v8  ;;  %v424_v11 = vsub.f32 %v315_v3, %v44_v9 }
  0x91   :  { %v36_v12 = vpop.xlane.xlu0 %35  ;;  %v40_v13 = vpop.xlane.xlu1 %39 }
  0x92   :  { %v43_v14 = vmul.f32 0.0078125, %v36_v12  ;;  %v50_v15 = vmul.f32 %v46_v10, %v46_v10  ;;  %v45_v16 = vmul.f32 0.0078125, %v40_v13  ;;  %v52_v19 = vmul.f32 %v424_v11, %v424_v11 }
  0x94   :  { %v47_v17 = vsub.f32 %v312_v4, %v43_v14  ;;  %54 = vadd.xlane.f32.xlu0 %v50_v15  ;;  %v426_v18 = vsub.f32 %v316_v5, %v45_v16 }
  0x96   :  { %v51_v20 = vmul.f32 %v47_v17, %v47_v17  ;;  %v53_v21 = vmul.f32 %v426_v18, %v426_v18 }
  0x98   :  { %58 = vadd.xlane.f32.xlu0 %v52_v19  ;;  %56 = vadd.xlane.f32.xlu1 %v51_v20 }
  0x9c   :  { %60 = vadd.xlane.f32.xlu1 %v53_v21 }
 0x11d   :  { %v55_v30 = vpop.xlane.xlu0 %54 }
 0x11e   :  { %v62_v31 = vmul.f32 0.0078125, %v55_v30 }
 0x120   :  { %v66_v32 = vadd.f32 1e-06, %v62_v31 }
 0x121   :  { %v57_v33 = vpop.xlane.xlu1 %56  ;;  %v59_v34 = vpop.xlane.xlu0 %58 }
 0x122   :  { %380 = vrsqrt.f32 %v66_v32  ;;  %v63_v35 = vmul.f32 0.0078125, %v57_v33  ;;  %v64_v36 = vmul.f32 0.0078125, %v59_v34 }
 0x124   :  { %v67_v37 = vadd.f32 1e-06, %v63_v35  ;;  %v68_v38 = vadd.f32 1e-06, %v64_v36 }
 0x125   :  { %v61_v39 = vpop.xlane.xlu1 %60 }
 0x126   :  { %382 = vrsqrt.f32 %v67_v37  ;;  %v65_v40 = vmul.f32 0.0078125, %v61_v39 }
 0x127   :  { %384 = vrsqrt.f32 %v68_v38 }
 0x128   :  { %v69_v41 = vadd.f32 1e-06, %v65_v40 }
 0x12a   :  { %386 = vrsqrt.f32 %v69_v41 }
 0x12f   :  { %v381_v42 = vpop.eup %380 }
 0x130   :  { %v74_v43 = vmul.f32 %v381_v42, %v46_v10 }
 0x132   :  { %v85_v47 = vmul.f32 %v280_v44, %v74_v43 }
 0x133   :  { %v383_v45 = vpop.eup %382 }
 0x134   :  { %v385_v46 = vpop.eup %384  ;;  %v75_v48 = vmul.f32 %v383_v45, %v47_v17  ;;  %v96_v53 = vadd.f32 %v281_v49, %v85_v47 }
 0x135   :  { %v76_v50 = vmul.f32 %v385_v46, %v424_v11 }
 0x136   :  { %v86_v51 = vmul.f32 %v280_v44, %v75_v48 }
 0x137   :  { %v387_v52 = vpop.eup %386  ;;  %v87_v55 = vmul.f32 %v280_v44, %v76_v50 }
 0x138   :  { %v97_v54 = vadd.f32 %v281_v49, %v86_v51  ;;  %v77_v56 = vmul.f32 %v387_v52, %v426_v18 }
 0x139   :  { %v98_v59 = vadd.f32 %v281_v49, %v87_v55 }
 0x13a   :  { %v320_v57 = vpack.c.bf16 %v97_v54, %v96_v53  ;;  %v88_v58 = vmul.f32 %v280_v44, %v77_v56 }
 0x13c   :  { %321 = vst [vmem:[#allocation2] sm:$0xff] %v320_v57   ;;  %v99_v60 = vadd.f32 %v281_v49, %v88_v58 }
 0x13e   :  { %v325_v61 = vpack.c.bf16 %v99_v60, %v98_v59 }
 0x140   :  { %338 = vst [vmem:[#allocation2 + $0x8] sm:$0xff] %v325_v61  }
 0x143   :  { %v378_v62 = vld [vmem:[#allocation2] sm:$0xff]  }
 0x144   :  { %366 = vmatprep.mubr.bf16.mxu0 %v378_v62 }
 0x147   :  { %v379_v63 = vld [vmem:[#allocation2 + $0x8] sm:$0xff]  }
 0x148   :  { %367 = vmatmul.mubr.bf16.vlgmr.msra.gmra.mxu0 %v379_v63 }
 0x208   :  { %v368_v0 = vpop.f32.mrf.mxu0 }
 0x209   :  { %v250_v4 = vadd.f32 %v368_v0, %v286_v1 }
 0x20a   :  { %v241_v2 = vpop.f32.mrf.mxu0 }
 0x20b   :  { %v242_v7 = vadd.f32 %v286_v1, %v241_v2 }
 0x20c   :  { %v369_v3 = vpop.f32.mrf.mxu0 }
 0x20d   :  { %v253_v5 = vadd.f32 %v369_v3, %v286_v1 }
 0x20e   :  { %v244_v6 = vpop.f32.mrf.mxu0 }
 0x20f   :  { %v335_v8 = vpack.c.bf16 %v253_v5, %v250_v4  ;;  %v245_v9 = vadd.f32 %v286_v1, %v244_v6 }
 0x211   :  { %339 = vst [vmem:[%s478_s5 + $0x8] sm:$0xff] %v335_v8   ;;  %v330_v10 = vpack.c.bf16 %v245_v9, %v242_v7 }
 0x213   :  { %331 = vst [vmem:[%s478_s5] sm:$0xff] %v330_v10  }

// kernel: segmenter_forward.38
= control target key start
LH: loop header
LB: loop body
LE: loop exit
PB: predicated region body
PF: predicated region fallthrough
CT: control target
= control target key end

     0   :  { %v227_v7 = vmov 0.0   ;;  %vm228_vm0 = vmmov 0   ;;  %s298_s0 = inlined_call_operand.vmem [shape: bf16[8,128], index: 0, kind: input, shape index: {}]   ;;  %s299_s3 = inlined_call_operand.vmem [shape: bf16[128,128], index: 3, kind: input, shape index: {}]   ;;  %s300_s1 = inlined_call_operand.vmem [shape: f32[1,128], index: 1, kind: input, shape index: {}]   ;;  %s301_s2 = inlined_call_operand.vmem [shape: f32[1,128], index: 2, kind: input, shape index: {}]   ;;  %s302_s4 = inlined_call_operand.vmem [shape: f32[1,128], index: 4, kind: input, shape index: {}]   ;;  %s303_s5 = inlined_call_operand.vmem [shape: bf16[8,128], index: 5, kind: output, shape index: {}]  }
   0x1   :  { %v25_v0 = vld [vmem:[%s298_s0] sm:$0xf]  ;;  %v217_v6 = vld [vmem:[%s299_s3 + $0x38] sm:$0xff]   ;;  %195 = vmatprep.subr.bf16.mxu0 %v227_v7  ;;  %v218_v8 = vld [vmem:[%s299_s3 + $0x30] sm:$0xff]   ;;  %211 = vmatprep.mubr.msk.bf16.mxu0 %vm228_vm0, %v227_v7 }
   0x2   :  { %v26_v1 = vunpack.c.l.bf16 %v25_v0  ;;  %196 = vmatpush3.bf16.msra.mxu0 %v217_v6  ;;  %v219_v9 = vld [vmem:[%s299_s3 + $0x28] sm:$0xff]   ;;  %v220_v10 = vld [vmem:[%s299_s3 + $0x20] sm:$0xff]   ;;  %v221_v11 = vld [vmem:[%s299_s3 + $0x18] sm:$0xff]  }
   0x3   :  { %197 = vmatprep.subr.bf16.mxu0 %v227_v7  ;;  %v222_v12 = vld [vmem:[%s299_s3 + $0x10] sm:$0xff]   ;;  %v223_v13 = vld [vmem:[%s299_s3 + $0x8] sm:$0xff]   ;;  %v224_v14 = vld [vmem:[%s299_s3] sm:$0xff]  }
   0x4   :  { %27 = vadd.xlane.f32.xlu0 %v26_v1  ;;  %v175_v19 = vld [vmem:[%s300_s1] ss:$0 sm:$0xff] }
   0x5   :  { %v176_v21 = vld [vmem:[%s301_s2] ss:$0 sm:$0xff] }
   0x6   :  { %198 = vmatpush3.bf16.msra.mxu0 %v218_v8  ;;  %v177_v26 = vld [vmem:[%s302_s4] ss:$0 sm:$0xff] }
   0x7   :  { %199 = vmatprep.subr.bf16.mxu0 %v227_v7 }
   0xa   :  { %200 = vmatpush3.bf16.msra.mxu0 %v219_v9 }
   0xb   :  { %201 = vmatprep.subr.bf16.mxu0 %v227_v7 }
   0xe   :  { %202 = vmatpush3.bf16.msra.mxu0 %v220_v10 }
   0xf   :  { %203 = vmatprep.subr.bf16.mxu0 %v227_v7 }
  0x12   :  { %204 = vmatpush3.bf16.msra.mxu0 %v221_v11 }
  0x13   :  { %205 = vmatprep.subr.bf16.mxu0 %v227_v7 }
  0x16   :  { %206 = vmatpush3.bf16.msra.mxu0 %v222_v12 }
  0x17   :  { %207 = vmatprep.subr.bf16.mxu0 %v227_v7 }
  0x1a   :  { %208 = vmatpush3.bf16.msra.mxu0 %v223_v13 }
  0x1b   :  { %209 = vmatprep.subr.bf16.mxu0 %v227_v7 }
  0x1e   :  { %210 = vmatpush3.bf16.msra.mxu0 %v224_v14 }
  0x8d   :  { %v28_v2 = vpop.xlane.xlu0 %27 }
  0x8e   :  { %v30_v3 = vmul.f32 0.0078125, %v28_v2 }
  0x90   :  { %v31_v4 = vsub.f32 %v26_v1, %v30_v3 }
  0x92   :  { %v32_v5 = vmul.f32 %v31_v4, %v31_v4 }
  0x94   :  { %33 = vadd.xlane.f32.xlu0 %v32_v5 }
 0x11d   :  { %v34_v15 = vpop.xlane.xlu0 %33 }
 0x11e   :  { %v35_v16 = vmul.f32 0.0078125, %v34_v15 }
 0x120   :  { %v36_v17 = vadd.f32 1e-06, %v35_v16 }
 0x122   :  { %225 = vrsqrt.f32 %v36_v17 }
 0x12f   :  { %v226_v18 = vpop.eup %225 }
 0x130   :  { %v38_v20 = vmul.f32 %v226_v18, %v31_v4 }
 0x132   :  { %v46_v22 = vmul.f32 %v175_v19, %v38_v20 }
 0x134   :  { %v54_v23 = vadd.f32 %v176_v21, %v46_v22 }
 0x136   :  { %v55_v24 = vpack.c.bf16 %v54_v23, %v54_v23 }
 0x138   :  { %56 = vst [vmem:[#allocation2] sm:$0xf] %v55_v24 }
 0x13f   :  { %v57_v25 = vld [vmem:[#allocation2] sm:$0xf] }
 0x140   :  { %212 = vmatmul.mubr.bf16.vlgmr.msra.gmra.mxu0 %v57_v25 }
 0x200   :  { %v163_v27 = vpop.f32.mrf.mxu0 }
 0x201   :  { %v164_v28 = vadd.f32 %v177_v26, %v163_v27 }
 0x202   :  { %v213_v29 = vpop.f32.mrf.mxu0 }
 0x203   :  { %v169_v30 = vpack.c.bf16 %v164_v28, %v164_v28 }
 0x204   :  { %v166_v31 = vpop.f32.mrf.mxu0 }
 0x205   :  { %170 = vst [vmem:[%s303_s5] sm:$0xf] %v169_v30 }
 0x206   :  { %v214_v32 = vpop.f32.mrf.mxu0 }

// kernel: segmenter_forward.33
= control target key start
LH: loop header
LB: loop body
LE: loop exit
PB: predicated region body
PF: predicated region fallthrough
CT: control target
= control target key end

     0   :  { %s866_s6 = smov 0   ;;  %s868_s7 = smov 0   ;;  %s966_s0 = inlined_call_operand.vmem [shape: bf16[2,20,384], index: 0, kind: input, shape index: {}]   ;;  %s967_s1 = inlined_call_operand.vmem [shape: bf16[2,20,128], index: 1, kind: output, shape index: {}]  }
   0x1   :  { %s870_s8 = smov 0  }
   0x2 LB: > { %s23_s9 = sadd.s32 1, %s849_s7  ;;  %p677_p0 = scmp.ge.s32.totalorder %s853_s8, 1  ;;  %s853_s8 = sphi %s870_s8, %s11_s8   ;;  %s849_s7 = sphi %s868_s7, %s969_s7   ;;  %s845_s6 = sphi %s866_s6, %s968_s6  }
   0x3   : > { %p25_p1 = scmp.ge.s32.totalorder %s23_s9, 2  ;;  %p108_p2 = scmp.lt.s32.totalorder %s853_s8, 3 }
   0x5   : > { %s971_s9 = smov (%p25_p1, %s23_s9), 0  ;;  %p109_p3 = pnand %p677_p0, %p108_p2 }
   0x6   : > { %p136_p4 = scmp.lt.s32.totalorder (!%p109_p3), %s845_s6, 1  ;;  %s855_s14 = smov (!%p109_p3), 64  }
   0x7   : > { %112 = sbr.rel (%p109_p3) target bundleno = 1400 (0x578), region = 24 }
   0xc   : > { %s973_s6 = smov (!%p136_p4, %s845_s6), 1  ;;  %vm179_vm0 = vcmask 523264   ;;  %vm250_vm1 = vcmask 158720   ;;  %vm243_vm2 = vcmask 162816   ;;  %vm295_vm3 = vcmask 1041408  }
   0xd   : > { %s768_s10 = smul.u32 36, %s973_s6  ;;  %vm363_vm4 = vcmask 517120   ;;  %vm360_vm5 = vcmask 519168   ;;  %vm588_vm6 = vcmask 1041920   ;;  %vm585_vm7 = vcmask 1043968  }
   0xe   : > { %s769_s15 = smul.u32 12, %s973_s6 }
   0xf   : > { %s890_s13 = scalar_lea.vmem %s966_s0, %s768_s10 }
  0x10   : > { %v795_v0 = vld [vmem:[%s890_s13 + $0x1c] ss:$0 sps:$4 sm:$0x33]   ;;  %v796_v1 = vld [vmem:[%s890_s13 + $0x4] ss:$12 sps:$4 sm:$0xff]   ;;  %s932_s18 = scalar_lea.vmem %s967_s1, %s769_s15 }
  0x11   : > { %762 = vmatprep.subr.msk.bf16.mxu0 %vm179_vm0, %v795_v0  ;;  %v190_v2 = vsel %vm179_vm0, %v795_v0, 0  ;;  %v797_v3 = vld [vmem:[%s890_s13] ss:$12 sps:$4 sm:$0xff]   ;;  %v187_v4 = vsel %vm179_vm0, %v796_v1, 0  ;;  %v804_v32 = vld [vmem:[%s890_s13 + $0x8] ss:$12 sps:$4 sm:$0xff]  }
  0x12   : > { %731 = vmatpush3.bf16.xpose.msra.mxu0 %v190_v2  ;;  %734 = vmatprep.mubr.msk.bf16.mxu0 %vm179_vm0, %v797_v3  ;;  %v798_v5 = vld [vmem:[%s890_s13 + $0x18] ss:$0 sps:$4 sm:$0x33]   ;;  %v803_v31 = vld [vmem:[%s890_s13 + $0x20] ss:$0 sps:$4 sm:$0x33]  }
  0x13   : > { %763 = vmatprep.subr.msk.bf16.mxu0 %vm179_vm0, %v796_v1  ;;  %v800_v33 = vld [vmem:[%s890_s13 + $0x4] ss:$12 sps:$4 sm:$0xff]   ;;  %764 = vmatprep.subr.msk.bf16.mxu1 %vm295_vm3, %v803_v31  ;;  %v297_v34 = vsel %vm295_vm3, %v803_v31, 0  ;;  %v801_v35 = vld [vmem:[%s890_s13] ss:$12 sps:$4 sm:$0xff]  }
  0x14   : > { %739 = vmatpush3.bf16.msra.mxu1 %v297_v34  ;;  %v799_v36 = vld [vmem:[%s890_s13 + $0x1c] ss:$0 sps:$4 sm:$0x33]   ;;  %v802_v37 = vld [vmem:[%s890_s13 + $0x18] ss:$0 sps:$4 sm:$0x33]  }
  0x15   : > { %740 = vmatprep.subr.bf16.mxu1 %v804_v32 }
  0x18   : > { %741 = vmatpush3.bf16.msra.mxu1 %v804_v32 }
  0x1a   : > { %733 = vmatpush3.bf16.xpose.msra.mxu0 %v187_v4 }
  0x21   : > { %735 = vmatmul.mubr.msk.bf16.vlgmr.msra.gmra.mxu0 %vm179_vm0, %v798_v5 }
  0xe1   : > { %v736_v6 = vpop.f32.mrf.mxu0 }
  0xe2   : > { %v242_v7 = vmul.f32 0.125, %v736_v6 }
  0xe3   : > { %v226_v8 = vpop.f32.mrf.mxu0 }
  0xe4   : > { %v240_v9 = vmul.f32 0.125, %v226_v8  ;;  %v251_v10 = vsel %vm250_vm1, %v242_v7, -inf }
  0xe5   : > { %252 = vmax.xlane.f32.xlu1 %v251_v10  ;;  %v737_v11 = vpop.f32.mrf.mxu0 }
  0xe6   : > { %v244_v12 = vsel %vm243_vm2, %v240_v9, -inf }
  0xe7   : > { %245 = vmax.xlane.f32.xlu0 %v244_v12  ;;  %v229_v13 = vpop.f32.mrf.mxu0 }
  0xe8   : > { %v241_v14 = vmul.f32 0.125, %v229_v13 }
  0xea   : > { %v247_v15 = vsel %vm243_vm2, %v241_v14, -inf }
  0xeb   : > { %248 = vmax.xlane.f32.xlu0 %v247_v15 }
 0x16e   : > { %v253_v16 = vpop.xlane.xlu1 %252 }
 0x16f   : > { %v256_v17 = vsub.f32 %v242_v7, %v253_v16 }
 0x170   : > { %v246_v18 = vpop.xlane.xlu0 %245 }
 0x171   : > { %v254_v19 = vsub.f32 %v240_v9, %v246_v18  ;;  %v261_v20 = vmul.f32 1.442695, %v256_v17 }
 0x173   : > { %v257_v21 = vmul.f32 1.442695, %v254_v19 }
 0x174   : > { %v249_v22 = vpop.xlane.xlu0 %248 }
 0x175   : > { %807 = vpow2.f32 %v257_v21  ;;  %v255_v23 = vsub.f32 %v241_v14, %v249_v22 }
 0x176   : > { %809 = vpow2.f32 %v261_v20 }
 0x177   : > { %v259_v24 = vmul.f32 1.442695, %v255_v23  ;;  %v806_v23 = vld [vmem:[%s890_s13 + $0x8] ss:$12 sps:$4 sm:$0xff]  }
 0x179   : > { %811 = vpow2.f32 %v259_v24  ;;  %v805_v24 = vld [vmem:[%s890_s13 + $0x20] ss:$0 sps:$4 sm:$0x33]  }
 0x182   : > { %v808_v25 = vpop.eup %807 }
 0x183   : > { %v263_v26 = vsel %vm243_vm2, %v808_v25, 0.0  ;;  %v810_v27 = vpop.eup %809 }
 0x184   : > { %264 = vadd.xlane.f32.xlu1 %v263_v26  ;;  %v269_v29 = vsel %vm250_vm1, %v810_v27, 0.0 }
 0x186   : > { %v812_v28 = vpop.eup %811 }
 0x187   : > { %v266_v30 = vsel %vm243_vm2, %v812_v28, 0.0 }
 0x188   : > { %270 = vadd.xlane.f32.xlu1 %v269_v29  ;;  %267 = vadd.xlane.f32.xlu0 %v266_v30 }
 0x199   : > { %394 = vrot.lane.b32.xlu1 %v800_v33, %s855_s14 }
 0x19d   : > { %382 = vrot.lane.b32.xlu1 %v801_v35, %s855_s14 }
 0x19e   : > { %396 = vrot.lane.b32.xlu0 %v799_v36, %s855_s14 }
 0x1a1   : > { %384 = vrot.lane.b32.xlu1 %v802_v37, %s855_s14 }
 0x20d   : > { %v265_v38 = vpop.xlane.xlu1 %264 }
 0x20e   : > { %813 = vrcp.f32 %v265_v38 }
 0x211   : > { %v271_v39 = vpop.xlane.xlu1 %270  ;;  %v268_v40 = vpop.xlane.xlu0 %267 }
 0x212   : > { %815 = vrcp.f32 %v271_v39 }
 0x213   : > { %817 = vrcp.f32 %v268_v40 }
 0x215   : > { %v397_v41 = vpop.permute.xlu0 %396  ;;  %v395_v43 = vpop.permute.xlu1 %394 }
 0x216   : > { %765 = vmatprep.subr.msk.bf16.mxu1 %vm179_vm0, %v397_v41  ;;  %v408_v51 = vsel %vm179_vm0, %v397_v41, 0  ;;  %v405_v53 = vsel %vm179_vm0, %v395_v43, 0 }
 0x219   : > { %v383_v52 = vpop.permute.xlu1 %382 }
 0x21b   : > { %v814_v42 = vpop.eup %813 }
 0x21c   : > { %v273_v47 = vmul.f32 %v814_v42, %v808_v25 }
 0x21d   : > { %v385_v54 = vpop.permute.xlu1 %384 }
 0x21f   : > { %v816_v44 = vpop.eup %815 }
 0x220   : > { %v818_v45 = vpop.eup %817  ;;  %v277_v46 = vmul.f32 %v816_v44, %v810_v27 }
 0x221   : > { %v275_v48 = vmul.f32 %v818_v45, %v812_v28 }
 0x222   : > { %v279_v49 = vpack.c.bf16 %v277_v46, %v277_v46 }
 0x223   : > { %v278_v50 = vpack.c.bf16 %v275_v48, %v273_v47 }
 0x225   : > { %742 = vmatprep.mubr.msk.bf16.mxu1 %vm243_vm2, %v278_v50 }
 0x226   : > { %743 = vmatmul.mubr.msk.bf16.vlgmr.msra.gmra.mxu1 %vm243_vm2, %v279_v49 }
 0x227   : > { %747 = vmatpush3.bf16.xpose.msra.mxu1 %v408_v51  ;;  %750 = vmatprep.mubr.msk.bf16.mxu1 %vm179_vm0, %v383_v52 }
 0x228   : > { %766 = vmatprep.subr.msk.bf16.mxu1 %vm179_vm0, %v395_v43 }
 0x22f   : > { %749 = vmatpush3.bf16.xpose.msra.mxu1 %v405_v53 }
 0x236   : > { %751 = vmatmul.mubr.msk.bf16.vlgmr.msra.gmra.mxu1 %vm179_vm0, %v385_v54 }
 0x2e6   : > { %v744_v55 = vpop.f32.mrf.mxu1 }
 0x2e7   : > { %v710_v56 = vpack.c.bf16 %v744_v55, %v744_v55 }
 0x2e8   : > { %v333_v57 = vpop.f32.mrf.mxu1 }
 0x2e9   : > { %364 = vst.msk [vmem:[%s932_s18 + $0x8] sm:$0x3] %vm363_vm4, %v710_v56  ;;  %v708_v58 = vpack.c.bf16 %v333_v57, %v333_v57 }
 0x2ea   : > { %v745_v59 = vpop.f32.mrf.mxu1 }
 0x2eb   : > { %361 = vst.msk [vmem:[%s932_s18] sm:$0xf] %vm360_vm5, %v708_v58 }
 0x2ec   : > { %v336_v60 = vpop.f32.mrf.mxu1 }
 0x2ed   : > { %v709_v61 = vpack.c.bf16 %v336_v60, %v336_v60 }
 0x2ef   : > { %362 = vst.msk [vmem:[%s932_s18 + $0x4] sm:$0xf] %vm360_vm5, %v709_v61 }
 0x2f6   : > { %v752_v62 = vpop.f32.mrf.mxu1 }
 0x2f7   : > { %v460_v2 = vmul.f32 0.125, %v752_v62 }
 0x2f8   : > { %v444_v63 = vpop.f32.mrf.mxu1 }
 0x2f9   : > { %v458_v0 = vmul.f32 0.125, %v444_v63  ;;  %v467_v6 = vsel %vm250_vm1, %v460_v2, -inf }
 0x2fa   : > { %v753_v1 = vpop.f32.mrf.mxu1 }
 0x2fb   : > { %v461_v3 = vsel %vm243_vm2, %v458_v0, -inf }
 0x2fc   : > { %462 = vmax.xlane.f32.xlu0 %v461_v3  ;;  %v447_v4 = vpop.f32.mrf.mxu1 }
 0x2fd   : > { %v459_v5 = vmul.f32 0.125, %v447_v4 }
 0x2ff   : > { %v464_v7 = vsel %vm243_vm2, %v459_v5, -inf }
 0x300   : > { %468 = vmax.xlane.f32.xlu0 %v467_v6  ;;  %465 = vmax.xlane.f32.xlu1 %v464_v7 }
 0x385   : > { %v463_v8 = vpop.xlane.xlu0 %462 }
 0x386   : > { %v470_v9 = vsub.f32 %v458_v0, %v463_v8 }
 0x388   : > { %v473_v10 = vmul.f32 1.442695, %v470_v9 }
 0x389   : > { %v469_v11 = vpop.xlane.xlu0 %468  ;;  %v466_v12 = vpop.xlane.xlu1 %465 }
 0x38a   : > { %819 = vpow2.f32 %v473_v10  ;;  %v472_v13 = vsub.f32 %v460_v2, %v469_v11  ;;  %v471_v14 = vsub.f32 %v459_v5, %v466_v12 }
 0x38c   : > { %v477_v15 = vmul.f32 1.442695, %v472_v13  ;;  %v475_v16 = vmul.f32 1.442695, %v471_v14 }
 0x38e   : > { %821 = vpow2.f32 %v477_v15 }
 0x38f   : > { %823 = vpow2.f32 %v475_v16 }
 0x397   : > { %v820_v17 = vpop.eup %819 }
 0x398   : > { %v479_v18 = vsel %vm243_vm2, %v820_v17, 0.0 }
 0x399   : > { %480 = vadd.xlane.f32.xlu0 %v479_v18 }
 0x39b   : > { %v822_v19 = vpop.eup %821 }
 0x39c   : > { %v824_v20 = vpop.eup %823  ;;  %v485_v21 = vsel %vm250_vm1, %v822_v19, 0.0 }
 0x39d   : > { %486 = vadd.xlane.f32.xlu1 %v485_v21  ;;  %v482_v22 = vsel %vm243_vm2, %v824_v20, 0.0 }
 0x39e   : > { %483 = vadd.xlane.f32.xlu0 %v482_v22 }
 0x3ae   : > { %504 = vrot.lane.b32.xlu1 %v806_v23, %s855_s14 }
 0x3b4   : > { %506 = vrot.lane.b32.xlu0 %v805_v24, %s855_s14 }
 0x422   : > { %v481_v25 = vpop.xlane.xlu0 %480 }
 0x423   : > { %825 = vrcp.f32 %v481_v25 }
 0x426   : > { %v487_v26 = vpop.xlane.xlu1 %486 }
 0x427   : > { %v484_v27 = vpop.xlane.xlu0 %483  ;;  %827 = vrcp.f32 %v487_v26 }
 0x428   : > { %829 = vrcp.f32 %v484_v27 }
 0x42a   : > { %v505_v29 = vpop.permute.xlu1 %504 }
 0x42b   : > { %v507_v28 = vpop.permute.xlu0 %506 }
 0x42c   : > { %v516_v30 = vsel %vm295_vm3, %v507_v28, 0  ;;  %767 = vmatprep.subr.msk.bf16.mxu0 %vm295_vm3, %v507_v28 }
 0x42d   : > { %755 = vmatpush3.bf16.msra.mxu0 %v516_v30 }
 0x42e   : > { %756 = vmatprep.subr.bf16.mxu0 %v505_v29 }
 0x430   : > { %v826_v31 = vpop.eup %825 }
 0x431   : > { %757 = vmatpush3.bf16.msra.mxu0 %v505_v29  ;;  %v489_v35 = vmul.f32 %v826_v31, %v820_v17 }
 0x434   : > { %v828_v32 = vpop.eup %827 }
 0x435   : > { %v830_v33 = vpop.eup %829  ;;  %v493_v34 = vmul.f32 %v828_v32, %v822_v19 }
 0x436   : > { %v491_v36 = vmul.f32 %v830_v33, %v824_v20 }
 0x437   : > { %v495_v37 = vpack.c.bf16 %v493_v34, %v493_v34 }
 0x438   : > { %v494_v38 = vpack.c.bf16 %v491_v36, %v489_v35 }
 0x43a   : > { %758 = vmatprep.mubr.msk.bf16.mxu0 %vm243_vm2, %v494_v38 }
 0x43b   : > { %759 = vmatmul.mubr.msk.bf16.vlgmr.msra.gmra.mxu0 %vm243_vm2, %v495_v37 }
 0x4fb   : > { %v760_v39 = vpop.f32.mrf.mxu0 }
 0x4fc   : > { %v713_v40 = vpack.c.bf16 %v760_v39, %v760_v39 }
 0x4fd   : > { %v552_v41 = vpop.f32.mrf.mxu0 }
 0x4fe   : > { %v711_v42 = vpack.c.bf16 %v552_v41, %v552_v41  ;;  %580 = vrot.lane.b32.xlu0 %v713_v40, %s855_s14 }
 0x4ff   : > { %v761_v43 = vpop.f32.mrf.mxu0 }
 0x500   : > { %576 = vrot.lane.b32.xlu1 %v711_v42, %s855_s14 }
 0x501   : > { %v555_v44 = vpop.f32.mrf.mxu0 }
 0x502   : > { %v712_v45 = vpack.c.bf16 %v555_v44, %v555_v44 }
 0x504   : > { %578 = vrot.lane.b32.xlu1 %v712_v45, %s855_s14 }
 0x570   : > { %v581_v46 = vpop.permute.xlu0 %580 }
 0x571   : > { %589 = vst.msk [vmem:[%s932_s18 + $0x8] sm:$0x3] %vm588_vm6, %v581_v46 }
 0x572   : > { %v577_v47 = vpop.permute.xlu1 %576 }
 0x573   : > { %586 = vst.msk [vmem:[%s932_s18] sm:$0xf] %vm585_vm7, %v577_v47 }
 0x576   : > { %v579_v48 = vpop.permute.xlu1 %578 }
 0x577   : > { %587 = vst.msk [vmem:[%s932_s18 + $0x4] sm:$0xf] %vm585_vm7, %v579_v48 }
 0x578 PF: > { %s11_s8 = sadd.s32 1, %s853_s8   ;;  %s968_s6 = smov %s849_s7 }
 0x579   : > { %p8_p5 = scmp.ge.s32.totalorder %s11_s8, 4   ;;  %s969_s7 = smov %s971_s9 }
 0x57b   :  { %10 = sbr.rel (!%p8_p5) target bundleno = 2 (0x2), region = 54 }

// kernel: segmenter_forward.25
= control target key start
LH: loop header
LB: loop body
LE: loop exit
PB: predicated region body
PF: predicated region fallthrough
CT: control target
= control target key end

     0   :  { %s902_s1 = inlined_call_operand.vmem [shape: bf16[512,128], index: 1, kind: input, shape index: {}]   ;;  %s903_s0 = inlined_call_operand.vmem [shape: bf16[40,512], index: 0, kind: input, shape index: {}]   ;;  %s904_s2 = inlined_call_operand.vmem [shape: f32[1,128], index: 2, kind: input, shape index: {}]   ;;  %s905_s3 = inlined_call_operand.vmem [shape: bf16[40,128], index: 3, kind: input, shape index: {}, may-alias: {3,4}]   ;;  %s906_s4 = inlined_call_operand.vmem [shape: bf16[40,128], index: 4, kind: output, shape index: {}, may-alias: {3,4}]  }
   0x1   :  { %v682_v0 = vld [vmem:[%s902_s1 + $0x78] sm:$0xff]   ;;  %v686_v4 = vld [vmem:[%s902_s1 + $0x70] sm:$0xff]   ;;  %v690_v8 = vld [vmem:[%s902_s1 + $0x68] sm:$0xff]  }
   0x2   :  { %v683_v1 = vld [vmem:[%s902_s1 + $0xf8] sm:$0xff]   ;;  %614 = vmatprep.subr.bf16.mxu0 %v682_v0  ;;  %v687_v5 = vld [vmem:[%s902_s1 + $0xf0] sm:$0xff]   ;;  %v691_v9 = vld [vmem:[%s902_s1 + $0xe8] sm:$0xff]  }
   0x3   :  { %v684_v2 = vld [vmem:[%s902_s1 + $0x38] sm:$0xff]   ;;  %648 = vmatprep.subr.bf16.mxu1 %v683_v1  ;;  %v688_v6 = vld [vmem:[%s902_s1 + $0x30] sm:$0xff]   ;;  %v692_v10 = vld [vmem:[%s902_s1 + $0x28] sm:$0xff]  }
   0x4   :  { %v685_v3 = vld [vmem:[%s902_s1 + $0xb8] sm:$0xff]   ;;  %615 = vmatpush3.bf16.msra.mxu0 %v684_v2  ;;  %v689_v7 = vld [vmem:[%s902_s1 + $0xb0] sm:$0xff]   ;;  %v693_v11 = vld [vmem:[%s902_s1 + $0xa8] sm:$0xff]  }
   0x5   :  { %649 = vmatpush3.bf16.msra.mxu1 %v685_v3  ;;  %616 = vmatprep.subr.bf16.mxu0 %v686_v4  ;;  %v694_v12 = vld [vmem:[%s902_s1 + $0x60] sm:$0xff]   ;;  %v698_v16 = vld [vmem:[%s902_s1 + $0x58] sm:$0xff]   ;;  %v702_v20 = vld [vmem:[%s902_s1 + $0x50] sm:$0xff]  }
   0x6   :  { %650 = vmatprep.subr.bf16.mxu1 %v687_v5  ;;  %v695_v13 = vld [vmem:[%s902_s1 + $0xe0] sm:$0xff]   ;;  %v699_v17 = vld [vmem:[%s902_s1 + $0xd8] sm:$0xff]   ;;  %v703_v21 = vld [vmem:[%s902_s1 + $0xd0] sm:$0xff]  }
   0x7   :  { %v696_v14 = vld [vmem:[%s902_s1 + $0x20] sm:$0xff]   ;;  %v700_v18 = vld [vmem:[%s902_s1 + $0x18] sm:$0xff]   ;;  %v704_v22 = vld [vmem:[%s902_s1 + $0x10] sm:$0xff]  }
   0x8   :  { %617 = vmatpush3.bf16.msra.mxu0 %v688_v6  ;;  %v697_v15 = vld [vmem:[%s902_s1 + $0xa0] sm:$0xff]   ;;  %v701_v19 = vld [vmem:[%s902_s1 + $0x98] sm:$0xff]   ;;  %v705_v23 = vld [vmem:[%s902_s1 + $0x90] sm:$0xff]  }
   0x9   :  { %651 = vmatpush3.bf16.msra.mxu1 %v689_v7  ;;  %618 = vmatprep.subr.bf16.mxu0 %v690_v8  ;;  %v706_v24 = vld [vmem:[%s902_s1 + $0x48] sm:$0xff]   ;;  %v710_v28 = vld [vmem:[%s902_s1 + $0x40] sm:$0xff]  }
   0xa   :  { %652 = vmatprep.subr.bf16.mxu1 %v691_v9  ;;  %v707_v25 = vld [vmem:[%s902_s1 + $0xc8] sm:$0xff]   ;;  %v711_v29 = vld [vmem:[%s902_s1 + $0xc0] sm:$0xff]  }
   0xb   :  { %v708_v26 = vld [vmem:[%s902_s1 + $0x8] sm:$0xff]   ;;  %v712_v30 = vld [vmem:[%s902_s1] sm:$0xff]  }
   0xc   :  { %619 = vmatpush3.bf16.msra.mxu0 %v692_v10  ;;  %v709_v27 = vld [vmem:[%s902_s1 + $0x88] sm:$0xff]   ;;  %v713_v31 = vld [vmem:[%s902_s1 + $0x80] sm:$0xff]  }
   0xd   :  { %653 = vmatpush3.bf16.msra.mxu1 %v693_v11  ;;  %620 = vmatprep.subr.bf16.mxu0 %v694_v12  ;;  %v714_v32 = vld [vmem:[%s903_s0] ss:$16 sps:$4 sm:$0xff]   ;;  %v716_v33 = vld [vmem:[%s903_s0 + $0x4] ss:$16 sps:$4 sm:$0xff]   ;;  %v717_v34 = vld [vmem:[%s903_s0 + $0x8] ss:$16 sps:$4 sm:$0xff]  }
   0xe   :  { %654 = vmatprep.subr.bf16.mxu1 %v695_v13  ;;  %v719_v35 = vld [vmem:[%s903_s0 + $0xc] ss:$16 sps:$4 sm:$0xff]   ;;  %384 = vmatprep.mubr.bf16.mxu0 %v716_v33  ;;  %v720_v36 = vld [vmem:[%s903_s0 + $0x24] ss:$16 sps:$4 sm:$0xff]   ;;  %v724_v40 = vld [vmem:[%s903_s0 + $0x20] ss:$16 sps:$4 sm:$0xff]  }
   0xf   :  { %440 = vmatprep.mubr.bf16.mxu1 %v719_v35  ;;  %v722_v37 = vld [vmem:[%s903_s0 + $0x2c] ss:$16 sps:$4 sm:$0xff]   ;;  %v40_v38 = vld [vmem:[%s903_s0 + $0x40] sm:$0xff]  ;;  %v725_v41 = vld [vmem:[%s903_s0 + $0x28] ss:$16 sps:$4 sm:$0xff]  }
  0x10   :  { %621 = vmatpush3.bf16.msra.mxu0 %v696_v14  ;;  %v41_v39 = vld [vmem:[%s903_s0 + $0x48] sm:$0xff]  ;;  %v548_v42 = vcombine.high %v40_v38, %v40_v38  ;;  %v547_v44 = vcombine.low %v40_v38, %v40_v38  ;;  %v583_v56 = vld [vmem:[%s904_s2] ss:$0 sm:$0xff] }
  0x11   :  { %655 = vmatpush3.bf16.msra.mxu1 %v697_v15  ;;  %622 = vmatprep.subr.bf16.mxu0 %v698_v16  ;;  %v550_v43 = vcombine.high %v41_v39, %v41_v39  ;;  %v549_v45 = vcombine.low %v41_v39, %v41_v39  ;;  %v595_v57 = vld [vmem:[%s905_s3] sm:$0xff]   ;;  %v612_v14 = vld [vmem:[%s905_s3 + $0x8] sm:$0xff]  }
  0x12   :  { %656 = vmatprep.subr.bf16.mxu1 %v699_v17  ;;  %v596_v0 = vunpack.c.l.bf16 %v595_v57  ;;  %v597_v2 = vunpack.c.h.bf16 %v595_v57 }
  0x14   :  { %623 = vmatpush3.bf16.msra.mxu0 %v700_v18 }
  0x15   :  { %657 = vmatpush3.bf16.msra.mxu1 %v701_v19  ;;  %624 = vmatprep.subr.bf16.mxu0 %v702_v20 }
  0x16   :  { %658 = vmatprep.subr.bf16.mxu1 %v703_v21 }
  0x18   :  { %625 = vmatpush3.bf16.msra.mxu0 %v704_v22  ;;  %v600_v22 = vunpack.c.l.bf16 %v612_v14 }
  0x19   :  { %659 = vmatpush3.bf16.msra.mxu1 %v705_v23  ;;  %626 = vmatprep.subr.bf16.mxu0 %v706_v24  ;;  %v601_v24 = vunpack.c.h.bf16 %v612_v14 }
  0x1a   :  { %660 = vmatprep.subr.bf16.mxu1 %v707_v25 }
  0x1c   :  { %627 = vmatpush3.bf16.msra.mxu0 %v708_v26 }
  0x1d   :  { %661 = vmatpush3.bf16.msra.mxu1 %v709_v27  ;;  %628 = vmatprep.subr.bf16.mxu0 %v710_v28 }
  0x1e   :  { %662 = vmatprep.subr.bf16.mxu1 %v711_v29 }
  0x20   :  { %629 = vmatpush3.bf16.msra.mxu0 %v712_v30 }
  0x21   :  { %663 = vmatpush3.bf16.msra.mxu1 %v713_v31 }
  0x23   :  { %385 = vmatmul.mubr.bf16.vlgmr.msra.gmra.mxu0 %v714_v32 }
  0x24   :  { %441 = vmatmul.mubr.bf16.vlgmr.msra.gmra.mxu1 %v717_v34  ;;  %392 = vmatprep.mubr.bf16.mxu0 %v720_v36 }
  0x25   :  { %448 = vmatprep.mubr.bf16.mxu1 %v722_v37 }
  0x2b   :  { %393 = vmatmul.mubr.bf16.gmra.mxu0 %v724_v40 }
  0x2c   :  { %449 = vmatmul.mubr.bf16.gmra.mxu1 %v725_v41  ;;  %400 = vmatprep.mubr.bf16.mxu0 %v548_v42 }
  0x2d   :  { %456 = vmatprep.mubr.bf16.mxu1 %v550_v43 }
  0x33   :  { %401 = vmatmul.mubr.bf16.gmra.mxu0 %v547_v44 }
  0x34   :  { %457 = vmatmul.mubr.bf16.gmra.mxu1 %v549_v45 }
  0xe3   :  { %v630_v46 = vpop.f32.mrf.mxu0 }
  0xe4   :  { %v664_v47 = vpop.f32.mrf.mxu1 }
  0xe5   :  { %v631_v48 = vpop.f32.mrf.mxu0 }
  0xe6   :  { %v632_v49 = vadd.f32 %v631_v48, %v630_v46  ;;  %v665_v50 = vpop.f32.mrf.mxu1 }
  0xe7   :  { %v666_v51 = vadd.f32 %v665_v50, %v664_v47  ;;  %v633_v52 = vpop.f32.mrf.mxu0 }
  0xe8   :  { %v667_v53 = vpop.f32.mrf.mxu1 }
  0xe9   :  { %v443_v54 = vadd.f32 %v666_v51, %v632_v49  ;;  %v634_v55 = vpop.f32.mrf.mxu0 }
  0xea   :  { %v635_v58 = vadd.f32 %v634_v55, %v633_v52  ;;  %v668_v59 = vpop.f32.mrf.mxu1 }
  0xeb   :  { %v669_v60 = vadd.f32 %v668_v59, %v667_v53  ;;  %v636_v61 = vpop.f32.mrf.mxu0  ;;  %v489_v63 = vadd.f32 %v583_v56, %v443_v54 }
  0xec   :  { %v670_v62 = vpop.f32.mrf.mxu1 }
  0xed   :  { %v446_v1 = vadd.f32 %v669_v60, %v635_v58  ;;  %v637_v3 = vpop.f32.mrf.mxu0  ;;  %v504_v10 = vadd.f32 %v596_v0, %v489_v63 }
  0xee   :  { %v638_v4 = vadd.f32 %v637_v3, %v636_v61  ;;  %v671_v5 = vpop.f32.mrf.mxu1 }
  0xef   :  { %v490_v6 = vadd.f32 %v583_v56, %v446_v1  ;;  %v672_v7 = vadd.f32 %v671_v5, %v670_v62  ;;  %v639_v8 = vpop.f32.mrf.mxu0 }
  0xf0   :  { %v673_v9 = vpop.f32.mrf.mxu1 }
  0xf1   :  { %v505_v11 = vadd.f32 %v597_v2, %v490_v6  ;;  %v451_v12 = vadd.f32 %v672_v7, %v638_v4  ;;  %v640_v13 = vpop.f32.mrf.mxu0 }
  0xf2   :  { %v641_v15 = vadd.f32 %v640_v13, %v639_v8  ;;  %v674_v16 = vpop.f32.mrf.mxu1 }
  0xf3   :  { %v605_v17 = vpack.c.bf16 %v505_v11, %v504_v10  ;;  %v675_v18 = vadd.f32 %v674_v16, %v673_v9  ;;  %v642_v19 = vpop.f32.mrf.mxu0  ;;  %v491_v21 = vadd.f32 %v583_v56, %v451_v12 }
  0xf4   :  { %v676_v20 = vpop.f32.mrf.mxu1 }
  0xf5   :  { %606 = vst [vmem:[%s906_s4] sm:$0xff] %v605_v17   ;;  %v454_v23 = vadd.f32 %v675_v18, %v641_v15  ;;  %v643_v25 = vpop.f32.mrf.mxu0  ;;  %v506_v33 = vadd.f32 %v600_v22, %v491_v21 }
  0xf6   :  { %v644_v26 = vadd.f32 %v643_v25, %v642_v19  ;;  %v677_v27 = vpop.f32.mrf.mxu1 }
  0xf7   :  { %v492_v29 = vadd.f32 %v583_v56, %v454_v23  ;;  %v678_v30 = vadd.f32 %v677_v27, %v676_v20  ;;  %v645_v31 = vpop.f32.mrf.mxu0 }
  0xf8   :  { %v679_v32 = vpop.f32.mrf.mxu1 }
  0xf9   :  { %v507_v34 = vadd.f32 %v601_v24, %v492_v29  ;;  %v459_v35 = vadd.f32 %v678_v30, %v644_v26  ;;  %v646_v37 = vpop.f32.mrf.mxu0 }
  0xfa   :  { %v680_v38 = vpop.f32.mrf.mxu1 }
  0xfb   :  { %v610_v39 = vpack.c.bf16 %v507_v34, %v506_v33  ;;  %v493_v40 = vadd.f32 %v583_v56, %v459_v35 }
  0xfc   :  { %v498_v28 = vld [vmem:[%s905_s3 + $0x10] sm:$0xf] }
  0xfd   :  { %v503_v36 = vunpack.c.l.bf16 %v498_v28  ;;  %613 = vst [vmem:[%s906_s4 + $0x8] sm:$0xff] %v610_v39  }
  0xff   :  { %v508_v41 = vadd.f32 %v503_v36, %v493_v40 }
 0x101   :  { %v593_v42 = vpack.c.bf16 %v508_v41, %v508_v41 }
 0x103   :  { %534 = vst [vmem:[%s906_s4 + $0x10] sm:$0xf] %v593_v42 }

// kernel: segmenter_forward.39
= control target key start
LH: loop header
LB: loop body
LE: loop exit
PB: predicated region body
PF: predicated region fallthrough
CT: control target
= control target key end

     0   :  { %s466_s15 = smov 0   ;;  %s500_s0 = inlined_call_operand.vmem [shape: bf16[2,16,128], index: 0, kind: input, shape index: {}]   ;;  %s501_s1 = inlined_call_operand.vmem [shape: bf16[2,4,128], index: 1, kind: input, shape index: {}]   ;;  %s502_s2 = inlined_call_operand.vmem [shape: f32[4,1], index: 2, kind: input, shape index: {}]   ;;  %s503_s3 = inlined_call_operand.vmem [shape: f32[4,1], index: 3, kind: input, shape index: {}]   ;;  %s504_s4 = inlined_call_operand.vmem [shape: f32[2,4,16], index: 4, kind: output, shape index: {}]  }
   0x1 LB: > { %s385_s16 = sadd.s32 4294967295, %s436_s15   ;;  %p389_p0 = scmp.ge.s32.totalorder %s436_s15, 1  ;;  %s436_s15 = sphi %s466_s15, %s14_s15  }
   0x2   : > { %p171_p1 = scmp.lt.s32.totalorder %s436_s15, 3 }
   0x4   : > { %p172_p2 = pnand %p389_p0, %p171_p1 }
   0x5   : > { %p200_p3 = scmp.lt.s32.totalorder (!%p172_p2), %s385_s16, 1 }
   0x6   : > { %175 = sbr.rel (%p172_p2) target bundleno = 438 (0x1b6), region = 36 }
   0xb   : > { %s506_s16 = smov (!%p200_p3, %s385_s16), 1  ;;  %vm233_vm0 = vcmask 1043456   ;;  %v438_v9 = vmov 0.0   ;;  %vm439_vm1 = vmmov 0   ;;  %v305_v10 = vld [vmem:[%s502_s2] sm:$0xf] }
   0xc   : > { %s396_s17 = sshll.u32 %s506_s16, 3  ;;  %s392_s18 = sshll.u32 %s506_s16, 1  ;;  %403 = vmatprep.subr.bf16.mxu0 %v438_v9  ;;  %405 = vmatprep.mubr.msk.bf16.mxu0 %vm439_vm1, %v438_v9  ;;  %v312_v11 = vld [vmem:[%s503_s3] sm:$0xf]  ;;  %v440_v12 = vmov 0   ;;  %vm282_vm2 = vcmask 125952  }
   0xd   : > { %s204_s21 = scalar_lea.vmem %s500_s0, %s396_s17  ;;  %s208_s24 = scalar_lea.vmem %s501_s1, %s392_s18  ;;  %420 = vset.pattern.permute.xlu1 %v440_v12  ;;  %421 = vset.pattern.permute.xlu0 %v440_v12 }
   0xe   : > { %v398_v0 = vld [vmem:[%s204_s21] sm:$0xff]   ;;  %s393_s29 = sshll.u32 %s506_s16, 2 }
   0xf   : > { %v218_v1 = vld [vmem:[%s208_s24] sm:$0x3]  ;;  %v399_v2 = vunpack.c.l.bf16 %v398_v0  ;;  %v400_v3 = vunpack.c.h.bf16 %v398_v0  ;;  %s212_s6 = scalar_lea.vmem %s504_s4, %s393_s29 }
  0x10   : > { %v219_v4 = vunpack.c.l.bf16 %v218_v1 }
  0x11   : > { %v220_v5 = vmul.f32 %v399_v2, %v399_v2  ;;  %v221_v7 = vmul.f32 %v400_v3, %v400_v3 }
  0x12   : > { %v232_v6 = vmul.f32 %v219_v4, %v219_v4 }
  0x13   : > { %222 = vadd.xlane.f32.xlu0 %v220_v5 }
  0x14   : > { %v234_v8 = vsel %vm233_vm0, %v232_v6, 0.0 }
  0x15   : > { %235 = vadd.xlane.f32.xlu1 %v234_v8 }
  0x17   : > { %224 = vadd.xlane.f32.xlu0 %v221_v7 }
  0x26   : > { %308 = vperm.xlu1 %420, %v305_v10  }
  0x2d   : > { %315 = vperm.xlu0 %421, %v312_v11  }
  0x9c   : > { %v223_v13 = vpop.xlane.xlu0 %222 }
  0x9d   : > { %v226_v14 = vadd.f32 1e-12, %v223_v13 }
  0x9e   : > { %v236_v15 = vpop.xlane.xlu1 %235 }
  0x9f   : > { %v237_v17 = vadd.f32 1e-12, %v236_v15  ;;  %422 = vrsqrt.f32 %v226_v14 }
  0xa0   : > { %v225_v16 = vpop.xlane.xlu0 %224 }
  0xa1   : > { %v227_v18 = vadd.f32 1e-12, %v225_v16 }
  0xa2   : > { %v309_v51 = vpop.permute.xlu1 %308 }
  0xa3   : > { %424 = vrsqrt.f32 %v227_v18 }
  0xa4   : > { %426 = vrsqrt.f32 %v237_v17 }
  0xa8   : > { %v316_v53 = vpop.permute.xlu0 %315 }
  0xac   : > { %v423_v19 = vpop.eup %422 }
  0xad   : > { %v230_v22 = vmul.f32 %v423_v19, %v399_v2 }
  0xb0   : > { %v425_v20 = vpop.eup %424 }
  0xb1   : > { %v427_v21 = vpop.eup %426  ;;  %v231_v23 = vmul.f32 %v425_v20, %v400_v3 }
  0xb2   : > { %v239_v25 = vmul.f32 %v427_v21, %v219_v4 }
  0xb3   : > { %v241_v24 = vpack.c.bf16 %v231_v23, %v230_v22 }
  0xb4   : > { %v240_v26 = vpack.c.bf16 %v239_v25, %v239_v25 }
  0xb5   : > { %404 = vmatpush3.bf16.xpose.msra.mxu0 %v241_v24 }
  0xbc   : > { %406 = vmatmul.mubr.bf16.vlgmr.msra.gmra.mxu0 %v240_v26 }
 0x17c   : > { %v276_v27 = vpop.f32.mrf.mxu0 }
 0x17d   : > { %v283_v28 = vsel %vm282_vm2, %v276_v27, 0.0 }
 0x17e   : > { %v284_v29 = vrot.slane %v283_v28, 4  ;;  %v407_v30 = vpop.f32.mrf.mxu0 }
 0x180   : > { %v285_v31 = vadd.f32 %v284_v29, %v283_v28  ;;  %v279_v32 = vpop.f32.mrf.mxu0 }
 0x182   : > { %v286_v33 = vrot.slane %v285_v31, 2  ;;  %v408_v34 = vpop.f32.mrf.mxu0 }
 0x184   : > { %v287_v35 = vadd.f32 %v286_v33, %v285_v31 }
 0x186   : > { %v288_v36 = vrot.slane %v287_v35, 1 }
 0x188   : > { %v289_v37 = vadd.f32 %v288_v36, %v287_v35 }
 0x18a   : > { %v291_v38 = vmul.f32 0.25, %v289_v37 }
 0x18c   : > { %v292_v39 = vsub.f32 %v276_v27, %v291_v38 }
 0x18e   : > { %v293_v40 = vmul.f32 %v292_v39, %v292_v39 }
 0x190   : > { %v294_v41 = vsel %vm282_vm2, %v293_v40, 0.0 }
 0x191   : > { %v295_v42 = vrot.slane %v294_v41, 4 }
 0x193   : > { %v296_v43 = vadd.f32 %v295_v42, %v294_v41 }
 0x195   : > { %v297_v44 = vrot.slane %v296_v43, 2 }
 0x197   : > { %v298_v45 = vadd.f32 %v297_v44, %v296_v43 }
 0x199   : > { %v299_v46 = vrot.slane %v298_v45, 1 }
 0x19b   : > { %v300_v47 = vadd.f32 %v299_v46, %v298_v45 }
 0x19d   : > { %v301_v48 = vmul.f32 0.25, %v300_v47 }
 0x19f   : > { %v302_v49 = vadd.f32 1e-06, %v301_v48 }
 0x1a1   : > { %428 = vrsqrt.f32 %v302_v49 }
 0x1ae   : > { %v429_v50 = vpop.eup %428 }
 0x1af   : > { %v304_v52 = vmul.f32 %v429_v50, %v292_v39 }
 0x1b1   : > { %v311_v54 = vmul.f32 %v309_v51, %v304_v52 }
 0x1b3   : > { %v318_v55 = vadd.f32 %v316_v53, %v311_v54 }
 0x1b5   : > { %319 = vst.msk [vmem:[%s212_s6] sm:$0xf] %vm282_vm2, %v318_v55 }
 0x1b6 PF: > { %s14_s15 = sadd.s32 1, %s436_s15  }
 0x1b7   : > { %p11_p4 = scmp.ge.s32.totalorder %s14_s15, 4  }
 0x1b9   :  { %13 = sbr.rel (!%p11_p4) target bundleno = 1 (0x1), region = 69 }

</bundles_post_ra>
